<compile_context>
chip_gen: v6e
topology: v6e:2x2x1
jax: 0.10.0
libtpu: 0.0.40
codegen_flags: <defaults>
</compile_context>

<pallas_src>
import functools

import jax
import jax.numpy as jnp
import numpy as np
from jax.experimental import pallas as pl
from jax.experimental.pallas import tpu as pltpu


def _round_up(x, m):
    return (x + m - 1) // m * m


def _pack_layer(w_ih, w_hh, b_ih, b_hh, *, hp, din_pad, w_dtype):
    """Pack one GRU layer's PyTorch-layout params into lane-aligned tensors.

      w_ih: [3H, Din], w_hh: [3H, H], b_ih/b_hh: [3H]   (gate order r, z, n)

    Returns:
      w_ih_p [din_pad, 3*hp]   (x @ w_ih_p == x @ W_ih^T, gate blocks lane-aligned)
      w_hh_p [hp, 3*hp]
      b_gi   [1, 3*hp]  = b_ih with the r/z-gate b_hh folded in (n gate: b_ih only)
      b_hn   [1, hp]    = n-gate b_hh (must stay inside the r*(...) term)

    Zero padding keeps the recurrence exact: padded hidden lanes stay 0 forever.
    """
    th, din = w_ih.shape
    h = th // 3
    w_ih_t = w_ih.T          # [din, 3h]
    w_hh_t = w_hh.T          # [h, 3h]
    wi_cols, wh_cols, bg_cols = [], [], []
    for g in range(3):
        wi = jnp.pad(w_ih_t[:, g * h:(g + 1) * h],
                     ((0, din_pad - din), (0, hp - h)))
        wh = jnp.pad(w_hh_t[:, g * h:(g + 1) * h],
                     ((0, hp - h), (0, hp - h)))
        wi_cols.append(wi)
        wh_cols.append(wh)
        bg = b_ih[g * h:(g + 1) * h]
        if g < 2:  # reset / update gates: recurrent bias folds into the input proj
            bg = bg + b_hh[g * h:(g + 1) * h]
        bg_cols.append(jnp.pad(bg, (0, hp - h)))
    b_hn = jnp.pad(b_hh[2 * h:3 * h], (0, hp - h))[None, :]
    return (jnp.concatenate(wi_cols, axis=1).astype(w_dtype),
            jnp.concatenate(wh_cols, axis=1).astype(w_dtype),
            jnp.concatenate(bg_cols)[None, :].astype(jnp.float32),
            b_hn.astype(jnp.float32))


def _fused_gru_kernel(*refs, num_layers, seq_len, b_pad, hp, w_dtype):
    """All GRU layers fused; single invocation (no grid).

    refs (in order):
      x [L*Bp, Din]                                       (time-major, batch-padded)
      per layer k: w_ih_k, w_hh_k, b_gi_k, b_hn_k
      out [L*Bp, Hp]
      scratch: gi_scr [L*Bp, 3Hp]   (+ y_scr [L*Bp, Hp] if num_layers > 1)
    """
    it = iter(refs)
    x_ref = next(it)
    layers = [(next(it), next(it), next(it), next(it)) for _ in range(num_layers)]
    out_ref = next(it)
    gi_scr = next(it)
    y_scr = next(it) if num_layers > 1 else None

    unroll = True if seq_len <= 32 else 8   # full unroll only while seq is short

    def run_layer(w_hh_ref, b_hn_ref, y_ref):
        b_hn = b_hn_ref[...]                                  # [1, hp] (one vreg)

        def step(t, h):
            row = pl.multiple_of(t * b_pad, b_pad)            # 8-sublane aligned
            gi = gi_scr[pl.ds(row, b_pad), :]                 # [Bp, 3Hp] precomputed
            # Recurrent projection; weights streamed from VMEM (not hoisted, so
            # vregs stay free for the gate math across the unrolled loop).
            gh = jnp.dot(h.astype(w_dtype), w_hh_ref[...],
                         preferred_element_type=jnp.float32)
            # Lane-aligned gate slices (each gate is a whole 128-lane block).
            r = jax.nn.sigmoid(gi[:, 0:hp] + gh[:, 0:hp])
            z = jax.nn.sigmoid(gi[:, hp:2 * hp] + gh[:, hp:2 * hp])
            n = jnp.tanh(gi[:, 2 * hp:] + r * (gh[:, 2 * hp:] + b_hn))
            h_new = n + z * (h - n)                           # == (1-z)*n + z*h
            y_ref[pl.ds(row, b_pad), :] = h_new               # lane-dense store
            return h_new

        h0 = jnp.zeros((b_pad, hp), jnp.float32)              # h0 = 0 (matches module)
        jax.lax.fori_loop(0, seq_len, step, h0, unroll=unroll)

    # Layer 0: input projection over ALL time steps as one in-kernel MXU matmul.
    w_ih0, w_hh0, b_gi0, b_hn0 = layers[0]
    gi_scr[...] = (jnp.dot(x_ref[...].astype(w_dtype), w_ih0[...],
                           preferred_element_type=jnp.float32) + b_gi0[...])
    run_layer(w_hh0, b_hn0, out_ref if num_layers == 1 else y_scr)

    # Layers 1..K-1: same, reading the previous layer's VMEM-resident activations.
    for k in range(1, num_layers):
        w_ih, w_hh, b_gi, b_hn = layers[k]
        gi_scr[...] = (jnp.dot(y_scr[...].astype(w_dtype), w_ih[...],
                               preferred_element_type=jnp.float32) + b_gi[...])
        run_layer(w_hh, b_hn, out_ref if k == num_layers - 1 else y_scr)


def _encoder_rnn_forward(enc_in, packed, *, hidden_size, num_layers, w_dtype):
    """enc_in: [B, L, enc_in_dim]; packed: pre-padded per-layer weight tuples."""
    B, L, Din = enc_in.shape
    H = hidden_size
    HP = _round_up(H, 128)          # lane-aligned hidden size
    BP = _round_up(B, 8)            # sublane-aligned batch
    G = 3 * HP

    # Time-major, batch-padded input slab.  Padded batch rows are independent
    # garbage sliced off at the end; padded hidden lanes provably stay zero.
    x = jnp.transpose(enc_in, (1, 0, 2))                      # [L, B, Din]
    x = jnp.pad(x, ((0, 0), (0, BP - B), (0, 0))).reshape(L * BP, Din)

    inputs = [x]
    for layer in packed:
        inputs.extend(layer)

    scratch = [pltpu.VMEM((L * BP, G), jnp.float32)]          # fused input projections
    if num_layers > 1:
        scratch.append(pltpu.VMEM((L * BP, HP), jnp.float32))  # inter-layer activations
    # TODO(synk): chunk gi_scr over time blocks + stream weights via make_async_copy
    # when H/L grow past the v7x 64 MiB VMEM budget.

    kernel = functools.partial(_fused_gru_kernel, num_layers=num_layers,
                               seq_len=L, b_pad=BP, hp=HP, w_dtype=w_dtype)

    # Explicit VMEM budget (single-buffered whole-array residents + scratch + out).
    footprint = sum(int(np.prod(a.shape)) * a.dtype.itemsize for a in inputs)
    footprint += L * BP * G * 4                                # gi_scr
    footprint += L * BP * HP * 4 * (2 if num_layers > 1 else 1)  # y_scr + out
    vmem_limit = int(min(128 << 20, max(16 << 20, 2 * footprint + (2 << 20))))

    out = pl.pallas_call(
        kernel,
        out_shape=jax.ShapeDtypeStruct((L * BP, HP), jnp.float32),
        # No grid: single invocation, whole arrays resident in VMEM -> no pipeline
        # double-buffering for the grid=(1,) case.
        in_specs=[pl.BlockSpec(memory_space=pltpu.MemorySpace.VMEM)] * len(inputs),
        out_specs=pl.BlockSpec(memory_space=pltpu.MemorySpace.VMEM),
        scratch_shapes=scratch,
        compiler_params=pltpu.CompilerParams(vmem_limit_bytes=vmem_limit),
    )(*inputs)

    out = out.reshape(L, BP, HP)[:, :B, :H]                   # drop batch/lane padding
    return jnp.transpose(out, (1, 0, 2))                      # -> [B, L, r_dim]


def make_encoder_rnn(params, *, w_dtype=jnp.float32):
    """Pre-pack (pad / transpose / fold biases) the GRU weights ONCE, outside the
    per-call jitted path, and return a jitted forward:
        enc_in [B, L, enc_in_dim] -> output [B, L, r_dim]."""
    H = params[0][1].shape[1]
    num_layers = len(params)
    HP = _round_up(H, 128)
    packed = []
    for k, (w_ih, w_hh, b_ih, b_hh) in enumerate(params):
        din_pad = w_ih.shape[1] if k == 0 else HP
        packed.append(_pack_layer(w_ih, w_hh, b_ih, b_hh,
                                  hp=HP, din_pad=din_pad, w_dtype=w_dtype))
    fwd = jax.jit(functools.partial(_encoder_rnn_forward, hidden_size=H,
                                    num_layers=num_layers, w_dtype=w_dtype))
    return lambda enc_in: fwd(enc_in, packed)


def init_encoder_rnn_params(key, enc_in_dim, r_dim, num_rnn):
    """Deterministic init mirroring nn.GRU parameter shapes (PyTorch layout):
       weight_ih_l{k}: [3H, Din_k], weight_hh_l{k}: [3H, H], biases: [3H]."""
    params = []
    bound = 1.0 / np.sqrt(r_dim)
    for layer in range(num_rnn):
        din = enc_in_dim if layer == 0 else r_dim
        key, k1, k2, k3, k4 = jax.random.split(key, 5)
        w_ih = jax.random.uniform(k1, (3 * r_dim, din), jnp.float32, -bound, bound)
        w_hh = jax.random.uniform(k2, (3 * r_dim, r_dim), jnp.float32, -bound, bound)
        b_ih = jax.random.uniform(k3, (3 * r_dim,), jnp.float32, -bound, bound)
        b_hh = jax.random.uniform(k4, (3 * r_dim,), jnp.float32, -bound, bound)
        params.append((w_ih, w_hh, b_ih, b_hh))
    return params


def encoder_rnn_reference(enc_in, params):
    """Pure-JAX reference (lax.scan) replicating torch.nn.GRU semantics."""
    x = enc_in
    for (w_ih, w_hh, b_ih, b_hh) in params:
        H = w_hh.shape[1]
        B = x.shape[0]
        h0 = jnp.zeros((B, H), jnp.float32)

        def step(h, xt, w_ih=w_ih, w_hh=w_hh, b_ih=b_ih, b_hh=b_hh, H=H):
            gi = xt @ w_ih.T + b_ih
            gh = h @ w_hh.T + b_hh
            r = jax.nn.sigmoid(gi[:, :H] + gh[:, :H])
            z = jax.nn.sigmoid(gi[:, H:2 * H] + gh[:, H:2 * H])
            n = jnp.tanh(gi[:, 2 * H:] + r * gh[:, 2 * H:])
            h_new = (1.0 - z) * n + z * h
            return h_new, h_new

        _, ys = jax.lax.scan(step, h0, jnp.transpose(x, (1, 0, 2)))
        x = jnp.transpose(ys, (1, 0, 2))
    return x


if __name__ == "__main__":
    B, L = 2, 8
    enc_in_dim, r_dim, num_rnn = 16, 32, 2

    key = jax.random.PRNGKey(0)
    key, pkey, xkey = jax.random.split(key, 3)
    params = init_encoder_rnn_params(pkey, enc_in_dim, r_dim, num_rnn)
    enc_in = jax.random.normal(xkey, (B, L, enc_in_dim), jnp.float32)

    ref = jax.block_until_ready(encoder_rnn_reference(enc_in, params))

    # f32-weight path: strict numerical check against the GRU reference.
    fwd_f32 = make_encoder_rnn(params)                 # weights packed once here
    out = jax.block_until_ready(fwd_f32(enc_in))
    assert out.shape == (B, L, r_dim)
    np.testing.assert_allclose(np.asarray(out), np.asarray(ref),
                               atol=1e-4, rtol=1e-4)

    # bf16-weight path (single-pass MXU matmuls, f32 accumulation): looser check.
    fwd_bf16 = make_encoder_rnn(params, w_dtype=jnp.bfloat16)
    out_bf16 = jax.block_until_ready(fwd_bf16(enc_in))
    np.testing.assert_allclose(np.asarray(out_bf16), np.asarray(ref),
                               atol=5e-2, rtol=5e-2)

    print("KERNEL_OK")
</pallas_src>

<mosaic_0001>
module attributes {stable_mosaic.version = 11 : i64} {
  func.func @_fused_gru_kernel(%arg0: memref<64x16xf32, #tpu.memory_space<vmem>>, %arg1: memref<16x384xf32, #tpu.memory_space<vmem>>, %arg2: memref<128x384xf32, #tpu.memory_space<vmem>>, %arg3: memref<1x384xf32, #tpu.memory_space<vmem>>, %arg4: memref<1x128xf32, #tpu.memory_space<vmem>>, %arg5: memref<128x384xf32, #tpu.memory_space<vmem>>, %arg6: memref<128x384xf32, #tpu.memory_space<vmem>>, %arg7: memref<1x384xf32, #tpu.memory_space<vmem>>, %arg8: memref<1x128xf32, #tpu.memory_space<vmem>>, %arg9: memref<64x128xf32, #tpu.memory_space<vmem>>, %arg10: memref<64x384xf32, #tpu.memory_space<vmem>>, %arg11: memref<64x128xf32, #tpu.memory_space<vmem>>) attributes {dimension_semantics = [], scalar_prefetch = 0 : i64, scratch_operands = 2 : i64, tpu.core_type = #tpu.core_type<tc>} {
    %c0 = arith.constant 0 : index
    %c0_0 = arith.constant 0 : index
    %0 = vector.load %arg0[%c0, %c0_0] : memref<64x16xf32, #tpu.memory_space<vmem>>, vector<64x16xf32>
    %c0_1 = arith.constant 0 : index
    %c0_2 = arith.constant 0 : index
    %1 = vector.load %arg1[%c0_1, %c0_2] : memref<16x384xf32, #tpu.memory_space<vmem>>, vector<16x384xf32>
    %cst = arith.constant dense<0.000000e+00> : vector<64x384xf32>
    %2 = tpu.matmul %0, %1, %cst {dimension_numbers = #tpu.dot_dimension_numbers<[1], [0], [0], [1], [0, 0, 1, 1], [], []>} : vector<64x16xf32>, vector<16x384xf32>, vector<64x384xf32> -> vector<64x384xf32>
    %c0_3 = arith.constant 0 : index
    %c0_4 = arith.constant 0 : index
    %3 = vector.load %arg3[%c0_3, %c0_4] : memref<1x384xf32, #tpu.memory_space<vmem>>, vector<1x384xf32>
    %4 = vector.broadcast %3 : vector<1x384xf32> to vector<64x384xf32>
    %5 = arith.addf %2, %4 : vector<64x384xf32>
    %c0_5 = arith.constant 0 : index
    %c0_6 = arith.constant 0 : index
    %6 = vector.load %arg10[%c0_5, %c0_6] : memref<64x384xf32, #tpu.memory_space<vmem>>, vector<64x384xf32>
    tpu.vector_store %arg10[%c0_5, %c0_6], %5 {strides = array<i32>} : memref<64x384xf32, #tpu.memory_space<vmem>>, vector<64x384xf32>,
    %c0_7 = arith.constant 0 : index
    %c0_8 = arith.constant 0 : index
    %7 = vector.load %arg4[%c0_7, %c0_8] : memref<1x128xf32, #tpu.memory_space<vmem>>, vector<1x128xf32>
    %cst_9 = arith.constant 0.000000e+00 : f32
    %8 = vector.broadcast %cst_9 : f32 to vector<8x128xf32>
    %c0_i32 = arith.constant 0 : i32
    %c8_i32 = arith.constant 8 : i32
    %9 = arith.muli %c0_i32, %c8_i32 : i32
    %10 = tpu.assume_multiple %9, 8 : i32
    %11 = arith.index_cast %10 : i32 to index
    %c0_10 = arith.constant 0 : index
    %12 = vector.load %arg10[%11, %c0_10] : memref<64x384xf32, #tpu.memory_space<vmem>>, vector<8x384xf32>
    %c0_11 = arith.constant 0 : index
    %c0_12 = arith.constant 0 : index
    %13 = vector.load %arg2[%c0_11, %c0_12] : memref<128x384xf32, #tpu.memory_space<vmem>>, vector<128x384xf32>
    %cst_13 = arith.constant dense<0.000000e+00> : vector<8x384xf32>
    %14 = tpu.matmul %8, %13, %cst_13 {dimension_numbers = #tpu.dot_dimension_numbers<[1], [0], [0], [1], [0, 0, 1, 1], [], []>} : vector<8x128xf32>, vector<128x384xf32>, vector<8x384xf32> -> vector<8x384xf32>
    %15 = vector.extract_strided_slice %12 {offsets = [0, 0], sizes = [8, 128], strides = [1, 1]} : vector<8x384xf32> to vector<8x128xf32>
    %16 = vector.extract_strided_slice %14 {offsets = [0, 0], sizes = [8, 128], strides = [1, 1]} : vector<8x384xf32> to vector<8x128xf32>
    %17 = arith.addf %15, %16 : vector<8x128xf32>
    %18 = arith.negf %17 : vector<8x128xf32>
    %19 = math.exp %18 : vector<8x128xf32>
    %cst_14 = arith.constant 1.000000e+00 : f32
    %20 = vector.broadcast %cst_14 : f32 to vector<8x128xf32>
    %21 = arith.addf %20, %19 : vector<8x128xf32>
    %22 = arith.divf %20, %21 : vector<8x128xf32>
    %23 = vector.extract_strided_slice %12 {offsets = [0, 128], sizes = [8, 128], strides = [1, 1]} : vector<8x384xf32> to vector<8x128xf32>
    %24 = vector.extract_strided_slice %14 {offsets = [0, 128], sizes = [8, 128], strides = [1, 1]} : vector<8x384xf32> to vector<8x128xf32>
    %25 = arith.addf %23, %24 : vector<8x128xf32>
    %26 = arith.negf %25 : vector<8x128xf32>
    %27 = math.exp %26 : vector<8x128xf32>
    %cst_15 = arith.constant 1.000000e+00 : f32
    %28 = vector.broadcast %cst_15 : f32 to vector<8x128xf32>
    %29 = arith.addf %28, %27 : vector<8x128xf32>
    %30 = arith.divf %28, %29 : vector<8x128xf32>
    %31 = vector.extract_strided_slice %12 {offsets = [0, 256], sizes = [8, 128], strides = [1, 1]} : vector<8x384xf32> to vector<8x128xf32>
    %32 = vector.extract_strided_slice %14 {offsets = [0, 256], sizes = [8, 128], strides = [1, 1]} : vector<8x384xf32> to vector<8x128xf32>
    %33 = vector.broadcast %7 : vector<1x128xf32> to vector<8x128xf32>
    %34 = arith.addf %32, %33 : vector<8x128xf32>
    %35 = arith.mulf %22, %34 : vector<8x128xf32>
    %36 = arith.addf %31, %35 : vector<8x128xf32>
    %37 = math.tanh %36 : vector<8x128xf32>
    %38 = arith.subf %8, %37 : vector<8x128xf32>
    %39 = arith.mulf %30, %38 : vector<8x128xf32>
    %40 = arith.addf %37, %39 : vector<8x128xf32>
    %41 = arith.index_cast %10 : i32 to index
    %c0_16 = arith.constant 0 : index
    %42 = vector.load %arg11[%41, %c0_16] : memref<64x128xf32, #tpu.memory_space<vmem>>, vector<8x128xf32>
    tpu.vector_store %arg11[%41, %c0_16], %40 {strides = array<i32>} : memref<64x128xf32, #tpu.memory_space<vmem>>, vector<8x128xf32>,
    %c1_i32 = arith.constant 1 : i32
    %c8_i32_17 = arith.constant 8 : i32
    %43 = arith.muli %c1_i32, %c8_i32_17 : i32
    %44 = tpu.assume_multiple %43, 8 : i32
    %45 = arith.index_cast %44 : i32 to index
    %c0_18 = arith.constant 0 : index
    %46 = vector.load %arg10[%45, %c0_18] : memref<64x384xf32, #tpu.memory_space<vmem>>, vector<8x384xf32>
    %c0_19 = arith.constant 0 : index
    %c0_20 = arith.constant 0 : index
    %47 = vector.load %arg2[%c0_19, %c0_20] : memref<128x384xf32, #tpu.memory_space<vmem>>, vector<128x384xf32>
    %cst_21 = arith.constant dense<0.000000e+00> : vector<8x384xf32>
    %48 = tpu.matmul %40, %47, %cst_21 {dimension_numbers = #tpu.dot_dimension_numbers<[1], [0], [0], [1], [0, 0, 1, 1], [], []>} : vector<8x128xf32>, vector<128x384xf32>, vector<8x384xf32> -> vector<8x384xf32>
    %49 = vector.extract_strided_slice %46 {offsets = [0, 0], sizes = [8, 128], strides = [1, 1]} : vector<8x384xf32> to vector<8x128xf32>
    %50 = vector.extract_strided_slice %48 {offsets = [0, 0], sizes = [8, 128], strides = [1, 1]} : vector<8x384xf32> to vector<8x128xf32>
    %51 = arith.addf %49, %50 : vector<8x128xf32>
    %52 = arith.negf %51 : vector<8x128xf32>
    %53 = math.exp %52 : vector<8x128xf32>
    %cst_22 = arith.constant 1.000000e+00 : f32
    %54 = vector.broadcast %cst_22 : f32 to vector<8x128xf32>
    %55 = arith.addf %54, %53 : vector<8x128xf32>
    %56 = arith.divf %54, %55 : vector<8x128xf32>
    %57 = vector.extract_strided_slice %46 {offsets = [0, 128], sizes = [8, 128], strides = [1, 1]} : vector<8x384xf32> to vector<8x128xf32>
    %58 = vector.extract_strided_slice %48 {offsets = [0, 128], sizes = [8, 128], strides = [1, 1]} : vector<8x384xf32> to vector<8x128xf32>
    %59 = arith.addf %57, %58 : vector<8x128xf32>
    %60 = arith.negf %59 : vector<8x128xf32>
    %61 = math.exp %60 : vector<8x128xf32>
    %cst_23 = arith.constant 1.000000e+00 : f32
    %62 = vector.broadcast %cst_23 : f32 to vector<8x128xf32>
    %63 = arith.addf %62, %61 : vector<8x128xf32>
    %64 = arith.divf %62, %63 : vector<8x128xf32>
    %65 = vector.extract_strided_slice %46 {offsets = [0, 256], sizes = [8, 128], strides = [1, 1]} : vector<8x384xf32> to vector<8x128xf32>
    %66 = vector.extract_strided_slice %48 {offsets = [0, 256], sizes = [8, 128], strides = [1, 1]} : vector<8x384xf32> to vector<8x128xf32>
    %67 = vector.broadcast %7 : vector<1x128xf32> to vector<8x128xf32>
    %68 = arith.addf %66, %67 : vector<8x128xf32>
    %69 = arith.mulf %56, %68 : vector<8x128xf32>
    %70 = arith.addf %65, %69 : vector<8x128xf32>
    %71 = math.tanh %70 : vector<8x128xf32>
    %72 = arith.subf %40, %71 : vector<8x128xf32>
    %73 = arith.mulf %64, %72 : vector<8x128xf32>
    %74 = arith.addf %71, %73 : vector<8x128xf32>
    %75 = arith.index_cast %44 : i32 to index
    %c0_24 = arith.constant 0 : index
    %76 = vector.load %arg11[%75, %c0_24] : memref<64x128xf32, #tpu.memory_space<vmem>>, vector<8x128xf32>
    tpu.vector_store %arg11[%75, %c0_24], %74 {strides = array<i32>} : memref<64x128xf32, #tpu.memory_space<vmem>>, vector<8x128xf32>,
    %c2_i32 = arith.constant 2 : i32
    %c8_i32_25 = arith.constant 8 : i32
    %77 = arith.muli %c2_i32, %c8_i32_25 : i32
    %78 = tpu.assume_multiple %77, 8 : i32
    %79 = arith.index_cast %78 : i32 to index
    %c0_26 = arith.constant 0 : index
    %80 = vector.load %arg10[%79, %c0_26] : memref<64x384xf32, #tpu.memory_space<vmem>>, vector<8x384xf32>
    %c0_27 = arith.constant 0 : index
    %c0_28 = arith.constant 0 : index
    %81 = vector.load %arg2[%c0_27, %c0_28] : memref<128x384xf32, #tpu.memory_space<vmem>>, vector<128x384xf32>
    %cst_29 = arith.constant dense<0.000000e+00> : vector<8x384xf32>
    %82 = tpu.matmul %74, %81, %cst_29 {dimension_numbers = #tpu.dot_dimension_numbers<[1], [0], [0], [1], [0, 0, 1, 1], [], []>} : vector<8x128xf32>, vector<128x384xf32>, vector<8x384xf32> -> vector<8x384xf32>
    %83 = vector.extract_strided_slice %80 {offsets = [0, 0], sizes = [8, 128], strides = [1, 1]} : vector<8x384xf32> to vector<8x128xf32>
    %84 = vector.extract_strided_slice %82 {offsets = [0, 0], sizes = [8, 128], strides = [1, 1]} : vector<8x384xf32> to vector<8x128xf32>
    %85 = arith.addf %83, %84 : vector<8x128xf32>
    %86 = arith.negf %85 : vector<8x128xf32>
    %87 = math.exp %86 : vector<8x128xf32>
    %cst_30 = arith.constant 1.000000e+00 : f32
    %88 = vector.broadcast %cst_30 : f32 to vector<8x128xf32>
    %89 = arith.addf %88, %87 : vector<8x128xf32>
    %90 = arith.divf %88, %89 : vector<8x128xf32>
    %91 = vector.extract_strided_slice %80 {offsets = [0, 128], sizes = [8, 128], strides = [1, 1]} : vector<8x384xf32> to vector<8x128xf32>
    %92 = vector.extract_strided_slice %82 {offsets = [0, 128], sizes = [8, 128], strides = [1, 1]} : vector<8x384xf32> to vector<8x128xf32>
    %93 = arith.addf %91, %92 : vector<8x128xf32>
    %94 = arith.negf %93 : vector<8x128xf32>
    %95 = math.exp %94 : vector<8x128xf32>
    %cst_31 = arith.constant 1.000000e+00 : f32
    %96 = vector.broadcast %cst_31 : f32 to vector<8x128xf32>
    %97 = arith.addf %96, %95 : vector<8x128xf32>
    %98 = arith.divf %96, %97 : vector<8x128xf32>
    %99 = vector.extract_strided_slice %80 {offsets = [0, 256], sizes = [8, 128], strides = [1, 1]} : vector<8x384xf32> to vector<8x128xf32>
    %100 = vector.extract_strided_slice %82 {offsets = [0, 256], sizes = [8, 128], strides = [1, 1]} : vector<8x384xf32> to vector<8x128xf32>
    %101 = vector.broadcast %7 : vector<1x128xf32> to vector<8x128xf32>
    %102 = arith.addf %100, %101 : vector<8x128xf32>
    %103 = arith.mulf %90, %102 : vector<8x128xf32>
    %104 = arith.addf %99, %103 : vector<8x128xf32>
    %105 = math.tanh %104 : vector<8x128xf32>
    %106 = arith.subf %74, %105 : vector<8x128xf32>
    %107 = arith.mulf %98, %106 : vector<8x128xf32>
    %108 = arith.addf %105, %107 : vector<8x128xf32>
    %109 = arith.index_cast %78 : i32 to index
    %c0_32 = arith.constant 0 : index
    %110 = vector.load %arg11[%109, %c0_32] : memref<64x128xf32, #tpu.memory_space<vmem>>, vector<8x128xf32>
    tpu.vector_store %arg11[%109, %c0_32], %108 {strides = array<i32>} : memref<64x128xf32, #tpu.memory_space<vmem>>, vector<8x128xf32>,
    %c3_i32 = arith.constant 3 : i32
    %c8_i32_33 = arith.constant 8 : i32
    %111 = arith.muli %c3_i32, %c8_i32_33 : i32
    %112 = tpu.assume_multiple %111, 8 : i32
    %113 = arith.index_cast %112 : i32 to index
    %c0_34 = arith.constant 0 : index
    %114 = vector.load %arg10[%113, %c0_34] : memref<64x384xf32, #tpu.memory_space<vmem>>, vector<8x384xf32>
    %c0_35 = arith.constant 0 : index
    %c0_36 = arith.constant 0 : index
    %115 = vector.load %arg2[%c0_35, %c0_36] : memref<128x384xf32, #tpu.memory_space<vmem>>, vector<128x384xf32>
    %cst_37 = arith.constant dense<0.000000e+00> : vector<8x384xf32>
    %116 = tpu.matmul %108, %115, %cst_37 {dimension_numbers = #tpu.dot_dimension_numbers<[1], [0], [0], [1], [0, 0, 1, 1], [], []>} : vector<8x128xf32>, vector<128x384xf32>, vector<8x384xf32> -> vector<8x384xf32>
    %117 = vector.extract_strided_slice %114 {offsets = [0, 0], sizes = [8, 128], strides = [1, 1]} : vector<8x384xf32> to vector<8x128xf32>
    %118 = vector.extract_strided_slice %116 {offsets = [0, 0], sizes = [8, 128], strides = [1, 1]} : vector<8x384xf32> to vector<8x128xf32>
    %119 = arith.addf %117, %118 : vector<8x128xf32>
    %120 = arith.negf %119 : vector<8x128xf32>
    %121 = math.exp %120 : vector<8x128xf32>
    %cst_38 = arith.constant 1.000000e+00 : f32
    %122 = vector.broadcast %cst_38 : f32 to vector<8x128xf32>
    %123 = arith.addf %122, %121 : vector<8x128xf32>
    %124 = arith.divf %122, %123 : vector<8x128xf32>
    %125 = vector.extract_strided_slice %114 {offsets = [0, 128], sizes = [8, 128], strides = [1, 1]} : vector<8x384xf32> to vector<8x128xf32>
    %126 = vector.extract_strided_slice %116 {offsets = [0, 128], sizes = [8, 128], strides = [1, 1]} : vector<8x384xf32> to vector<8x128xf32>
    %127 = arith.addf %125, %126 : vector<8x128xf32>
    %128 = arith.negf %127 : vector<8x128xf32>
    %129 = math.exp %128 : vector<8x128xf32>
    %cst_39 = arith.constant 1.000000e+00 : f32
    %130 = vector.broadcast %cst_39 : f32 to vector<8x128xf32>
    %131 = arith.addf %130, %129 : vector<8x128xf32>
    %132 = arith.divf %130, %131 : vector<8x128xf32>
    %133 = vector.extract_strided_slice %114 {offsets = [0, 256], sizes = [8, 128], strides = [1, 1]} : vector<8x384xf32> to vector<8x128xf32>
    %134 = vector.extract_strided_slice %116 {offsets = [0, 256], sizes = [8, 128], strides = [1, 1]} : vector<8x384xf32> to vector<8x128xf32>
    %135 = vector.broadcast %7 : vector<1x128xf32> to vector<8x128xf32>
    %136 = arith.addf %134, %135 : vector<8x128xf32>
    %137 = arith.mulf %124, %136 : vector<8x128xf32>
    %138 = arith.addf %133, %137 : vector<8x128xf32>
    %139 = math.tanh %138 : vector<8x128xf32>
    %140 = arith.subf %108, %139 : vector<8x128xf32>
    %141 = arith.mulf %132, %140 : vector<8x128xf32>
    %142 = arith.addf %139, %141 : vector<8x128xf32>
    %143 = arith.index_cast %112 : i32 to index
    %c0_40 = arith.constant 0 : index
    %144 = vector.load %arg11[%143, %c0_40] : memref<64x128xf32, #tpu.memory_space<vmem>>, vector<8x128xf32>
    tpu.vector_store %arg11[%143, %c0_40], %142 {strides = array<i32>} : memref<64x128xf32, #tpu.memory_space<vmem>>, vector<8x128xf32>,
    %c4_i32 = arith.constant 4 : i32
    %c8_i32_41 = arith.constant 8 : i32
    %145 = arith.muli %c4_i32, %c8_i32_41 : i32
    %146 = tpu.assume_multiple %145, 8 : i32
    %147 = arith.index_cast %146 : i32 to index
    %c0_42 = arith.constant 0 : index
    %148 = vector.load %arg10[%147, %c0_42] : memref<64x384xf32, #tpu.memory_space<vmem>>, vector<8x384xf32>
    %c0_43 = arith.constant 0 : index
    %c0_44 = arith.constant 0 : index
    %149 = vector.load %arg2[%c0_43, %c0_44] : memref<128x384xf32, #tpu.memory_space<vmem>>, vector<128x384xf32>
    %cst_45 = arith.constant dense<0.000000e+00> : vector<8x384xf32>
    %150 = tpu.matmul %142, %149, %cst_45 {dimension_numbers = #tpu.dot_dimension_numbers<[1], [0], [0], [1], [0, 0, 1, 1], [], []>} : vector<8x128xf32>, vector<128x384xf32>, vector<8x384xf32> -> vector<8x384xf32>
    %151 = vector.extract_strided_slice %148 {offsets = [0, 0], sizes = [8, 128], strides = [1, 1]} : vector<8x384xf32> to vector<8x128xf32>
    %152 = vector.extract_strided_slice %150 {offsets = [0, 0], sizes = [8, 128], strides = [1, 1]} : vector<8x384xf32> to vector<8x128xf32>
    %153 = arith.addf %151, %152 : vector<8x128xf32>
    %154 = arith.negf %153 : vector<8x128xf32>
    %155 = math.exp %154 : vector<8x128xf32>
    %cst_46 = arith.constant 1.000000e+00 : f32
    %156 = vector.broadcast %cst_46 : f32 to vector<8x128xf32>
    %157 = arith.addf %156, %155 : vector<8x128xf32>
    %158 = arith.divf %156, %157 : vector<8x128xf32>
    %159 = vector.extract_strided_slice %148 {offsets = [0, 128], sizes = [8, 128], strides = [1, 1]} : vector<8x384xf32> to vector<8x128xf32>
    %160 = vector.extract_strided_slice %150 {offsets = [0, 128], sizes = [8, 128], strides = [1, 1]} : vector<8x384xf32> to vector<8x128xf32>
    %161 = arith.addf %159, %160 : vector<8x128xf32>
    %162 = arith.negf %161 : vector<8x128xf32>
    %163 = math.exp %162 : vector<8x128xf32>
    %cst_47 = arith.constant 1.000000e+00 : f32
    %164 = vector.broadcast %cst_47 : f32 to vector<8x128xf32>
    %165 = arith.addf %164, %163 : vector<8x128xf32>
    %166 = arith.divf %164, %165 : vector<8x128xf32>
    %167 = vector.extract_strided_slice %148 {offsets = [0, 256], sizes = [8, 128], strides = [1, 1]} : vector<8x384xf32> to vector<8x128xf32>
    %168 = vector.extract_strided_slice %150 {offsets = [0, 256], sizes = [8, 128], strides = [1, 1]} : vector<8x384xf32> to vector<8x128xf32>
    %169 = vector.broadcast %7 : vector<1x128xf32> to vector<8x128xf32>
    %170 = arith.addf %168, %169 : vector<8x128xf32>
    %171 = arith.mulf %158, %170 : vector<8x128xf32>
    %172 = arith.addf %167, %171 : vector<8x128xf32>
    %173 = math.tanh %172 : vector<8x128xf32>
    %174 = arith.subf %142, %173 : vector<8x128xf32>
    %175 = arith.mulf %166, %174 : vector<8x128xf32>
    %176 = arith.addf %173, %175 : vector<8x128xf32>
    %177 = arith.index_cast %146 : i32 to index
    %c0_48 = arith.constant 0 : index
    %178 = vector.load %arg11[%177, %c0_48] : memref<64x128xf32, #tpu.memory_space<vmem>>, vector<8x128xf32>
    tpu.vector_store %arg11[%177, %c0_48], %176 {strides = array<i32>} : memref<64x128xf32, #tpu.memory_space<vmem>>, vector<8x128xf32>,
    %c5_i32 = arith.constant 5 : i32
    %c8_i32_49 = arith.constant 8 : i32
    %179 = arith.muli %c5_i32, %c8_i32_49 : i32
    %180 = tpu.assume_multiple %179, 8 : i32
    %181 = arith.index_cast %180 : i32 to index
    %c0_50 = arith.constant 0 : index
    %182 = vector.load %arg10[%181, %c0_50] : memref<64x384xf32, #tpu.memory_space<vmem>>, vector<8x384xf32>
    %c0_51 = arith.constant 0 : index
    %c0_52 = arith.constant 0 : index
    %183 = vector.load %arg2[%c0_51, %c0_52] : memref<128x384xf32, #tpu.memory_space<vmem>>, vector<128x384xf32>
    %cst_53 = arith.constant dense<0.000000e+00> : vector<8x384xf32>
    %184 = tpu.matmul %176, %183, %cst_53 {dimension_numbers = #tpu.dot_dimension_numbers<[1], [0], [0], [1], [0, 0, 1, 1], [], []>} : vector<8x128xf32>, vector<128x384xf32>, vector<8x384xf32> -> vector<8x384xf32>
    %185 = vector.extract_strided_slice %182 {offsets = [0, 0], sizes = [8, 128], strides = [1, 1]} : vector<8x384xf32> to vector<8x128xf32>
    %186 = vector.extract_strided_slice %184 {offsets = [0, 0], sizes = [8, 128], strides = [1, 1]} : vector<8x384xf32> to vector<8x128xf32>
    %187 = arith.addf %185, %186 : vector<8x128xf32>
    %188 = arith.negf %187 : vector<8x128xf32>
    %189 = math.exp %188 : vector<8x128xf32>
    %cst_54 = arith.constant 1.000000e+00 : f32
    %190 = vector.broadcast %cst_54 : f32 to vector<8x128xf32>
    %191 = arith.addf %190, %189 : vector<8x128xf32>
    %192 = arith.divf %190, %191 : vector<8x128xf32>
    %193 = vector.extract_strided_slice %182 {offsets = [0, 128], sizes = [8, 128], strides = [1, 1]} : vector<8x384xf32> to vector<8x128xf32>
    %194 = vector.extract_strided_slice %184 {offsets = [0, 128], sizes = [8, 128], strides = [1, 1]} : vector<8x384xf32> to vector<8x128xf32>
    %195 = arith.addf %193, %194 : vector<8x128xf32>
    %196 = arith.negf %195 : vector<8x128xf32>
    %197 = math.exp %196 : vector<8x128xf32>
    %cst_55 = arith.constant 1.000000e+00 : f32
    %198 = vector.broadcast %cst_55 : f32 to vector<8x128xf32>
    %199 = arith.addf %198, %197 : vector<8x128xf32>
    %200 = arith.divf %198, %199 : vector<8x128xf32>
    %201 = vector.extract_strided_slice %182 {offsets = [0, 256], sizes = [8, 128], strides = [1, 1]} : vector<8x384xf32> to vector<8x128xf32>
    %202 = vector.extract_strided_slice %184 {offsets = [0, 256], sizes = [8, 128], strides = [1, 1]} : vector<8x384xf32> to vector<8x128xf32>
    %203 = vector.broadcast %7 : vector<1x128xf32> to vector<8x128xf32>
    %204 = arith.addf %202, %203 : vector<8x128xf32>
    %205 = arith.mulf %192, %204 : vector<8x128xf32>
    %206 = arith.addf %201, %205 : vector<8x128xf32>
    %207 = math.tanh %206 : vector<8x128xf32>
    %208 = arith.subf %176, %207 : vector<8x128xf32>
    %209 = arith.mulf %200, %208 : vector<8x128xf32>
    %210 = arith.addf %207, %209 : vector<8x128xf32>
    %211 = arith.index_cast %180 : i32 to index
    %c0_56 = arith.constant 0 : index
    %212 = vector.load %arg11[%211, %c0_56] : memref<64x128xf32, #tpu.memory_space<vmem>>, vector<8x128xf32>
    tpu.vector_store %arg11[%211, %c0_56], %210 {strides = array<i32>} : memref<64x128xf32, #tpu.memory_space<vmem>>, vector<8x128xf32>,
    %c6_i32 = arith.constant 6 : i32
    %c8_i32_57 = arith.constant 8 : i32
    %213 = arith.muli %c6_i32, %c8_i32_57 : i32
    %214 = tpu.assume_multiple %213, 8 : i32
    %215 = arith.index_cast %214 : i32 to index
    %c0_58 = arith.constant 0 : index
    %216 = vector.load %arg10[%215, %c0_58] : memref<64x384xf32, #tpu.memory_space<vmem>>, vector<8x384xf32>
    %c0_59 = arith.constant 0 : index
    %c0_60 = arith.constant 0 : index
    %217 = vector.load %arg2[%c0_59, %c0_60] : memref<128x384xf32, #tpu.memory_space<vmem>>, vector<128x384xf32>
    %cst_61 = arith.constant dense<0.000000e+00> : vector<8x384xf32>
    %218 = tpu.matmul %210, %217, %cst_61 {dimension_numbers = #tpu.dot_dimension_numbers<[1], [0], [0], [1], [0, 0, 1, 1], [], []>} : vector<8x128xf32>, vector<128x384xf32>, vector<8x384xf32> -> vector<8x384xf32>
    %219 = vector.extract_strided_slice %216 {offsets = [0, 0], sizes = [8, 128], strides = [1, 1]} : vector<8x384xf32> to vector<8x128xf32>
    %220 = vector.extract_strided_slice %218 {offsets = [0, 0], sizes = [8, 128], strides = [1, 1]} : vector<8x384xf32> to vector<8x128xf32>
    %221 = arith.addf %219, %220 : vector<8x128xf32>
    %222 = arith.negf %221 : vector<8x128xf32>
    %223 = math.exp %222 : vector<8x128xf32>
    %cst_62 = arith.constant 1.000000e+00 : f32
    %224 = vector.broadcast %cst_62 : f32 to vector<8x128xf32>
    %225 = arith.addf %224, %223 : vector<8x128xf32>
    %226 = arith.divf %224, %225 : vector<8x128xf32>
    %227 = vector.extract_strided_slice %216 {offsets = [0, 128], sizes = [8, 128], strides = [1, 1]} : vector<8x384xf32> to vector<8x128xf32>
    %228 = vector.extract_strided_slice %218 {offsets = [0, 128], sizes = [8, 128], strides = [1, 1]} : vector<8x384xf32> to vector<8x128xf32>
    %229 = arith.addf %227, %228 : vector<8x128xf32>
    %230 = arith.negf %229 : vector<8x128xf32>
    %231 = math.exp %230 : vector<8x128xf32>
    %cst_63 = arith.constant 1.000000e+00 : f32
    %232 = vector.broadcast %cst_63 : f32 to vector<8x128xf32>
    %233 = arith.addf %232, %231 : vector<8x128xf32>
    %234 = arith.divf %232, %233 : vector<8x128xf32>
    %235 = vector.extract_strided_slice %216 {offsets = [0, 256], sizes = [8, 128], strides = [1, 1]} : vector<8x384xf32> to vector<8x128xf32>
    %236 = vector.extract_strided_slice %218 {offsets = [0, 256], sizes = [8, 128], strides = [1, 1]} : vector<8x384xf32> to vector<8x128xf32>
    %237 = vector.broadcast %7 : vector<1x128xf32> to vector<8x128xf32>
    %238 = arith.addf %236, %237 : vector<8x128xf32>
    %239 = arith.mulf %226, %238 : vector<8x128xf32>
    %240 = arith.addf %235, %239 : vector<8x128xf32>
    %241 = math.tanh %240 : vector<8x128xf32>
    %242 = arith.subf %210, %241 : vector<8x128xf32>
    %243 = arith.mulf %234, %242 : vector<8x128xf32>
    %244 = arith.addf %241, %243 : vector<8x128xf32>
    %245 = arith.index_cast %214 : i32 to index
    %c0_64 = arith.constant 0 : index
    %246 = vector.load %arg11[%245, %c0_64] : memref<64x128xf32, #tpu.memory_space<vmem>>, vector<8x128xf32>
    tpu.vector_store %arg11[%245, %c0_64], %244 {strides = array<i32>} : memref<64x128xf32, #tpu.memory_space<vmem>>, vector<8x128xf32>,
    %c7_i32 = arith.constant 7 : i32
    %c8_i32_65 = arith.constant 8 : i32
    %247 = arith.muli %c7_i32, %c8_i32_65 : i32
    %248 = tpu.assume_multiple %247, 8 : i32
    %249 = arith.index_cast %248 : i32 to index
    %c0_66 = arith.constant 0 : index
    %250 = vector.load %arg10[%249, %c0_66] : memref<64x384xf32, #tpu.memory_space<vmem>>, vector<8x384xf32>
    %c0_67 = arith.constant 0 : index
    %c0_68 = arith.constant 0 : index
    %251 = vector.load %arg2[%c0_67, %c0_68] : memref<128x384xf32, #tpu.memory_space<vmem>>, vector<128x384xf32>
    %cst_69 = arith.constant dense<0.000000e+00> : vector<8x384xf32>
    %252 = tpu.matmul %244, %251, %cst_69 {dimension_numbers = #tpu.dot_dimension_numbers<[1], [0], [0], [1], [0, 0, 1, 1], [], []>} : vector<8x128xf32>, vector<128x384xf32>, vector<8x384xf32> -> vector<8x384xf32>
    %253 = vector.extract_strided_slice %250 {offsets = [0, 0], sizes = [8, 128], strides = [1, 1]} : vector<8x384xf32> to vector<8x128xf32>
    %254 = vector.extract_strided_slice %252 {offsets = [0, 0], sizes = [8, 128], strides = [1, 1]} : vector<8x384xf32> to vector<8x128xf32>
    %255 = arith.addf %253, %254 : vector<8x128xf32>
    %256 = arith.negf %255 : vector<8x128xf32>
    %257 = math.exp %256 : vector<8x128xf32>
    %cst_70 = arith.constant 1.000000e+00 : f32
    %258 = vector.broadcast %cst_70 : f32 to vector<8x128xf32>
    %259 = arith.addf %258, %257 : vector<8x128xf32>
    %260 = arith.divf %258, %259 : vector<8x128xf32>
    %261 = vector.extract_strided_slice %250 {offsets = [0, 128], sizes = [8, 128], strides = [1, 1]} : vector<8x384xf32> to vector<8x128xf32>
    %262 = vector.extract_strided_slice %252 {offsets = [0, 128], sizes = [8, 128], strides = [1, 1]} : vector<8x384xf32> to vector<8x128xf32>
    %263 = arith.addf %261, %262 : vector<8x128xf32>
    %264 = arith.negf %263 : vector<8x128xf32>
    %265 = math.exp %264 : vector<8x128xf32>
    %cst_71 = arith.constant 1.000000e+00 : f32
    %266 = vector.broadcast %cst_71 : f32 to vector<8x128xf32>
    %267 = arith.addf %266, %265 : vector<8x128xf32>
    %268 = arith.divf %266, %267 : vector<8x128xf32>
    %269 = vector.extract_strided_slice %250 {offsets = [0, 256], sizes = [8, 128], strides = [1, 1]} : vector<8x384xf32> to vector<8x128xf32>
    %270 = vector.extract_strided_slice %252 {offsets = [0, 256], sizes = [8, 128], strides = [1, 1]} : vector<8x384xf32> to vector<8x128xf32>
    %271 = vector.broadcast %7 : vector<1x128xf32> to vector<8x128xf32>
    %272 = arith.addf %270, %271 : vector<8x128xf32>
    %273 = arith.mulf %260, %272 : vector<8x128xf32>
    %274 = arith.addf %269, %273 : vector<8x128xf32>
    %275 = math.tanh %274 : vector<8x128xf32>
    %276 = arith.subf %244, %275 : vector<8x128xf32>
    %277 = arith.mulf %268, %276 : vector<8x128xf32>
    %278 = arith.addf %275, %277 : vector<8x128xf32>
    %279 = arith.index_cast %248 : i32 to index
    %c0_72 = arith.constant 0 : index
    %280 = vector.load %arg11[%279, %c0_72] : memref<64x128xf32, #tpu.memory_space<vmem>>, vector<8x128xf32>
    tpu.vector_store %arg11[%279, %c0_72], %278 {strides = array<i32>} : memref<64x128xf32, #tpu.memory_space<vmem>>, vector<8x128xf32>,
    %c8_i32_73 = arith.constant 8 : i32
    %c0_74 = arith.constant 0 : index
    %c0_75 = arith.constant 0 : index
    %281 = vector.load %arg11[%c0_74, %c0_75] : memref<64x128xf32, #tpu.memory_space<vmem>>, vector<64x128xf32>
    %c0_76 = arith.constant 0 : index
    %c0_77 = arith.constant 0 : index
    %282 = vector.load %arg5[%c0_76, %c0_77] : memref<128x384xf32, #tpu.memory_space<vmem>>, vector<128x384xf32>
    %cst_78 = arith.constant dense<0.000000e+00> : vector<64x384xf32>
    %283 = tpu.matmul %281, %282, %cst_78 {dimension_numbers = #tpu.dot_dimension_numbers<[1], [0], [0], [1], [0, 0, 1, 1], [], []>} : vector<64x128xf32>, vector<128x384xf32>, vector<64x384xf32> -> vector<64x384xf32>
    %c0_79 = arith.constant 0 : index
    %c0_80 = arith.constant 0 : index
    %284 = vector.load %arg7[%c0_79, %c0_80] : memref<1x384xf32, #tpu.memory_space<vmem>>, vector<1x384xf32>
    %285 = vector.broadcast %284 : vector<1x384xf32> to vector<64x384xf32>
    %286 = arith.addf %283, %285 : vector<64x384xf32>
    %c0_81 = arith.constant 0 : index
    %c0_82 = arith.constant 0 : index
    %287 = vector.load %arg10[%c0_81, %c0_82] : memref<64x384xf32, #tpu.memory_space<vmem>>, vector<64x384xf32>
    tpu.vector_store %arg10[%c0_81, %c0_82], %286 {strides = array<i32>} : memref<64x384xf32, #tpu.memory_space<vmem>>, vector<64x384xf32>,
    %c0_83 = arith.constant 0 : index
    %c0_84 = arith.constant 0 : index
    %288 = vector.load %arg8[%c0_83, %c0_84] : memref<1x128xf32, #tpu.memory_space<vmem>>, vector<1x128xf32>
    %cst_85 = arith.constant 0.000000e+00 : f32
    %289 = vector.broadcast %cst_85 : f32 to vector<8x128xf32>
    %c0_i32_86 = arith.constant 0 : i32
    %c8_i32_87 = arith.constant 8 : i32
    %290 = arith.muli %c0_i32_86, %c8_i32_87 : i32
    %291 = tpu.assume_multiple %290, 8 : i32
    %292 = arith.index_cast %291 : i32 to index
    %c0_88 = arith.constant 0 : index
    %293 = vector.load %arg10[%292, %c0_88] : memref<64x384xf32, #tpu.memory_space<vmem>>, vector<8x384xf32>
    %c0_89 = arith.constant 0 : index
    %c0_90 = arith.constant 0 : index
    %294 = vector.load %arg6[%c0_89, %c0_90] : memref<128x384xf32, #tpu.memory_space<vmem>>, vector<128x384xf32>
    %cst_91 = arith.constant dense<0.000000e+00> : vector<8x384xf32>
    %295 = tpu.matmul %289, %294, %cst_91 {dimension_numbers = #tpu.dot_dimension_numbers<[1], [0], [0], [1], [0, 0, 1, 1], [], []>} : vector<8x128xf32>, vector<128x384xf32>, vector<8x384xf32> -> vector<8x384xf32>
    %296 = vector.extract_strided_slice %293 {offsets = [0, 0], sizes = [8, 128], strides = [1, 1]} : vector<8x384xf32> to vector<8x128xf32>
    %297 = vector.extract_strided_slice %295 {offsets = [0, 0], sizes = [8, 128], strides = [1, 1]} : vector<8x384xf32> to vector<8x128xf32>
    %298 = arith.addf %296, %297 : vector<8x128xf32>
    %299 = arith.negf %298 : vector<8x128xf32>
    %300 = math.exp %299 : vector<8x128xf32>
    %cst_92 = arith.constant 1.000000e+00 : f32
    %301 = vector.broadcast %cst_92 : f32 to vector<8x128xf32>
    %302 = arith.addf %301, %300 : vector<8x128xf32>
    %303 = arith.divf %301, %302 : vector<8x128xf32>
    %304 = vector.extract_strided_slice %293 {offsets = [0, 128], sizes = [8, 128], strides = [1, 1]} : vector<8x384xf32> to vector<8x128xf32>
    %305 = vector.extract_strided_slice %295 {offsets = [0, 128], sizes = [8, 128], strides = [1, 1]} : vector<8x384xf32> to vector<8x128xf32>
    %306 = arith.addf %304, %305 : vector<8x128xf32>
    %307 = arith.negf %306 : vector<8x128xf32>
    %308 = math.exp %307 : vector<8x128xf32>
    %cst_93 = arith.constant 1.000000e+00 : f32
    %309 = vector.broadcast %cst_93 : f32 to vector<8x128xf32>
    %310 = arith.addf %309, %308 : vector<8x128xf32>
    %311 = arith.divf %309, %310 : vector<8x128xf32>
    %312 = vector.extract_strided_slice %293 {offsets = [0, 256], sizes = [8, 128], strides = [1, 1]} : vector<8x384xf32> to vector<8x128xf32>
    %313 = vector.extract_strided_slice %295 {offsets = [0, 256], sizes = [8, 128], strides = [1, 1]} : vector<8x384xf32> to vector<8x128xf32>
    %314 = vector.broadcast %288 : vector<1x128xf32> to vector<8x128xf32>
    %315 = arith.addf %313, %314 : vector<8x128xf32>
    %316 = arith.mulf %303, %315 : vector<8x128xf32>
    %317 = arith.addf %312, %316 : vector<8x128xf32>
    %318 = math.tanh %317 : vector<8x128xf32>
    %319 = arith.subf %289, %318 : vector<8x128xf32>
    %320 = arith.mulf %311, %319 : vector<8x128xf32>
    %321 = arith.addf %318, %320 : vector<8x128xf32>
    %322 = arith.index_cast %291 : i32 to index
    %c0_94 = arith.constant 0 : index
    %323 = vector.load %arg9[%322, %c0_94] : memref<64x128xf32, #tpu.memory_space<vmem>>, vector<8x128xf32>
    tpu.vector_store %arg9[%322, %c0_94], %321 {strides = array<i32>} : memref<64x128xf32, #tpu.memory_space<vmem>>, vector<8x128xf32>,
    %c1_i32_95 = arith.constant 1 : i32
    %c8_i32_96 = arith.constant 8 : i32
    %324 = arith.muli %c1_i32_95, %c8_i32_96 : i32
    %325 = tpu.assume_multiple %324, 8 : i32
    %326 = arith.index_cast %325 : i32 to index
    %c0_97 = arith.constant 0 : index
    %327 = vector.load %arg10[%326, %c0_97] : memref<64x384xf32, #tpu.memory_space<vmem>>, vector<8x384xf32>
    %c0_98 = arith.constant 0 : index
    %c0_99 = arith.constant 0 : index
    %328 = vector.load %arg6[%c0_98, %c0_99] : memref<128x384xf32, #tpu.memory_space<vmem>>, vector<128x384xf32>
    %cst_100 = arith.constant dense<0.000000e+00> : vector<8x384xf32>
    %329 = tpu.matmul %321, %328, %cst_100 {dimension_numbers = #tpu.dot_dimension_numbers<[1], [0], [0], [1], [0, 0, 1, 1], [], []>} : vector<8x128xf32>, vector<128x384xf32>, vector<8x384xf32> -> vector<8x384xf32>
    %330 = vector.extract_strided_slice %327 {offsets = [0, 0], sizes = [8, 128], strides = [1, 1]} : vector<8x384xf32> to vector<8x128xf32>
    %331 = vector.extract_strided_slice %329 {offsets = [0, 0], sizes = [8, 128], strides = [1, 1]} : vector<8x384xf32> to vector<8x128xf32>
    %332 = arith.addf %330, %331 : vector<8x128xf32>
    %333 = arith.negf %332 : vector<8x128xf32>
    %334 = math.exp %333 : vector<8x128xf32>
    %cst_101 = arith.constant 1.000000e+00 : f32
    %335 = vector.broadcast %cst_101 : f32 to vector<8x128xf32>
    %336 = arith.addf %335, %334 : vector<8x128xf32>
    %337 = arith.divf %335, %336 : vector<8x128xf32>
    %338 = vector.extract_strided_slice %327 {offsets = [0, 128], sizes = [8, 128], strides = [1, 1]} : vector<8x384xf32> to vector<8x128xf32>
    %339 = vector.extract_strided_slice %329 {offsets = [0, 128], sizes = [8, 128], strides = [1, 1]} : vector<8x384xf32> to vector<8x128xf32>
    %340 = arith.addf %338, %339 : vector<8x128xf32>
    %341 = arith.negf %340 : vector<8x128xf32>
    %342 = math.exp %341 : vector<8x128xf32>
    %cst_102 = arith.constant 1.000000e+00 : f32
    %343 = vector.broadcast %cst_102 : f32 to vector<8x128xf32>
    %344 = arith.addf %343, %342 : vector<8x128xf32>
    %345 = arith.divf %343, %344 : vector<8x128xf32>
    %346 = vector.extract_strided_slice %327 {offsets = [0, 256], sizes = [8, 128], strides = [1, 1]} : vector<8x384xf32> to vector<8x128xf32>
    %347 = vector.extract_strided_slice %329 {offsets = [0, 256], sizes = [8, 128], strides = [1, 1]} : vector<8x384xf32> to vector<8x128xf32>
    %348 = vector.broadcast %288 : vector<1x128xf32> to vector<8x128xf32>
    %349 = arith.addf %347, %348 : vector<8x128xf32>
    %350 = arith.mulf %337, %349 : vector<8x128xf32>
    %351 = arith.addf %346, %350 : vector<8x128xf32>
    %352 = math.tanh %351 : vector<8x128xf32>
    %353 = arith.subf %321, %352 : vector<8x128xf32>
    %354 = arith.mulf %345, %353 : vector<8x128xf32>
    %355 = arith.addf %352, %354 : vector<8x128xf32>
    %356 = arith.index_cast %325 : i32 to index
    %c0_103 = arith.constant 0 : index
    %357 = vector.load %arg9[%356, %c0_103] : memref<64x128xf32, #tpu.memory_space<vmem>>, vector<8x128xf32>
    tpu.vector_store %arg9[%356, %c0_103], %355 {strides = array<i32>} : memref<64x128xf32, #tpu.memory_space<vmem>>, vector<8x128xf32>,
    %c2_i32_104 = arith.constant 2 : i32
    %c8_i32_105 = arith.constant 8 : i32
    %358 = arith.muli %c2_i32_104, %c8_i32_105 : i32
    %359 = tpu.assume_multiple %358, 8 : i32
    %360 = arith.index_cast %359 : i32 to index
    %c0_106 = arith.constant 0 : index
    %361 = vector.load %arg10[%360, %c0_106] : memref<64x384xf32, #tpu.memory_space<vmem>>, vector<8x384xf32>
    %c0_107 = arith.constant 0 : index
    %c0_108 = arith.constant 0 : index
    %362 = vector.load %arg6[%c0_107, %c0_108] : memref<128x384xf32, #tpu.memory_space<vmem>>, vector<128x384xf32>
    %cst_109 = arith.constant dense<0.000000e+00> : vector<8x384xf32>
    %363 = tpu.matmul %355, %362, %cst_109 {dimension_numbers = #tpu.dot_dimension_numbers<[1], [0], [0], [1], [0, 0, 1, 1], [], []>} : vector<8x128xf32>, vector<128x384xf32>, vector<8x384xf32> -> vector<8x384xf32>
    %364 = vector.extract_strided_slice %361 {offsets = [0, 0], sizes = [8, 128], strides = [1, 1]} : vector<8x384xf32> to vector<8x128xf32>
    %365 = vector.extract_strided_slice %363 {offsets = [0, 0], sizes = [8, 128], strides = [1, 1]} : vector<8x384xf32> to vector<8x128xf32>
    %366 = arith.addf %364, %365 : vector<8x128xf32>
    %367 = arith.negf %366 : vector<8x128xf32>
    %368 = math.exp %367 : vector<8x128xf32>
    %cst_110 = arith.constant 1.000000e+00 : f32
    %369 = vector.broadcast %cst_110 : f32 to vector<8x128xf32>
    %370 = arith.addf %369, %368 : vector<8x128xf32>
    %371 = arith.divf %369, %370 : vector<8x128xf32>
    %372 = vector.extract_strided_slice %361 {offsets = [0, 128], sizes = [8, 128], strides = [1, 1]} : vector<8x384xf32> to vector<8x128xf32>
    %373 = vector.extract_strided_slice %363 {offsets = [0, 128], sizes = [8, 128], strides = [1, 1]} : vector<8x384xf32> to vector<8x128xf32>
    %374 = arith.addf %372, %373 : vector<8x128xf32>
    %375 = arith.negf %374 : vector<8x128xf32>
    %376 = math.exp %375 : vector<8x128xf32>
    %cst_111 = arith.constant 1.000000e+00 : f32
    %377 = vector.broadcast %cst_111 : f32 to vector<8x128xf32>
    %378 = arith.addf %377, %376 : vector<8x128xf32>
    %379 = arith.divf %377, %378 : vector<8x128xf32>
    %380 = vector.extract_strided_slice %361 {offsets = [0, 256], sizes = [8, 128], strides = [1, 1]} : vector<8x384xf32> to vector<8x128xf32>
    %381 = vector.extract_strided_slice %363 {offsets = [0, 256], sizes = [8, 128], strides = [1, 1]} : vector<8x384xf32> to vector<8x128xf32>
    %382 = vector.broadcast %288 : vector<1x128xf32> to vector<8x128xf32>
    %383 = arith.addf %381, %382 : vector<8x128xf32>
    %384 = arith.mulf %371, %383 : vector<8x128xf32>
    %385 = arith.addf %380, %384 : vector<8x128xf32>
    %386 = math.tanh %385 : vector<8x128xf32>
    %387 = arith.subf %355, %386 : vector<8x128xf32>
    %388 = arith.mulf %379, %387 : vector<8x128xf32>
    %389 = arith.addf %386, %388 : vector<8x128xf32>
    %390 = arith.index_cast %359 : i32 to index
    %c0_112 = arith.constant 0 : index
    %391 = vector.load %arg9[%390, %c0_112] : memref<64x128xf32, #tpu.memory_space<vmem>>, vector<8x128xf32>
    tpu.vector_store %arg9[%390, %c0_112], %389 {strides = array<i32>} : memref<64x128xf32, #tpu.memory_space<vmem>>, vector<8x128xf32>,
    %c3_i32_113 = arith.constant 3 : i32
    %c8_i32_114 = arith.constant 8 : i32
    %392 = arith.muli %c3_i32_113, %c8_i32_114 : i32
    %393 = tpu.assume_multiple %392, 8 : i32
    %394 = arith.index_cast %393 : i32 to index
    %c0_115 = arith.constant 0 : index
    %395 = vector.load %arg10[%394, %c0_115] : memref<64x384xf32, #tpu.memory_space<vmem>>, vector<8x384xf32>
    %c0_116 = arith.constant 0 : index
    %c0_117 = arith.constant 0 : index
    %396 = vector.load %arg6[%c0_116, %c0_117] : memref<128x384xf32, #tpu.memory_space<vmem>>, vector<128x384xf32>
    %cst_118 = arith.constant dense<0.000000e+00> : vector<8x384xf32>
    %397 = tpu.matmul %389, %396, %cst_118 {dimension_numbers = #tpu.dot_dimension_numbers<[1], [0], [0], [1], [0, 0, 1, 1], [], []>} : vector<8x128xf32>, vector<128x384xf32>, vector<8x384xf32> -> vector<8x384xf32>
    %398 = vector.extract_strided_slice %395 {offsets = [0, 0], sizes = [8, 128], strides = [1, 1]} : vector<8x384xf32> to vector<8x128xf32>
    %399 = vector.extract_strided_slice %397 {offsets = [0, 0], sizes = [8, 128], strides = [1, 1]} : vector<8x384xf32> to vector<8x128xf32>
    %400 = arith.addf %398, %399 : vector<8x128xf32>
    %401 = arith.negf %400 : vector<8x128xf32>
    %402 = math.exp %401 : vector<8x128xf32>
    %cst_119 = arith.constant 1.000000e+00 : f32
    %403 = vector.broadcast %cst_119 : f32 to vector<8x128xf32>
    %404 = arith.addf %403, %402 : vector<8x128xf32>
    %405 = arith.divf %403, %404 : vector<8x128xf32>
    %406 = vector.extract_strided_slice %395 {offsets = [0, 128], sizes = [8, 128], strides = [1, 1]} : vector<8x384xf32> to vector<8x128xf32>
    %407 = vector.extract_strided_slice %397 {offsets = [0, 128], sizes = [8, 128], strides = [1, 1]} : vector<8x384xf32> to vector<8x128xf32>
    %408 = arith.addf %406, %407 : vector<8x128xf32>
    %409 = arith.negf %408 : vector<8x128xf32>
    %410 = math.exp %409 : vector<8x128xf32>
    %cst_120 = arith.constant 1.000000e+00 : f32
    %411 = vector.broadcast %cst_120 : f32 to vector<8x128xf32>
    %412 = arith.addf %411, %410 : vector<8x128xf32>
    %413 = arith.divf %411, %412 : vector<8x128xf32>
    %414 = vector.extract_strided_slice %395 {offsets = [0, 256], sizes = [8, 128], strides = [1, 1]} : vector<8x384xf32> to vector<8x128xf32>
    %415 = vector.extract_strided_slice %397 {offsets = [0, 256], sizes = [8, 128], strides = [1, 1]} : vector<8x384xf32> to vector<8x128xf32>
    %416 = vector.broadcast %288 : vector<1x128xf32> to vector<8x128xf32>
    %417 = arith.addf %415, %416 : vector<8x128xf32>
    %418 = arith.mulf %405, %417 : vector<8x128xf32>
    %419 = arith.addf %414, %418 : vector<8x128xf32>
    %420 = math.tanh %419 : vector<8x128xf32>
    %421 = arith.subf %389, %420 : vector<8x128xf32>
    %422 = arith.mulf %413, %421 : vector<8x128xf32>
    %423 = arith.addf %420, %422 : vector<8x128xf32>
    %424 = arith.index_cast %393 : i32 to index
    %c0_121 = arith.constant 0 : index
    %425 = vector.load %arg9[%424, %c0_121] : memref<64x128xf32, #tpu.memory_space<vmem>>, vector<8x128xf32>
    tpu.vector_store %arg9[%424, %c0_121], %423 {strides = array<i32>} : memref<64x128xf32, #tpu.memory_space<vmem>>, vector<8x128xf32>,
    %c4_i32_122 = arith.constant 4 : i32
    %c8_i32_123 = arith.constant 8 : i32
    %426 = arith.muli %c4_i32_122, %c8_i32_123 : i32
    %427 = tpu.assume_multiple %426, 8 : i32
    %428 = arith.index_cast %427 : i32 to index
    %c0_124 = arith.constant 0 : index
    %429 = vector.load %arg10[%428, %c0_124] : memref<64x384xf32, #tpu.memory_space<vmem>>, vector<8x384xf32>
    %c0_125 = arith.constant 0 : index
    %c0_126 = arith.constant 0 : index
    %430 = vector.load %arg6[%c0_125, %c0_126] : memref<128x384xf32, #tpu.memory_space<vmem>>, vector<128x384xf32>
    %cst_127 = arith.constant dense<0.000000e+00> : vector<8x384xf32>
    %431 = tpu.matmul %423, %430, %cst_127 {dimension_numbers = #tpu.dot_dimension_numbers<[1], [0], [0], [1], [0, 0, 1, 1], [], []>} : vector<8x128xf32>, vector<128x384xf32>, vector<8x384xf32> -> vector<8x384xf32>
    %432 = vector.extract_strided_slice %429 {offsets = [0, 0], sizes = [8, 128], strides = [1, 1]} : vector<8x384xf32> to vector<8x128xf32>
    %433 = vector.extract_strided_slice %431 {offsets = [0, 0], sizes = [8, 128], strides = [1, 1]} : vector<8x384xf32> to vector<8x128xf32>
    %434 = arith.addf %432, %433 : vector<8x128xf32>
    %435 = arith.negf %434 : vector<8x128xf32>
    %436 = math.exp %435 : vector<8x128xf32>
    %cst_128 = arith.constant 1.000000e+00 : f32
    %437 = vector.broadcast %cst_128 : f32 to vector<8x128xf32>
    %438 = arith.addf %437, %436 : vector<8x128xf32>
    %439 = arith.divf %437, %438 : vector<8x128xf32>
    %440 = vector.extract_strided_slice %429 {offsets = [0, 128], sizes = [8, 128], strides = [1, 1]} : vector<8x384xf32> to vector<8x128xf32>
    %441 = vector.extract_strided_slice %431 {offsets = [0, 128], sizes = [8, 128], strides = [1, 1]} : vector<8x384xf32> to vector<8x128xf32>
    %442 = arith.addf %440, %441 : vector<8x128xf32>
    %443 = arith.negf %442 : vector<8x128xf32>
    %444 = math.exp %443 : vector<8x128xf32>
    %cst_129 = arith.constant 1.000000e+00 : f32
    %445 = vector.broadcast %cst_129 : f32 to vector<8x128xf32>
    %446 = arith.addf %445, %444 : vector<8x128xf32>
    %447 = arith.divf %445, %446 : vector<8x128xf32>
    %448 = vector.extract_strided_slice %429 {offsets = [0, 256], sizes = [8, 128], strides = [1, 1]} : vector<8x384xf32> to vector<8x128xf32>
    %449 = vector.extract_strided_slice %431 {offsets = [0, 256], sizes = [8, 128], strides = [1, 1]} : vector<8x384xf32> to vector<8x128xf32>
    %450 = vector.broadcast %288 : vector<1x128xf32> to vector<8x128xf32>
    %451 = arith.addf %449, %450 : vector<8x128xf32>
    %452 = arith.mulf %439, %451 : vector<8x128xf32>
    %453 = arith.addf %448, %452 : vector<8x128xf32>
    %454 = math.tanh %453 : vector<8x128xf32>
    %455 = arith.subf %423, %454 : vector<8x128xf32>
    %456 = arith.mulf %447, %455 : vector<8x128xf32>
    %457 = arith.addf %454, %456 : vector<8x128xf32>
    %458 = arith.index_cast %427 : i32 to index
    %c0_130 = arith.constant 0 : index
    %459 = vector.load %arg9[%458, %c0_130] : memref<64x128xf32, #tpu.memory_space<vmem>>, vector<8x128xf32>
    tpu.vector_store %arg9[%458, %c0_130], %457 {strides = array<i32>} : memref<64x128xf32, #tpu.memory_space<vmem>>, vector<8x128xf32>,
    %c5_i32_131 = arith.constant 5 : i32
    %c8_i32_132 = arith.constant 8 : i32
    %460 = arith.muli %c5_i32_131, %c8_i32_132 : i32
    %461 = tpu.assume_multiple %460, 8 : i32
    %462 = arith.index_cast %461 : i32 to index
    %c0_133 = arith.constant 0 : index
    %463 = vector.load %arg10[%462, %c0_133] : memref<64x384xf32, #tpu.memory_space<vmem>>, vector<8x384xf32>
    %c0_134 = arith.constant 0 : index
    %c0_135 = arith.constant 0 : index
    %464 = vector.load %arg6[%c0_134, %c0_135] : memref<128x384xf32, #tpu.memory_space<vmem>>, vector<128x384xf32>
    %cst_136 = arith.constant dense<0.000000e+00> : vector<8x384xf32>
    %465 = tpu.matmul %457, %464, %cst_136 {dimension_numbers = #tpu.dot_dimension_numbers<[1], [0], [0], [1], [0, 0, 1, 1], [], []>} : vector<8x128xf32>, vector<128x384xf32>, vector<8x384xf32> -> vector<8x384xf32>
    %466 = vector.extract_strided_slice %463 {offsets = [0, 0], sizes = [8, 128], strides = [1, 1]} : vector<8x384xf32> to vector<8x128xf32>
    %467 = vector.extract_strided_slice %465 {offsets = [0, 0], sizes = [8, 128], strides = [1, 1]} : vector<8x384xf32> to vector<8x128xf32>
    %468 = arith.addf %466, %467 : vector<8x128xf32>
    %469 = arith.negf %468 : vector<8x128xf32>
    %470 = math.exp %469 : vector<8x128xf32>
    %cst_137 = arith.constant 1.000000e+00 : f32
    %471 = vector.broadcast %cst_137 : f32 to vector<8x128xf32>
    %472 = arith.addf %471, %470 : vector<8x128xf32>
    %473 = arith.divf %471, %472 : vector<8x128xf32>
    %474 = vector.extract_strided_slice %463 {offsets = [0, 128], sizes = [8, 128], strides = [1, 1]} : vector<8x384xf32> to vector<8x128xf32>
    %475 = vector.extract_strided_slice %465 {offsets = [0, 128], sizes = [8, 128], strides = [1, 1]} : vector<8x384xf32> to vector<8x128xf32>
    %476 = arith.addf %474, %475 : vector<8x128xf32>
    %477 = arith.negf %476 : vector<8x128xf32>
    %478 = math.exp %477 : vector<8x128xf32>
    %cst_138 = arith.constant 1.000000e+00 : f32
    %479 = vector.broadcast %cst_138 : f32 to vector<8x128xf32>
    %480 = arith.addf %479, %478 : vector<8x128xf32>
    %481 = arith.divf %479, %480 : vector<8x128xf32>
    %482 = vector.extract_strided_slice %463 {offsets = [0, 256], sizes = [8, 128], strides = [1, 1]} : vector<8x384xf32> to vector<8x128xf32>
    %483 = vector.extract_strided_slice %465 {offsets = [0, 256], sizes = [8, 128], strides = [1, 1]} : vector<8x384xf32> to vector<8x128xf32>
    %484 = vector.broadcast %288 : vector<1x128xf32> to vector<8x128xf32>
    %485 = arith.addf %483, %484 : vector<8x128xf32>
    %486 = arith.mulf %473, %485 : vector<8x128xf32>
    %487 = arith.addf %482, %486 : vector<8x128xf32>
    %488 = math.tanh %487 : vector<8x128xf32>
    %489 = arith.subf %457, %488 : vector<8x128xf32>
    %490 = arith.mulf %481, %489 : vector<8x128xf32>
    %491 = arith.addf %488, %490 : vector<8x128xf32>
    %492 = arith.index_cast %461 : i32 to index
    %c0_139 = arith.constant 0 : index
    %493 = vector.load %arg9[%492, %c0_139] : memref<64x128xf32, #tpu.memory_space<vmem>>, vector<8x128xf32>
    tpu.vector_store %arg9[%492, %c0_139], %491 {strides = array<i32>} : memref<64x128xf32, #tpu.memory_space<vmem>>, vector<8x128xf32>,
    %c6_i32_140 = arith.constant 6 : i32
    %c8_i32_141 = arith.constant 8 : i32
    %494 = arith.muli %c6_i32_140, %c8_i32_141 : i32
    %495 = tpu.assume_multiple %494, 8 : i32
    %496 = arith.index_cast %495 : i32 to index
    %c0_142 = arith.constant 0 : index
    %497 = vector.load %arg10[%496, %c0_142] : memref<64x384xf32, #tpu.memory_space<vmem>>, vector<8x384xf32>
    %c0_143 = arith.constant 0 : index
    %c0_144 = arith.constant 0 : index
    %498 = vector.load %arg6[%c0_143, %c0_144] : memref<128x384xf32, #tpu.memory_space<vmem>>, vector<128x384xf32>
    %cst_145 = arith.constant dense<0.000000e+00> : vector<8x384xf32>
    %499 = tpu.matmul %491, %498, %cst_145 {dimension_numbers = #tpu.dot_dimension_numbers<[1], [0], [0], [1], [0, 0, 1, 1], [], []>} : vector<8x128xf32>, vector<128x384xf32>, vector<8x384xf32> -> vector<8x384xf32>
    %500 = vector.extract_strided_slice %497 {offsets = [0, 0], sizes = [8, 128], strides = [1, 1]} : vector<8x384xf32> to vector<8x128xf32>
    %501 = vector.extract_strided_slice %499 {offsets = [0, 0], sizes = [8, 128], strides = [1, 1]} : vector<8x384xf32> to vector<8x128xf32>
    %502 = arith.addf %500, %501 : vector<8x128xf32>
    %503 = arith.negf %502 : vector<8x128xf32>
    %504 = math.exp %503 : vector<8x128xf32>
    %cst_146 = arith.constant 1.000000e+00 : f32
    %505 = vector.broadcast %cst_146 : f32 to vector<8x128xf32>
    %506 = arith.addf %505, %504 : vector<8x128xf32>
    %507 = arith.divf %505, %506 : vector<8x128xf32>
    %508 = vector.extract_strided_slice %497 {offsets = [0, 128], sizes = [8, 128], strides = [1, 1]} : vector<8x384xf32> to vector<8x128xf32>
    %509 = vector.extract_strided_slice %499 {offsets = [0, 128], sizes = [8, 128], strides = [1, 1]} : vector<8x384xf32> to vector<8x128xf32>
    %510 = arith.addf %508, %509 : vector<8x128xf32>
    %511 = arith.negf %510 : vector<8x128xf32>
    %512 = math.exp %511 : vector<8x128xf32>
    %cst_147 = arith.constant 1.000000e+00 : f32
    %513 = vector.broadcast %cst_147 : f32 to vector<8x128xf32>
    %514 = arith.addf %513, %512 : vector<8x128xf32>
    %515 = arith.divf %513, %514 : vector<8x128xf32>
    %516 = vector.extract_strided_slice %497 {offsets = [0, 256], sizes = [8, 128], strides = [1, 1]} : vector<8x384xf32> to vector<8x128xf32>
    %517 = vector.extract_strided_slice %499 {offsets = [0, 256], sizes = [8, 128], strides = [1, 1]} : vector<8x384xf32> to vector<8x128xf32>
    %518 = vector.broadcast %288 : vector<1x128xf32> to vector<8x128xf32>
    %519 = arith.addf %517, %518 : vector<8x128xf32>
    %520 = arith.mulf %507, %519 : vector<8x128xf32>
    %521 = arith.addf %516, %520 : vector<8x128xf32>
    %522 = math.tanh %521 : vector<8x128xf32>
    %523 = arith.subf %491, %522 : vector<8x128xf32>
    %524 = arith.mulf %515, %523 : vector<8x128xf32>
    %525 = arith.addf %522, %524 : vector<8x128xf32>
    %526 = arith.index_cast %495 : i32 to index
    %c0_148 = arith.constant 0 : index
    %527 = vector.load %arg9[%526, %c0_148] : memref<64x128xf32, #tpu.memory_space<vmem>>, vector<8x128xf32>
    tpu.vector_store %arg9[%526, %c0_148], %525 {strides = array<i32>} : memref<64x128xf32, #tpu.memory_space<vmem>>, vector<8x128xf32>,
    %c7_i32_149 = arith.constant 7 : i32
    %c8_i32_150 = arith.constant 8 : i32
    %528 = arith.muli %c7_i32_149, %c8_i32_150 : i32
    %529 = tpu.assume_multiple %528, 8 : i32
    %530 = arith.index_cast %529 : i32 to index
    %c0_151 = arith.constant 0 : index
    %531 = vector.load %arg10[%530, %c0_151] : memref<64x384xf32, #tpu.memory_space<vmem>>, vector<8x384xf32>
    %c0_152 = arith.constant 0 : index
    %c0_153 = arith.constant 0 : index
    %532 = vector.load %arg6[%c0_152, %c0_153] : memref<128x384xf32, #tpu.memory_space<vmem>>, vector<128x384xf32>
    %cst_154 = arith.constant dense<0.000000e+00> : vector<8x384xf32>
    %533 = tpu.matmul %525, %532, %cst_154 {dimension_numbers = #tpu.dot_dimension_numbers<[1], [0], [0], [1], [0, 0, 1, 1], [], []>} : vector<8x128xf32>, vector<128x384xf32>, vector<8x384xf32> -> vector<8x384xf32>
    %534 = vector.extract_strided_slice %531 {offsets = [0, 0], sizes = [8, 128], strides = [1, 1]} : vector<8x384xf32> to vector<8x128xf32>
    %535 = vector.extract_strided_slice %533 {offsets = [0, 0], sizes = [8, 128], strides = [1, 1]} : vector<8x384xf32> to vector<8x128xf32>
    %536 = arith.addf %534, %535 : vector<8x128xf32>
    %537 = arith.negf %536 : vector<8x128xf32>
    %538 = math.exp %537 : vector<8x128xf32>
    %cst_155 = arith.constant 1.000000e+00 : f32
    %539 = vector.broadcast %cst_155 : f32 to vector<8x128xf32>
    %540 = arith.addf %539, %538 : vector<8x128xf32>
    %541 = arith.divf %539, %540 : vector<8x128xf32>
    %542 = vector.extract_strided_slice %531 {offsets = [0, 128], sizes = [8, 128], strides = [1, 1]} : vector<8x384xf32> to vector<8x128xf32>
    %543 = vector.extract_strided_slice %533 {offsets = [0, 128], sizes = [8, 128], strides = [1, 1]} : vector<8x384xf32> to vector<8x128xf32>
    %544 = arith.addf %542, %543 : vector<8x128xf32>
    %545 = arith.negf %544 : vector<8x128xf32>
    %546 = math.exp %545 : vector<8x128xf32>
    %cst_156 = arith.constant 1.000000e+00 : f32
    %547 = vector.broadcast %cst_156 : f32 to vector<8x128xf32>
    %548 = arith.addf %547, %546 : vector<8x128xf32>
    %549 = arith.divf %547, %548 : vector<8x128xf32>
    %550 = vector.extract_strided_slice %531 {offsets = [0, 256], sizes = [8, 128], strides = [1, 1]} : vector<8x384xf32> to vector<8x128xf32>
    %551 = vector.extract_strided_slice %533 {offsets = [0, 256], sizes = [8, 128], strides = [1, 1]} : vector<8x384xf32> to vector<8x128xf32>
    %552 = vector.broadcast %288 : vector<1x128xf32> to vector<8x128xf32>
    %553 = arith.addf %551, %552 : vector<8x128xf32>
    %554 = arith.mulf %541, %553 : vector<8x128xf32>
    %555 = arith.addf %550, %554 : vector<8x128xf32>
    %556 = math.tanh %555 : vector<8x128xf32>
    %557 = arith.subf %525, %556 : vector<8x128xf32>
    %558 = arith.mulf %549, %557 : vector<8x128xf32>
    %559 = arith.addf %556, %558 : vector<8x128xf32>
    %560 = arith.index_cast %529 : i32 to index
    %c0_157 = arith.constant 0 : index
    %561 = vector.load %arg9[%560, %c0_157] : memref<64x128xf32, #tpu.memory_space<vmem>>, vector<8x128xf32>
    tpu.vector_store %arg9[%560, %c0_157], %559 {strides = array<i32>} : memref<64x128xf32, #tpu.memory_space<vmem>>, vector<8x128xf32>,
    %c8_i32_158 = arith.constant 8 : i32
    return
  }
}

</mosaic_0001>

<bundles_post_ra>
// kernel: _encoder_rnn_forward.1
= control target key start
LH: loop header
LB: loop body
LE: loop exit
PB: predicated region body
PF: predicated region fallthrough
CT: control target
= control target key end

     0   :  { %14 = vsyncpa [#allocation5], 0  ;;  %s7313_s0 = inlined_call_operand.vmem [shape: f32[64,16], index: 0, kind: input, shape index: {}]   ;;  %s7314_s1 = inlined_call_operand.vmem [shape: f32[16,384], index: 1, kind: input, shape index: {}]   ;;  %s7315_s2 = inlined_call_operand.hbm [shape: f32[128,384], index: 2, kind: input, shape index: {}]   ;;  %s7316_s3 = inlined_call_operand.vmem [shape: f32[1,384], index: 3, kind: input, shape index: {}]   ;;  %s7317_s4 = inlined_call_operand.vmem [shape: f32[1,128], index: 4, kind: input, shape index: {}]   ;;  %s7318_s5 = inlined_call_operand.hbm [shape: f32[128,384], index: 5, kind: input, shape index: {}]   ;;  %s7319_s6 = inlined_call_operand.hbm [shape: f32[128,384], index: 6, kind: input, shape index: {}]   ;;  %s7320_s7 = inlined_call_operand.vmem [shape: f32[1,384], index: 7, kind: input, shape index: {}]   ;;  %s7321_s8 = inlined_call_operand.vmem [shape: f32[1,128], index: 8, kind: input, shape index: {}]   ;;  %s7322_s9 = inlined_call_operand.vmem [shape: f32[64,128], index: 9, kind: output, shape index: {}]  }
   0x1   :  { %15 = vsyncpa [#allocation7], 0  ;;  %s5391_s30 = smov [#allocation6]   ;;  %s5392_s11 = smov [#allocation4]  }
   0x2   :  { %s41_s10 = sshll.u32 %s5391_s30, 4  ;;  %s25_s12 = sshll.u32 %s5392_s11, 4  ;;  %s42_s10 = int_to_ptr.vmem [resolvable:$true] %s41_s10  ;;  %s26_s12 = int_to_ptr.vmem [resolvable:$true] %s25_s12 }
   0x3   :  { %s5335_s13 = scalar_lea.vmem %s42_s10, 6144  ;;  %p5340_p1 = scmp.lt.s32.totalorder %s42_s10, %s42_s10 }
   0x4   :  { %p5336_p0 = scmp.ne.s32.totalorder %s42_s10, %s5335_s13  ;;  %p5341_p2 = scmp.lt.s32.totalorder %s5335_s13, %s5335_s13 }
   0x6   :  { %p5342_p3 = por %p5341_p2, %p5340_p1 }
   0x8   :  { %p5343_p4 = pnand %p5342_p3, %p5336_p0 }
   0xa   :  { %5346 = shalt.err (!%p5343_p4)
}
   0xb   :  { %s5393_s14 = smov 384   ;;  %s5394_s15 = smov 24  }
   0xc   :  { %47 = dma.hbm_to_vmem [thread:$0]  %s7318_s5, 6144, %s42_s10, [#allocation7], %s5393_s14, %s5393_s14, %s5394_s15  }
   0xd   :  { %s5355_s18 = scalar_lea.vmem %s26_s12, 6144  ;;  %p5360_p6 = scmp.lt.s32.totalorder %s26_s12, %s26_s12 }
   0xe   :  { %p5356_p5 = scmp.ne.s32.totalorder %s26_s12, %s5355_s18  ;;  %p5361_p7 = scmp.lt.s32.totalorder %s5355_s18, %s5355_s18 }
  0x10   :  { %p5362_p8 = por %p5361_p7, %p5360_p6 }
  0x12   :  { %p5363_p9 = pnand %p5362_p8, %p5356_p5 }
  0x14   :  { %5366 = shalt.err (!%p5363_p9)
}
  0x15   :  { %31 = dma.hbm_to_vmem [thread:$0]  %s7315_s2, 6144, %s26_s12, [#allocation5], %s5393_s14, %s5393_s14, %s5394_s15  }
  0x16   :  { %s5395_s21 = smov [#allocation8]  }
  0x17   :  { %s53_s22 = sshll.u32 %s5395_s21, 4  ;;  %s54_s22 = int_to_ptr.vmem [resolvable:$true] %s53_s22 }
  0x18   :  { %s5375_s23 = scalar_lea.vmem %s54_s22, 6144  ;;  %p5380_p11 = scmp.lt.s32.totalorder %s54_s22, %s54_s22 }
  0x19   :  { %p5376_p10 = scmp.ne.s32.totalorder %s54_s22, %s5375_s23  ;;  %p5381_p12 = scmp.lt.s32.totalorder %s5375_s23, %s5375_s23 }
  0x1b   :  { %p5382_p13 = por %p5381_p12, %p5380_p11 }
  0x1d   :  { %p5383_p0 = pnand %p5382_p13, %p5376_p10 }
  0x1f   :  { %5386 = shalt.err (!%p5383_p0)
}
  0x20   :  { %59 = dma.hbm_to_vmem [thread:$0]  %s7319_s6, 6144, %s54_s22, [#allocation7], %s5393_s14, %s5393_s14, %s5394_s15  }
  0x21   :  { %5387 = dma.done.wait [#allocation5], 6144  }
  0x22   :  { %5388 = vsyncadd [#allocation5], 4294961152 }
  0x23   :  { %5389 = dma.done.wait [#allocation7], 12288  }
  0x24   :  { %5390 = vsyncadd [#allocation7], 4294955008  ;;  %v7323_v0 = vmov 0.0   ;;  %v85_v1 = vld [vmem:[%s7314_s1 + $0x20] sm:$0xff]  ;;  %v84_v2 = vld [vmem:[%s7314_s1 + $0x18] sm:$0xff]  ;;  %vm104_vm0 = vcmask 130048   ;;  %v89_v63 = vlaneseq }
  0x25   :  { %193 = vmatprep.mubr.f32.mxu0 %v7323_v0  ;;  %v82_v3 = vld [vmem:[%s7314_s1 + $0x8] sm:$0xff]  ;;  %157 = vmatprep.subr.mxu0 %v85_v1  ;;  %v81_v4 = vld [vmem:[%s7314_s1] sm:$0xff]  ;;  %v5473_v6 = vld [vmem:[#allocation4 + $0x170] sm:$0xff]  ;;  %vm5397_vm1 = vmmov 0  }
  0x26   :  { %v73_v5 = vld [vmem:[%s7313_s0] sm:$0xff]  ;;  %158 = vmatpush1.msra.mxu0 %v84_v2  ;;  %7381 = vst [vmem:[#allocation11_spill] sm:$0xff] %v5473_v6  ;;  %v5476_v7 = vld [vmem:[#allocation4 + $0x168] sm:$0xff]  ;;  %v5478_v8 = vld [vmem:[#allocation4 + $0x158] sm:$0xff]  ;;  %v5773_v1 = vshrl.u32 %v89_v63, 7 }
  0x27   :  { %4542 = vmatprep.mubr.msk.f32.mxu1 %vm104_vm0, %v73_v5  ;;  %159 = vmatprep.subr.mxu0 %v82_v3  ;;  %v5482_v9 = vld [vmem:[#allocation4 + $0x150] sm:$0xff]  ;;  %v74_v10 = vld [vmem:[%s7313_s0 + $0x8] sm:$0xff]  ;;  %v5489_v11 = vld [vmem:[#allocation4 + $0x140] sm:$0xff] }
  0x28   :  { %160 = vmatpush1.msra.mxu0 %v81_v4  ;;  %v5492_v12 = vld [vmem:[#allocation4 + $0x138] sm:$0xff]  ;;  %v5495_v13 = vld [vmem:[#allocation4 + $0x128] sm:$0xff]  ;;  %v5499_v14 = vld [vmem:[#allocation4 + $0x120] sm:$0xff]  ;;  %7386 = vst [vmem:[#allocation16_spill] sm:$0xff] %v5773_v1  ;;  %v7329_v2 = vsub.s32 0, %v5773_v1 }
  0x29   :  { %4175 = vmatmul.mubr.msk.f32.vlgmr.msra.gmra.mxu0 %vm104_vm0, %v73_v5  ;;  %426 = vmatprep.subr.mxu0 %v5473_v6  ;;  %v5506_v15 = vld [vmem:[%s7313_s0 + $0x10] sm:$0xff]  ;;  %v5511_v17 = vld [vmem:[#allocation4 + $0x108] sm:$0xff]  ;;  %v5514_v18 = vld [vmem:[#allocation4 + $0xf8] sm:$0xff]  ;;  %v7331_v5 = vsub.s32 1, %v5773_v1 }
  0x2a   :  { %427 = vmatpush1.msra.mxu0 %v5476_v7  ;;  %199 = vmatprep.mubr.f32.mxu0 %v7323_v0  ;;  %v5508_v16 = vld [vmem:[#allocation4 + $0x110] sm:$0xff]  ;;  %v86_v19 = vld [vmem:[%s7314_s1 + $0x28] sm:$0xff]  ;;  %v5529_v21 = vld [vmem:[%s7313_s0 + $0x18] sm:$0xff] }
  0x2b   :  { %428 = vmatprep.subr.mxu0 %v5478_v8  ;;  %v5522_v20 = vld [vmem:[#allocation4 + $0xf0] sm:$0xff]  ;;  %v5531_v22 = vld [vmem:[#allocation4 + $0xe0] sm:$0xff]  ;;  %v5534_v23 = vld [vmem:[#allocation4 + $0xd8] sm:$0xff]  ;;  %4538 = vmatprep.subr.mxu1 %v86_v19 }
  0x2c   :  { %429 = vmatpush1.msra.mxu0 %v5482_v9  ;;  %v5537_v24 = vld [vmem:[#allocation4 + $0xc8] sm:$0xff]  ;;  %4539 = vmatpush3.msra.mxu1 %v86_v19  ;;  %v83_v25 = vld [vmem:[%s7314_s1 + $0x10] sm:$0xff]  ;;  %v5545_v26 = vld [vmem:[#allocation4 + $0xc0] sm:$0xff] }
  0x2d   :  { %4176 = vmatmul.mubr.msk.f32.gmra.mxu0 %vm104_vm0, %v74_v10  ;;  %430 = vmatprep.subr.mxu0 %v5489_v11  ;;  %v5552_v27 = vld [vmem:[%s7313_s0 + $0x20] sm:$0xff]  ;;  %v5554_v28 = vld [vmem:[#allocation4 + $0xb0] sm:$0xff]  ;;  %v5557_v29 = vld [vmem:[#allocation4 + $0xa8] sm:$0xff] }
  0x2e   :  { %431 = vmatpush1.msra.mxu0 %v5492_v12  ;;  %205 = vmatprep.mubr.f32.mxu0 %v7323_v0  ;;  %v5560_v30 = vld [vmem:[#allocation4 + $0x98] sm:$0xff]  ;;  %v5565_v31 = vld [vmem:[#allocation4 + $0x90] sm:$0xff]  ;;  %v5572_v32 = vld [vmem:[%s7313_s0 + $0x28] sm:$0xff] }
  0x2f   :  { %432 = vmatprep.subr.mxu0 %v5495_v13  ;;  %4540 = vmatprep.subr.mxu1 %v83_v25  ;;  %v5574_v33 = vld [vmem:[#allocation4 + $0x80] sm:$0xff]  ;;  %v5577_v34 = vld [vmem:[#allocation4 + $0x78] sm:$0xff]  ;;  %v5581_v35 = vld [vmem:[#allocation4 + $0x68] sm:$0xff] }
  0x30   :  { %433 = vmatpush1.msra.mxu0 %v5499_v14  ;;  %4541 = vmatpush3.msra.mxu1 %v83_v25  ;;  %v5584_v36 = vld [vmem:[#allocation4 + $0x178] sm:$0xff]  ;;  %v5589_v37 = vld [vmem:[#allocation4 + $0x60] sm:$0xff]  ;;  %v79_v38 = vld [vmem:[%s7313_s0 + $0x30] sm:$0xff] }
  0x31   :  { %4177 = vmatmul.mubr.msk.f32.gmra.mxu0 %vm104_vm0, %v5506_v15  ;;  %434 = vmatprep.subr.mxu0 %v5508_v16  ;;  %v5596_v39 = vld [vmem:[#allocation4 + $0x50] sm:$0xff]  ;;  %v5599_v40 = vld [vmem:[#allocation4 + $0x48] sm:$0xff]  ;;  %v5603_v41 = vld [vmem:[#allocation4 + $0x38] sm:$0xff] }
  0x32   :  { %435 = vmatpush1.msra.mxu0 %v5511_v17  ;;  %211 = vmatprep.mubr.f32.mxu0 %v7323_v0  ;;  %v5606_v42 = vld [vmem:[#allocation4 + $0x160] sm:$0xff]  ;;  %v5610_v43 = vld [vmem:[#allocation4 + $0x30] sm:$0xff]  ;;  %v80_v44 = vld [vmem:[%s7313_s0 + $0x38] sm:$0xff] }
  0x33   :  { %436 = vmatprep.subr.mxu0 %v5514_v18  ;;  %4554 = vmatprep.subr.mxu1 %v7323_v0  ;;  %v5617_v45 = vld [vmem:[#allocation4 + $0x20] sm:$0xff]  ;;  %v5620_v46 = vld [vmem:[#allocation4 + $0x18] sm:$0xff]  ;;  %v5624_v47 = vld [vmem:[#allocation4 + $0x8] sm:$0xff] }
  0x34   :  { %437 = vmatpush1.msra.mxu0 %v5522_v20  ;;  %4543 = vmatmul.mubr.msk.f32.vlgmr.msra.gmra.mxu1 %vm104_vm0, %v74_v10  ;;  %7382 = vst [vmem:[#allocation12_spill] sm:$0xff] %v5624_v47  ;;  %v5627_v48 = vld [vmem:[#allocation4 + $0x148] sm:$0xff]  ;;  %v5631_v49 = vld [vmem:[#allocation4] sm:$0xff]  ;;  %v5635_v50 = vld [vmem:[#allocation4 + $0x130] sm:$0xff] }
  0x35   :  { %4178 = vmatmul.mubr.msk.f32.gmra.mxu0 %vm104_vm0, %v5529_v21  ;;  %438 = vmatprep.subr.mxu0 %v5531_v22  ;;  %7383 = vst [vmem:[#allocation13_spill] sm:$0xff] %v5631_v49  ;;  %v5641_v51 = vld [vmem:[#allocation4 + $0x118] sm:$0xff]  ;;  %v5646_v52 = vld [vmem:[#allocation4 + $0x100] sm:$0xff]  ;;  %v5653_v53 = vld [vmem:[#allocation4 + $0xe8] sm:$0xff] }
  0x36   :  { %439 = vmatpush1.msra.mxu0 %v5534_v23  ;;  %217 = vmatprep.mubr.f32.mxu0 %v7323_v0  ;;  %v5661_v54 = vld [vmem:[#allocation4 + $0xd0] sm:$0xff]  ;;  %v5667_v55 = vld [vmem:[#allocation4 + $0xb8] sm:$0xff]  ;;  %v5674_v56 = vld [vmem:[#allocation4 + $0xa0] sm:$0xff] }
  0x37   :  { %440 = vmatprep.subr.mxu0 %v5537_v24  ;;  %4555 = vmatpush3.msra.mxu1 %v5584_v36  ;;  %v5680_v57 = vld [vmem:[#allocation4 + $0x88] sm:$0xff]  ;;  %v5687_v58 = vld [vmem:[#allocation4 + $0x70] sm:$0xff]  ;;  %v5693_v59 = vld [vmem:[#allocation4 + $0x58] sm:$0xff] }
  0x38   :  { %441 = vmatpush1.msra.mxu0 %v5545_v26  ;;  %4556 = vmatprep.subr.mxu1 %v7323_v0  ;;  %v5699_v60 = vld [vmem:[#allocation4 + $0x40] sm:$0xff]  ;;  %v5705_v61 = vld [vmem:[#allocation4 + $0x28] sm:$0xff]  ;;  %v5711_v62 = vld [vmem:[#allocation4 + $0x10] sm:$0xff] }
  0x39   :  { %4179 = vmatmul.mubr.msk.f32.gmra.mxu0 %vm104_vm0, %v5552_v27  ;;  %442 = vmatprep.subr.mxu0 %v5554_v28  ;;  %7384 = vst [vmem:[#allocation14_spill] sm:$0xff] %v5705_v61  ;;  %7385 = vst [vmem:[#allocation15_spill] sm:$0xff] %v5711_v62  ;;  %v87_v3 = vld [vmem:[%s7316_s3] sm:$0x7] }
  0x3a   :  { %443 = vmatpush1.msra.mxu0 %v5557_v29  ;;  %223 = vmatprep.mubr.f32.mxu0 %v7323_v0 }
  0x3b   :  { %444 = vmatprep.subr.mxu0 %v5560_v30  ;;  %4557 = vmatpush3.msra.mxu1 %v5606_v42 }
  0x3c   :  { %445 = vmatpush1.msra.mxu0 %v5565_v31  ;;  %4558 = vmatprep.subr.mxu1 %v7323_v0 }
  0x3d   :  { %4180 = vmatmul.mubr.msk.f32.gmra.mxu0 %vm104_vm0, %v5572_v32  ;;  %446 = vmatprep.subr.mxu0 %v5574_v33 }
  0x3e   :  { %447 = vmatpush1.msra.mxu0 %v5577_v34  ;;  %229 = vmatprep.mubr.f32.mxu0 %v7323_v0 }
  0x3f   :  { %448 = vmatprep.subr.mxu0 %v5581_v35  ;;  %4559 = vmatpush3.msra.mxu1 %v5627_v48 }
  0x40   :  { %449 = vmatpush1.msra.mxu0 %v5589_v37  ;;  %4560 = vmatprep.subr.mxu1 %v7323_v0 }
  0x41   :  { %4181 = vmatmul.mubr.msk.f32.gmra.mxu0 %vm104_vm0, %v79_v38  ;;  %450 = vmatprep.subr.mxu0 %v5596_v39 }
  0x42   :  { %451 = vmatpush1.msra.mxu0 %v5599_v40  ;;  %235 = vmatprep.mubr.f32.mxu0 %v7323_v0 }
  0x43   :  { %452 = vmatprep.subr.mxu0 %v5603_v41  ;;  %4561 = vmatpush3.msra.mxu1 %v5635_v50 }
  0x44   :  { %453 = vmatpush1.msra.mxu0 %v5610_v43  ;;  %4562 = vmatprep.subr.mxu1 %v7323_v0 }
  0x45   :  { %4182 = vmatmul.mubr.msk.f32.gmra.mxu0 %vm104_vm0, %v80_v44  ;;  %454 = vmatprep.subr.mxu0 %v5617_v45 }
  0x46   :  { %455 = vmatpush1.msra.mxu0 %v5620_v46  ;;  %490 = vmatprep.mubr.f32.mxu0 %v7323_v0 }
  0x47   :  { %456 = vmatprep.subr.mxu0 %v5624_v47  ;;  %4545 = vmatprep.mubr.msk.f32.mxu1 %vm104_vm0, %v5506_v15  ;;  %v92_v15 = vrot.slane %v87_v3, %v7329_v2 }
  0x48   :  { %457 = vmatpush1.msra.mxu0 %v5631_v49  ;;  %4563 = vmatpush3.msra.mxu1 %v5641_v51 }
  0x49   :  { %491 = vmatmul.mubr.f32.vlgmr.msra.gmra.mxu0 %v7323_v0  ;;  %649 = vmatprep.subr.mxu0 %v5473_v6 }
  0x4a   :  { %4564 = vmatprep.subr.mxu1 %v7323_v0  ;;  %4546 = vmatmul.mubr.msk.f32.gmra.mxu1 %vm104_vm0, %v5529_v21  ;;  %v96_v21 = vrot.slane %v87_v3, %v7331_v5 }
  0x4b   :  { %4565 = vmatpush3.msra.mxu1 %v5646_v52  ;;  %4548 = vmatprep.mubr.msk.f32.mxu1 %vm104_vm0, %v5552_v27 }
  0x4c   :  { %4566 = vmatprep.subr.mxu1 %v7323_v0  ;;  %650 = vmatpush1.msra.mxu0 %v5476_v7 }
  0x4d   :  { %4567 = vmatpush3.msra.mxu1 %v5653_v53  ;;  %651 = vmatprep.subr.mxu0 %v5478_v8 }
  0x4e   :  { %4568 = vmatprep.subr.mxu1 %v7323_v0  ;;  %4549 = vmatmul.mubr.msk.f32.gmra.mxu1 %vm104_vm0, %v5572_v32 }
  0x4f   :  { %4569 = vmatpush3.msra.mxu1 %v5661_v54  ;;  %4551 = vmatprep.mubr.msk.f32.mxu1 %vm104_vm0, %v79_v38 }
  0x50   :  { %4570 = vmatprep.subr.mxu1 %v7323_v0  ;;  %652 = vmatpush1.msra.mxu0 %v5482_v9 }
  0x51   :  { %4571 = vmatpush3.msra.mxu1 %v5667_v55  ;;  %653 = vmatprep.subr.mxu0 %v5489_v11 }
  0x52   :  { %4572 = vmatprep.subr.mxu1 %v7323_v0  ;;  %4552 = vmatmul.mubr.msk.f32.gmra.mxu1 %vm104_vm0, %v80_v44 }
  0x53   :  { %4573 = vmatpush3.msra.mxu1 %v5674_v56  ;;  %4586 = vmatprep.mubr.msk.f32.mxu1 %vm5397_vm1, %v7323_v0 }
  0x54   :  { %4574 = vmatprep.subr.mxu1 %v7323_v0  ;;  %654 = vmatpush1.msra.mxu0 %v5492_v12 }
  0x55   :  { %4575 = vmatpush3.msra.mxu1 %v5680_v57  ;;  %655 = vmatprep.subr.mxu0 %v5495_v13 }
  0x56   :  { %4576 = vmatprep.subr.mxu1 %v7323_v0  ;;  %656 = vmatpush1.msra.mxu0 %v5499_v14 }
  0x57   :  { %4577 = vmatpush3.msra.mxu1 %v5687_v58  ;;  %657 = vmatprep.subr.mxu0 %v5508_v16 }
  0x58   :  { %4578 = vmatprep.subr.mxu1 %v7323_v0  ;;  %658 = vmatpush1.msra.mxu0 %v5511_v17 }
  0x59   :  { %4579 = vmatpush3.msra.mxu1 %v5693_v59  ;;  %659 = vmatprep.subr.mxu0 %v5514_v18 }
  0x5a   :  { %4580 = vmatprep.subr.mxu1 %v7323_v0  ;;  %660 = vmatpush1.msra.mxu0 %v5522_v20 }
  0x5b   :  { %4581 = vmatpush3.msra.mxu1 %v5699_v60  ;;  %661 = vmatprep.subr.mxu0 %v5531_v22 }
  0x5c   :  { %4582 = vmatprep.subr.mxu1 %v7323_v0  ;;  %662 = vmatpush1.msra.mxu0 %v5534_v23 }
  0x5d   :  { %4583 = vmatpush3.msra.mxu1 %v5705_v61  ;;  %663 = vmatprep.subr.mxu0 %v5537_v24 }
  0x5e   :  { %4584 = vmatprep.subr.mxu1 %v7323_v0  ;;  %664 = vmatpush1.msra.mxu0 %v5545_v26 }
  0x5f   :  { %4585 = vmatpush3.msra.mxu1 %v5711_v62  ;;  %665 = vmatprep.subr.mxu0 %v5554_v28 }
  0x60   :  { %4587 = vmatmul.mubr.f32.vlgmr.msra.gmra.mxu1 %v7323_v0  ;;  %4589 = vmatprep.subr.mxu1 %v7323_v0 }
  0x61   :  { %4590 = vmatpush3.msra.mxu1 %v5584_v36  ;;  %666 = vmatpush1.msra.mxu0 %v5557_v29 }
  0x62   :  { %4591 = vmatprep.subr.mxu1 %v7323_v0  ;;  %667 = vmatprep.subr.mxu0 %v5560_v30 }
  0x63   :  { %4592 = vmatpush3.msra.mxu1 %v5606_v42  ;;  %668 = vmatpush1.msra.mxu0 %v5565_v31 }
  0x64   :  { %4593 = vmatprep.subr.mxu1 %v7323_v0  ;;  %669 = vmatprep.subr.mxu0 %v5574_v33 }
  0x65   :  { %4594 = vmatpush3.msra.mxu1 %v5627_v48  ;;  %670 = vmatpush1.msra.mxu0 %v5577_v34 }
  0x66   :  { %4595 = vmatprep.subr.mxu1 %v7323_v0  ;;  %671 = vmatprep.subr.mxu0 %v5581_v35 }
  0x67   :  { %4596 = vmatpush3.msra.mxu1 %v5635_v50  ;;  %672 = vmatpush1.msra.mxu0 %v5589_v37 }
  0x68   :  { %4597 = vmatprep.subr.mxu1 %v7323_v0  ;;  %673 = vmatprep.subr.mxu0 %v5596_v39 }
  0x69   :  { %4598 = vmatpush3.msra.mxu1 %v5641_v51  ;;  %674 = vmatpush1.msra.mxu0 %v5599_v40 }
  0x6a   :  { %4599 = vmatprep.subr.mxu1 %v7323_v0  ;;  %675 = vmatprep.subr.mxu0 %v5603_v41 }
  0x6b   :  { %4600 = vmatpush3.msra.mxu1 %v5646_v52  ;;  %676 = vmatpush1.msra.mxu0 %v5610_v43 }
  0x6c   :  { %4601 = vmatprep.subr.mxu1 %v7323_v0  ;;  %677 = vmatprep.subr.mxu0 %v5617_v45 }
  0x6d   :  { %4602 = vmatpush3.msra.mxu1 %v5653_v53  ;;  %678 = vmatpush1.msra.mxu0 %v5620_v46 }
  0x6e   :  { %4603 = vmatprep.subr.mxu1 %v7323_v0  ;;  %679 = vmatprep.subr.mxu0 %v5624_v47 }
  0x6f   :  { %4604 = vmatpush3.msra.mxu1 %v5661_v54  ;;  %680 = vmatpush1.msra.mxu0 %v5631_v49 }
  0x70   :  { %4605 = vmatprep.subr.mxu1 %v7323_v0  ;;  %713 = vmatprep.mubr.f32.mxu0 %v7323_v0 }
  0x71   :  { %4606 = vmatpush3.msra.mxu1 %v5667_v55  ;;  %4621 = vmatprep.mubr.msk.f32.mxu1 %vm5397_vm1, %v7323_v0 }
  0x72   :  { %4607 = vmatprep.subr.mxu1 %v7323_v0  ;;  %867 = vmatprep.subr.mxu0 %v5473_v6 }
  0x73   :  { %4608 = vmatpush3.msra.mxu1 %v5674_v56 }
  0x74   :  { %4609 = vmatprep.subr.mxu1 %v7323_v0 }
  0x75   :  { %4610 = vmatpush3.msra.mxu1 %v5680_v57 }
  0x76   :  { %4611 = vmatprep.subr.mxu1 %v7323_v0 }
  0x77   :  { %4612 = vmatpush3.msra.mxu1 %v5687_v58 }
  0x78   :  { %4613 = vmatprep.subr.mxu1 %v7323_v0 }
  0x79   :  { %4614 = vmatpush3.msra.mxu1 %v5693_v59 }
  0x7a   :  { %4615 = vmatprep.subr.mxu1 %v7323_v0 }
  0x7b   :  { %4616 = vmatpush3.msra.mxu1 %v5699_v60 }
  0x7c   :  { %4617 = vmatprep.subr.mxu1 %v7323_v0 }
  0x7d   :  { %4618 = vmatpush3.msra.mxu1 %v5705_v61 }
  0x7e   :  { %4619 = vmatprep.subr.mxu1 %v7323_v0 }
  0x7f   :  { %4620 = vmatpush3.msra.mxu1 %v5711_v62  ;;  %v7336_v62 = vsub.s32 2, %v5773_v1 }
  0x80   :  { %4624 = vmatprep.subr.mxu1 %v7323_v0 }
  0xe9   :  { %v195_v4 = vpop.f32.mrf.mxu0 }
  0xeb   :  { %v197_v10 = vpop.f32.mrf.mxu0 }
  0xed   :  { %v201_v19 = vpop.f32.mrf.mxu0 }
  0xee   :  { %v5784_v25 = vadd.f32 %v201_v19, %v92_v15  ;;  %v100_v19 = vrot.slane %v87_v3, %v7336_v62  ;;  %v196_v62 = vadd.f32 %v195_v4, %v92_v15 }
  0xef   :  { %v203_v27 = vpop.f32.mrf.mxu0 }
  0xf0   :  { %7387 = vst [vmem:[#allocation17_spill] sm:$0xff] %v5784_v25  ;;  %v5786_v32 = vadd.f32 %v203_v27, %v96_v21 }
  0xf1   :  { %v207_v38 = vpop.f32.mrf.mxu0 }
  0xf2   :  { %7388 = vst [vmem:[#allocation18_spill] sm:$0xff] %v5786_v32  ;;  %v5788_v44 = vadd.f32 %v207_v38, %v92_v15 }
  0xf3   :  { %v209_v63 = vpop.f32.mrf.mxu0 }
  0xf4   :  { %7389 = vst [vmem:[#allocation19_spill] sm:$0xff] %v5788_v44  ;;  %v5790_v0 = vadd.f32 %v209_v63, %v96_v21  ;;  %v4544_v44 = vpop.f32.mrf.mxu1 }
  0xf5   :  { %v213_v6 = vpop.f32.mrf.mxu0 }
  0xf6   :  { %7390 = vst [vmem:[#allocation20_spill] sm:$0xff] %v5790_v0  ;;  %v5793_v49 = vadd.f32 %v213_v6, %v92_v15  ;;  %v5803_v0 = vadd.f32 %v4544_v44, %v100_v19 }
  0xf7   :  { %v215_v2 = vpop.f32.mrf.mxu0 }
  0xf8   :  { %7391 = vst [vmem:[#allocation21_spill] sm:$0xff] %v5793_v49  ;;  %v5795_v47 = vadd.f32 %v215_v2, %v96_v21  ;;  %7395 = vst [vmem:[#allocation25_spill] sm:$0xff] %v5803_v0 }
  0xf9   :  { %v219_v5 = vpop.f32.mrf.mxu0 }
  0xfa   :  { %7392 = vst [vmem:[#allocation22_spill] sm:$0xff] %v5795_v47  ;;  %v5799_v27 = vadd.f32 %v219_v5, %v92_v15 }
  0xfb   :  { %v221_v32 = vpop.f32.mrf.mxu0 }
  0xfc   :  { %7393 = vst [vmem:[#allocation23_spill] sm:$0xff] %v5799_v27  ;;  %v5801_v38 = vadd.f32 %v221_v32, %v96_v21 }
  0xfd   :  { %v225_v63 = vpop.f32.mrf.mxu0 }
  0xfe   :  { %7394 = vst [vmem:[#allocation24_spill] sm:$0xff] %v5801_v38  ;;  %v5805_v25 = vadd.f32 %v225_v63, %v92_v15  ;;  %v308_v63 = vpop.f32.mrf.mxu1 }
  0xff   :  { %v227_v6 = vpop.f32.mrf.mxu0 }
 0x100   :  { %7396 = vst [vmem:[#allocation26_spill] sm:$0xff] %v5805_v25  ;;  %v5807_v49 = vadd.f32 %v227_v6, %v96_v21 }
 0x101   :  { %v231_v2 = vpop.f32.mrf.mxu0 }
 0x102   :  { %7397 = vst [vmem:[#allocation27_spill] sm:$0xff] %v5807_v49  ;;  %v5809_v47 = vadd.f32 %v231_v2, %v92_v15  ;;  %v198_v49 = vadd.f32 %v197_v10, %v96_v21  ;;  %v5832_v10 = vld [vmem:[%s7317_s4] ss:$0 sm:$0xff] }
 0x103   :  { %v233_v61 = vpop.f32.mrf.mxu0 }
 0x104   :  { %7398 = vst [vmem:[#allocation28_spill] sm:$0xff] %v5809_v47  ;;  %v5811_v1 = vadd.f32 %v233_v61, %v96_v21 }
 0x105   :  { %v237_v3 = vpop.f32.mrf.mxu0 }
 0x106   :  { %7399 = vst [vmem:[#allocation29_spill] sm:$0xff] %v5811_v1  ;;  %v5813_v5 = vadd.f32 %v237_v3, %v92_v15 }
 0x107   :  { %v239_v32 = vpop.f32.mrf.mxu0 }
 0x108   :  { %7400 = vst [vmem:[#allocation30_spill] sm:$0xff] %v5813_v5  ;;  %v5815_v38 = vadd.f32 %v239_v32, %v96_v21 }
 0x109   :  { %v492_v44 = vpop.f32.mrf.mxu0 }
 0x10a   :  { %7401 = vst [vmem:[#allocation31_spill] sm:$0xff] %v5815_v38  ;;  %v567_v27 = vadd.f32 %v492_v44, %v196_v62  ;;  %v4547_v0 = vpop.f32.mrf.mxu1 }
 0x10b   :  { %v5817_v6 = vadd.f32 %v4547_v0, %v100_v19  ;;  %v494_v3 = vpop.f32.mrf.mxu0 }
 0x10c   :  { %v4191_v25 = vmul.f32 -1.442695, %v567_v27  ;;  %v318_v2 = vpop.f32.mrf.mxu1  ;;  %v574_v32 = vadd.f32 %v494_v3, %v198_v49  ;;  %v309_v3 = vadd.f32 %v308_v63, %v100_v19 }
 0x10d   :  { %v5819_v47 = vadd.f32 %v318_v2, %v100_v19 }
 0x10e   :  { %5165 = vpow2.f32 %v4191_v25  ;;  %v4550_v61 = vpop.f32.mrf.mxu1  ;;  %v4192_v0 = vmul.f32 -1.442695, %v574_v32 }
 0x10f   :  { %v5821_v1 = vadd.f32 %v4550_v61, %v100_v19 }
 0x110   :  { %v328_v5 = vpop.f32.mrf.mxu1  ;;  %5167 = vpow2.f32 %v4192_v0 }
 0x111   :  { %7402 = vst [vmem:[#allocation32_spill] sm:$0xff] %v5821_v1  ;;  %v5823_v4 = vadd.f32 %v328_v5, %v100_v19 }
 0x112   :  { %v4553_v15 = vpop.f32.mrf.mxu1 }
 0x113   :  { %7403 = vst [vmem:[#allocation33_spill] sm:$0xff] %v5823_v4  ;;  %v5825_v62 = vadd.f32 %v4553_v15, %v100_v19 }
 0x114   :  { %v338_v27 = vpop.f32.mrf.mxu1 }
 0x115   :  { %7404 = vst [vmem:[#allocation34_spill] sm:$0xff] %v5825_v62  ;;  %v5827_v44 = vadd.f32 %v338_v27, %v100_v19  ;;  %v7407_v19 = vmov 0.0  }
 0x117   :  { %7405 = vst [vmem:[#allocation35_spill] sm:$0xff] %v5827_v44 }
 0x11b   :  { %v5166_v25 = vpop.eup %5165 }
 0x11c   :  { %v571_v38 = vadd.f32 1.0, %v5166_v25 }
 0x11d   :  { %v5168_v49 = vpop.eup %5167 }
 0x11e   :  { %5169 = vrcp.f32 %v571_v38  ;;  %v578_v27 = vadd.f32 1.0, %v5168_v49 }
 0x120   :  { %v563_v2 = vpop.f32.mrf.mxu1 }
 0x121   :  { %v587_v21 = vadd.f32 %v5832_v10, %v563_v2 }
 0x122   :  { %v4588_v61 = vpop.f32.mrf.mxu1 }
 0x12b   :  { %v5170_v5 = vpop.eup %5169 }
 0x12c   :  { %v588_v15 = vmul.f32 %v5170_v5, %v587_v21  ;;  %v7415_v5 = vld [vmem:[#allocation25_spill] sm:$0xff] }
 0x12e   :  { %v589_v62 = vadd.f32 %v588_v15, %v309_v3 }
 0x130   :  { %5171 = vtanh.f32 %v589_v62 }
 0x131   :  { %5173 = vrcp.f32 %v578_v27 }
 0x13d   :  { %v5172_v32 = vpop.eup %5171 }
 0x13e   :  { %v591_v0 = vsub.f32 0.0, %v5172_v32  ;;  %v5174_v38 = vpop.eup %5173 }
 0x140   :  { %v592_v25 = vmul.f32 %v5174_v38, %v591_v0 }
 0x142   :  { %v5835_v61 = vadd.f32 %v5172_v32, %v592_v25 }
 0x144   :  { %7406 = vst [vmem:[#allocation36_spill] sm:$0xff] %v5835_v61  ;;  %714 = vmatmul.mubr.f32.vlgmr.msra.gmra.mxu0 %v5835_v61  ;;  %4622 = vmatmul.mubr.f32.vlgmr.msra.gmra.mxu1 %v5835_v61 }
 0x145   :  { %868 = vmatpush1.msra.mxu0 %v5476_v7  ;;  %4625 = vmatpush3.msra.mxu1 %v5584_v36 }
 0x146   :  { %869 = vmatprep.subr.mxu0 %v5478_v8  ;;  %4626 = vmatprep.subr.mxu1 %v7407_v19 }
 0x147   :  { %870 = vmatpush1.msra.mxu0 %v5482_v9  ;;  %4627 = vmatpush3.msra.mxu1 %v5606_v42 }
 0x148   :  { %871 = vmatprep.subr.mxu0 %v5489_v11  ;;  %4628 = vmatprep.subr.mxu1 %v7407_v19 }
 0x149   :  { %872 = vmatpush1.msra.mxu0 %v5492_v12  ;;  %4629 = vmatpush3.msra.mxu1 %v5627_v48 }
 0x14a   :  { %873 = vmatprep.subr.mxu0 %v5495_v13  ;;  %4630 = vmatprep.subr.mxu1 %v7407_v19 }
 0x14b   :  { %874 = vmatpush1.msra.mxu0 %v5499_v14  ;;  %4631 = vmatpush3.msra.mxu1 %v5635_v50 }
 0x14c   :  { %875 = vmatprep.subr.mxu0 %v5508_v16  ;;  %4632 = vmatprep.subr.mxu1 %v7407_v19 }
 0x14d   :  { %876 = vmatpush1.msra.mxu0 %v5511_v17  ;;  %4633 = vmatpush3.msra.mxu1 %v5641_v51 }
 0x14e   :  { %877 = vmatprep.subr.mxu0 %v5514_v18  ;;  %4634 = vmatprep.subr.mxu1 %v7407_v19 }
 0x14f   :  { %878 = vmatpush1.msra.mxu0 %v5522_v20  ;;  %4635 = vmatpush3.msra.mxu1 %v5646_v52 }
 0x150   :  { %879 = vmatprep.subr.mxu0 %v5531_v22  ;;  %4636 = vmatprep.subr.mxu1 %v7407_v19 }
 0x151   :  { %880 = vmatpush1.msra.mxu0 %v5534_v23  ;;  %4637 = vmatpush3.msra.mxu1 %v5653_v53 }
 0x152   :  { %881 = vmatprep.subr.mxu0 %v5537_v24  ;;  %4638 = vmatprep.subr.mxu1 %v7407_v19  ;;  %v7408_v24 = vld [vmem:[#allocation14_spill] sm:$0xff] }
 0x153   :  { %882 = vmatpush1.msra.mxu0 %v5545_v26  ;;  %4639 = vmatpush3.msra.mxu1 %v5661_v54  ;;  %v7409_v26 = vld [vmem:[#allocation12_spill] sm:$0xff] }
 0x154   :  { %883 = vmatprep.subr.mxu0 %v5554_v28  ;;  %4640 = vmatprep.subr.mxu1 %v7407_v19  ;;  %v7410_v28 = vld [vmem:[#allocation13_spill] sm:$0xff] }
 0x155   :  { %884 = vmatpush1.msra.mxu0 %v5557_v29  ;;  %4641 = vmatpush3.msra.mxu1 %v5667_v55  ;;  %v7411_v29 = vld [vmem:[#allocation15_spill] sm:$0xff] }
 0x156   :  { %885 = vmatprep.subr.mxu0 %v5560_v30  ;;  %4642 = vmatprep.subr.mxu1 %v7407_v19  ;;  %v7412_v30 = vld [vmem:[#allocation11_spill] sm:$0xff] }
 0x157   :  { %886 = vmatpush1.msra.mxu0 %v5565_v31  ;;  %4643 = vmatpush3.msra.mxu1 %v5674_v56 }
 0x158   :  { %887 = vmatprep.subr.mxu0 %v5574_v33  ;;  %4644 = vmatprep.subr.mxu1 %v7407_v19 }
 0x159   :  { %888 = vmatpush1.msra.mxu0 %v5577_v34  ;;  %4645 = vmatpush3.msra.mxu1 %v5680_v57  ;;  %v7413_v34 = vld [vmem:[#allocation17_spill] sm:$0xff] }
 0x15a   :  { %889 = vmatprep.subr.mxu0 %v5581_v35  ;;  %4646 = vmatprep.subr.mxu1 %v7407_v19 }
 0x15b   :  { %890 = vmatpush1.msra.mxu0 %v5589_v37  ;;  %4647 = vmatpush3.msra.mxu1 %v5687_v58 }
 0x15c   :  { %891 = vmatprep.subr.mxu0 %v5596_v39  ;;  %4648 = vmatprep.subr.mxu1 %v7407_v19 }
 0x15d   :  { %892 = vmatpush1.msra.mxu0 %v5599_v40  ;;  %4649 = vmatpush3.msra.mxu1 %v5693_v59 }
 0x15e   :  { %893 = vmatprep.subr.mxu0 %v5603_v41  ;;  %4650 = vmatprep.subr.mxu1 %v7407_v19  ;;  %v7414_v41 = vld [vmem:[#allocation18_spill] sm:$0xff] }
 0x15f   :  { %894 = vmatpush1.msra.mxu0 %v5610_v43  ;;  %4651 = vmatpush3.msra.mxu1 %v5699_v60 }
 0x160   :  { %895 = vmatprep.subr.mxu0 %v5617_v45  ;;  %4652 = vmatprep.subr.mxu1 %v7407_v19 }
 0x161   :  { %896 = vmatpush1.msra.mxu0 %v5620_v46  ;;  %4653 = vmatpush3.msra.mxu1 %v7408_v24 }
 0x162   :  { %897 = vmatprep.subr.mxu0 %v7409_v26  ;;  %4654 = vmatprep.subr.mxu1 %v7407_v19 }
 0x163   :  { %898 = vmatpush1.msra.mxu0 %v7410_v28  ;;  %931 = vmatprep.mubr.f32.mxu0 %v7407_v19 }
 0x164   :  { %4655 = vmatpush3.msra.mxu1 %v7411_v29  ;;  %4656 = vmatprep.mubr.msk.f32.mxu1 %vm5397_vm1, %v7407_v19 }
 0x165   :  { %1085 = vmatprep.subr.mxu0 %v7412_v30  ;;  %4659 = vmatprep.subr.mxu1 %v7407_v19 }
 0x204   :  { %v715_v31 = vpop.f32.mrf.mxu0  ;;  %v786_v33 = vpop.f32.mrf.mxu1 }
 0x205   :  { %v790_v35 = vadd.f32 %v715_v31, %v7413_v34  ;;  %v804_v2 = vadd.f32 %v5832_v10, %v786_v33 }
 0x206   :  { %v4623_v37 = vpop.f32.mrf.mxu1  ;;  %v717_v40 = vpop.f32.mrf.mxu0 }
 0x207   :  { %v4194_v39 = vmul.f32 -1.442695, %v790_v35  ;;  %v797_v43 = vadd.f32 %v717_v40, %v7414_v41 }
 0x209   :  { %5175 = vpow2.f32 %v4194_v39  ;;  %v4195_v45 = vmul.f32 -1.442695, %v797_v43 }
 0x20b   :  { %5177 = vpow2.f32 %v4195_v45  ;;  %v6032_v45 = vld [vmem:[#allocation4 + $0x168] sm:$0xff] }
 0x216   :  { %v5176_v46 = vpop.eup %5175 }
 0x217   :  { %v794_v63 = vadd.f32 1.0, %v5176_v46  ;;  %v6034_v46 = vld [vmem:[#allocation4 + $0x178] sm:$0xff] }
 0x218   :  { %v5178_v62 = vpop.eup %5177 }
 0x219   :  { %5179 = vrcp.f32 %v794_v63  ;;  %v801_v15 = vadd.f32 1.0, %v5178_v62  ;;  %v6038_v63 = vld [vmem:[#allocation4 + $0x158] sm:$0xff]  ;;  %v6042_v62 = vld [vmem:[#allocation4 + $0x150] sm:$0xff] }
 0x226   :  { %v5180_v21 = vpop.eup %5179 }
 0x227   :  { %v805_v49 = vmul.f32 %v5180_v21, %v804_v2  ;;  %v6044_v2 = vld [vmem:[#allocation4 + $0x160] sm:$0xff] }
 0x228   :  { %v6048_v21 = vld [vmem:[#allocation4 + $0x140] sm:$0xff] }
 0x229   :  { %v806_v3 = vadd.f32 %v805_v49, %v7415_v5  ;;  %v6052_v49 = vld [vmem:[#allocation4 + $0x138] sm:$0xff]  ;;  %v6054_v5 = vld [vmem:[#allocation4 + $0x148] sm:$0xff] }
 0x22b   :  { %5181 = vtanh.f32 %v806_v3  ;;  %v6058_v3 = vld [vmem:[#allocation4 + $0x128] sm:$0xff] }
 0x22c   :  { %5183 = vrcp.f32 %v801_v15  ;;  %v6062_v15 = vld [vmem:[#allocation4 + $0x120] sm:$0xff] }
 0x238   :  { %v5182_v27 = vpop.eup %5181 }
 0x239   :  { %v808_v32 = vsub.f32 %v5835_v61, %v5182_v27  ;;  %v5184_v0 = vpop.eup %5183 }
 0x23b   :  { %v809_v38 = vmul.f32 %v5184_v0, %v808_v32  ;;  %v6068_v32 = vld [vmem:[#allocation4 + $0x110] sm:$0xff]  ;;  %v6072_v0 = vld [vmem:[#allocation4 + $0x108] sm:$0xff] }
 0x23d   :  { %v5911_v25 = vadd.f32 %v5182_v27, %v809_v38  ;;  %v6064_v27 = vld [vmem:[#allocation4 + $0x130] sm:$0xff]  ;;  %v6074_v38 = vld [vmem:[#allocation4 + $0x118] sm:$0xff] }
 0x23f   :  { %7416 = vst [vmem:[#allocation14_spill] sm:$0xff] %v5911_v25  ;;  %932 = vmatmul.mubr.f32.vlgmr.msra.gmra.mxu0 %v5911_v25  ;;  %4657 = vmatmul.mubr.f32.vlgmr.msra.gmra.mxu1 %v5911_v25 }
 0x240   :  { %1086 = vmatpush1.msra.mxu0 %v5476_v7  ;;  %4660 = vmatpush3.msra.mxu1 %v5584_v36  ;;  %v5963_v7 = vld [vmem:[#allocation4 + $0xc8] sm:$0xff]  ;;  %v6000_v36 = vld [vmem:[#allocation4 + $0x30] sm:$0xff] }
 0x241   :  { %1087 = vmatprep.subr.mxu0 %v5478_v8  ;;  %4661 = vmatprep.subr.mxu1 %v7407_v19  ;;  %v5965_v8 = vld [vmem:[#allocation4 + $0xc0] sm:$0xff] }
 0x242   :  { %1088 = vmatpush1.msra.mxu0 %v5482_v9  ;;  %4662 = vmatpush3.msra.mxu1 %v5606_v42  ;;  %v5967_v9 = vld [vmem:[#allocation4 + $0xb0] sm:$0xff]  ;;  %v6003_v42 = vld [vmem:[#allocation4 + $0x20] sm:$0xff] }
 0x243   :  { %1089 = vmatprep.subr.mxu0 %v5489_v11  ;;  %4663 = vmatprep.subr.mxu1 %v7407_v19  ;;  %v5970_v11 = vld [vmem:[#allocation4 + $0xa8] sm:$0xff] }
 0x244   :  { %1090 = vmatpush1.msra.mxu0 %v5492_v12  ;;  %4664 = vmatpush3.msra.mxu1 %v5627_v48  ;;  %v5973_v12 = vld [vmem:[#allocation4 + $0x98] sm:$0xff] }
 0x245   :  { %1091 = vmatprep.subr.mxu0 %v5495_v13  ;;  %4665 = vmatprep.subr.mxu1 %v7407_v19  ;;  %v5976_v13 = vld [vmem:[#allocation4 + $0x90] sm:$0xff]  ;;  %v6006_v48 = vld [vmem:[#allocation4 + $0x18] sm:$0xff] }
 0x246   :  { %1092 = vmatpush1.msra.mxu0 %v5499_v14  ;;  %4666 = vmatpush3.msra.mxu1 %v5635_v50  ;;  %v5979_v14 = vld [vmem:[#allocation4 + $0x80] sm:$0xff]  ;;  %7417 = vst [vmem:[#allocation12_spill] sm:$0xff] %v6006_v48  ;;  %v6009_v50 = vld [vmem:[#allocation4 + $0x8] sm:$0xff] }
 0x247   :  { %1093 = vmatprep.subr.mxu0 %v5508_v16  ;;  %4667 = vmatprep.subr.mxu1 %v7407_v19  ;;  %v5982_v16 = vld [vmem:[#allocation4 + $0x78] sm:$0xff]  ;;  %7418 = vst [vmem:[#allocation13_spill] sm:$0xff] %v6009_v50 }
 0x248   :  { %1094 = vmatpush1.msra.mxu0 %v5511_v17  ;;  %4668 = vmatpush3.msra.mxu1 %v5641_v51  ;;  %v5985_v17 = vld [vmem:[#allocation4 + $0x68] sm:$0xff]  ;;  %v6012_v51 = vld [vmem:[#allocation4] sm:$0xff] }
 0x249   :  { %1095 = vmatprep.subr.mxu0 %v5514_v18  ;;  %4669 = vmatprep.subr.mxu1 %v7407_v19  ;;  %v5988_v18 = vld [vmem:[#allocation4 + $0x60] sm:$0xff]  ;;  %7419 = vst [vmem:[#allocation15_spill] sm:$0xff] %v6012_v51 }
 0x24a   :  { %1096 = vmatpush1.msra.mxu0 %v5522_v20  ;;  %4670 = vmatpush3.msra.mxu1 %v5646_v52  ;;  %v5991_v20 = vld [vmem:[#allocation4 + $0x50] sm:$0xff] }
 0x24b   :  { %1097 = vmatprep.subr.mxu0 %v5531_v22  ;;  %4671 = vmatprep.subr.mxu1 %v7407_v19  ;;  %v5994_v22 = vld [vmem:[#allocation4 + $0x48] sm:$0xff] }
 0x24c   :  { %1098 = vmatpush1.msra.mxu0 %v5534_v23  ;;  %4672 = vmatpush3.msra.mxu1 %v5653_v53  ;;  %v5997_v23 = vld [vmem:[#allocation4 + $0x38] sm:$0xff] }
 0x24d   :  { %4673 = vmatprep.subr.mxu1 %v7407_v19  ;;  %1149 = vmatprep.mubr.f32.mxu0 %v7407_v19 }
 0x24e   :  { %4674 = vmatpush3.msra.mxu1 %v5661_v54  ;;  %4691 = vmatprep.mubr.msk.f32.mxu1 %vm5397_vm1, %v7407_v19  ;;  %v7420_v54 = vld [vmem:[#allocation19_spill] sm:$0xff] }
 0x24f   :  { %4675 = vmatprep.subr.mxu1 %v7407_v19  ;;  %1099 = vmatprep.subr.mxu0 %v5963_v7 }
 0x250   :  { %4676 = vmatpush3.msra.mxu1 %v5667_v55  ;;  %1100 = vmatpush1.msra.mxu0 %v5965_v8 }
 0x251   :  { %4677 = vmatprep.subr.mxu1 %v7407_v19  ;;  %1101 = vmatprep.subr.mxu0 %v5967_v9 }
 0x252   :  { %4678 = vmatpush3.msra.mxu1 %v5674_v56  ;;  %1102 = vmatpush1.msra.mxu0 %v5970_v11 }
 0x253   :  { %4679 = vmatprep.subr.mxu1 %v7407_v19  ;;  %1103 = vmatprep.subr.mxu0 %v5973_v12 }
 0x254   :  { %4680 = vmatpush3.msra.mxu1 %v5680_v57  ;;  %1104 = vmatpush1.msra.mxu0 %v5976_v13 }
 0x255   :  { %4681 = vmatprep.subr.mxu1 %v7407_v19  ;;  %1105 = vmatprep.subr.mxu0 %v5979_v14 }
 0x256   :  { %4682 = vmatpush3.msra.mxu1 %v5687_v58  ;;  %1106 = vmatpush1.msra.mxu0 %v5982_v16 }
 0x257   :  { %4683 = vmatprep.subr.mxu1 %v7407_v19  ;;  %1107 = vmatprep.subr.mxu0 %v5985_v17 }
 0x258   :  { %4684 = vmatpush3.msra.mxu1 %v5693_v59  ;;  %1108 = vmatpush1.msra.mxu0 %v5988_v18  ;;  %v7421_v59 = vld [vmem:[#allocation20_spill] sm:$0xff] }
 0x259   :  { %4685 = vmatprep.subr.mxu1 %v7407_v19  ;;  %1109 = vmatprep.subr.mxu0 %v5991_v20 }
 0x25a   :  { %4686 = vmatpush3.msra.mxu1 %v5699_v60  ;;  %1110 = vmatpush1.msra.mxu0 %v5994_v22 }
 0x25b   :  { %4687 = vmatprep.subr.mxu1 %v7407_v19  ;;  %1111 = vmatprep.subr.mxu0 %v5997_v23 }
 0x25c   :  { %4688 = vmatpush3.msra.mxu1 %v7408_v24  ;;  %1112 = vmatpush1.msra.mxu0 %v6000_v36 }
 0x25d   :  { %4689 = vmatprep.subr.mxu1 %v7407_v19  ;;  %1113 = vmatprep.subr.mxu0 %v6003_v42 }
 0x25e   :  { %4690 = vmatpush3.msra.mxu1 %v7411_v29  ;;  %1114 = vmatpush1.msra.mxu0 %v6006_v48 }
 0x25f   :  { %4694 = vmatprep.subr.mxu1 %v7407_v19  ;;  %1115 = vmatprep.subr.mxu0 %v6009_v50 }
 0x260   :  { %1116 = vmatpush1.msra.mxu0 %v6012_v51 }
 0x2ff   :  { %v933_v52 = vpop.f32.mrf.mxu0  ;;  %v1004_v53 = vpop.f32.mrf.mxu1 }
 0x300   :  { %v1008_v55 = vadd.f32 %v933_v52, %v7420_v54  ;;  %v1022_v30 = vadd.f32 %v5832_v10, %v1004_v53  ;;  %v6078_v52 = vld [vmem:[#allocation4 + $0xf8] sm:$0xff]  ;;  %v6082_v53 = vld [vmem:[#allocation4 + $0xf0] sm:$0xff]  ;;  %v6084_v54 = vld [vmem:[#allocation4 + $0x100] sm:$0xff] }
 0x301   :  { %v4658_v56 = vpop.f32.mrf.mxu1  ;;  %v935_v58 = vpop.f32.mrf.mxu0 }
 0x302   :  { %v4196_v57 = vmul.f32 -1.442695, %v1008_v55  ;;  %v1015_v60 = vadd.f32 %v935_v58, %v7421_v59  ;;  %v6088_v55 = vld [vmem:[#allocation4 + $0xe0] sm:$0xff]  ;;  %v6092_v56 = vld [vmem:[#allocation4 + $0xd8] sm:$0xff]  ;;  %v6096_v58 = vld [vmem:[#allocation4 + $0xd0] sm:$0xff] }
 0x303   :  { %v6102_v59 = vld [vmem:[#allocation4 + $0xb8] sm:$0xff] }
 0x304   :  { %5185 = vpow2.f32 %v4196_v57  ;;  %v4197_v24 = vmul.f32 -1.442695, %v1015_v60  ;;  %v6094_v57 = vld [vmem:[#allocation4 + $0xe8] sm:$0xff]  ;;  %v6108_v60 = vld [vmem:[#allocation4 + $0xa0] sm:$0xff] }
 0x306   :  { %5187 = vpow2.f32 %v4197_v24  ;;  %v6114_v24 = vld [vmem:[#allocation4 + $0x88] sm:$0xff] }
 0x311   :  { %v5186_v26 = vpop.eup %5185 }
 0x312   :  { %v1012_v28 = vadd.f32 1.0, %v5186_v26  ;;  %v6120_v26 = vld [vmem:[#allocation4 + $0x70] sm:$0xff] }
 0x313   :  { %v5188_v29 = vpop.eup %5187 }
 0x314   :  { %5189 = vrcp.f32 %v1012_v28  ;;  %v1019_v35 = vadd.f32 1.0, %v5188_v29  ;;  %v6126_v28 = vld [vmem:[#allocation4 + $0x58] sm:$0xff]  ;;  %v6132_v29 = vld [vmem:[#allocation4 + $0x40] sm:$0xff] }
 0x321   :  { %v5190_v31 = vpop.eup %5189 }
 0x322   :  { %v1023_v33 = vmul.f32 %v5190_v31, %v1022_v30  ;;  %v6138_v30 = vld [vmem:[#allocation4 + $0x28] sm:$0xff]  ;;  %v6144_v31 = vld [vmem:[#allocation4 + $0x10] sm:$0xff] }
 0x323   :  { %7424 = vst [vmem:[#allocation18_spill] sm:$0xff] %v6138_v30  ;;  %7425 = vst [vmem:[#allocation25_spill] sm:$0xff] %v6144_v31 }
 0x324   :  { %v1024_v34 = vadd.f32 %v1023_v33, %v5819_v47  ;;  %v6029_v47 = vld [vmem:[#allocation4 + $0x170] sm:$0xff] }
 0x325   :  { %7423 = vst [vmem:[#allocation17_spill] sm:$0xff] %v6029_v47  ;;  %1303 = vmatprep.subr.mxu0 %v6029_v47 }
 0x326   :  { %5191 = vtanh.f32 %v1024_v34 }
 0x327   :  { %5193 = vrcp.f32 %v1019_v35  ;;  %v7426_v35 = vld [vmem:[#allocation21_spill] sm:$0xff] }
 0x333   :  { %v5192_v37 = vpop.eup %5191 }
 0x334   :  { %v1026_v39 = vsub.f32 %v5911_v25, %v5192_v37  ;;  %v5194_v40 = vpop.eup %5193  ;;  %v7427_v25 = vld [vmem:[#allocation22_spill] sm:$0xff] }
 0x336   :  { %v1027_v41 = vmul.f32 %v5194_v40, %v1026_v39 }
 0x338   :  { %v6022_v43 = vadd.f32 %v5192_v37, %v1027_v41 }
 0x33a   :  { %7422 = vst [vmem:[#allocation11_spill] sm:$0xff] %v6022_v43  ;;  %1150 = vmatmul.mubr.f32.vlgmr.msra.gmra.mxu0 %v6022_v43  ;;  %4692 = vmatmul.mubr.f32.vlgmr.msra.gmra.mxu1 %v6022_v43 }
 0x33b   :  { %1367 = vmatprep.mubr.f32.mxu0 %v7407_v19  ;;  %4726 = vmatprep.mubr.msk.f32.mxu1 %vm5397_vm1, %v7407_v19 }
 0x33c   :  { %1304 = vmatpush1.msra.mxu0 %v6032_v45  ;;  %4695 = vmatpush3.msra.mxu1 %v6034_v46 }
 0x33d   :  { %1305 = vmatprep.subr.mxu0 %v6038_v63  ;;  %4696 = vmatprep.subr.mxu1 %v7407_v19 }
 0x33e   :  { %1306 = vmatpush1.msra.mxu0 %v6042_v62  ;;  %4697 = vmatpush3.msra.mxu1 %v6044_v2 }
 0x33f   :  { %1307 = vmatprep.subr.mxu0 %v6048_v21  ;;  %4698 = vmatprep.subr.mxu1 %v7407_v19 }
 0x340   :  { %1308 = vmatpush1.msra.mxu0 %v6052_v49  ;;  %4699 = vmatpush3.msra.mxu1 %v6054_v5 }
 0x341   :  { %1309 = vmatprep.subr.mxu0 %v6058_v3  ;;  %4700 = vmatprep.subr.mxu1 %v7407_v19 }
 0x342   :  { %1310 = vmatpush1.msra.mxu0 %v6062_v15  ;;  %4701 = vmatpush3.msra.mxu1 %v6064_v27 }
 0x343   :  { %1311 = vmatprep.subr.mxu0 %v6068_v32  ;;  %4702 = vmatprep.subr.mxu1 %v7407_v19 }
 0x344   :  { %1312 = vmatpush1.msra.mxu0 %v6072_v0  ;;  %4703 = vmatpush3.msra.mxu1 %v6074_v38 }
 0x345   :  { %1313 = vmatprep.subr.mxu0 %v6078_v52  ;;  %4704 = vmatprep.subr.mxu1 %v7407_v19 }
 0x346   :  { %1314 = vmatpush1.msra.mxu0 %v6082_v53  ;;  %4705 = vmatpush3.msra.mxu1 %v6084_v54 }
 0x347   :  { %1315 = vmatprep.subr.mxu0 %v6088_v55  ;;  %4706 = vmatprep.subr.mxu1 %v7407_v19 }
 0x348   :  { %1316 = vmatpush1.msra.mxu0 %v6092_v56  ;;  %4707 = vmatpush3.msra.mxu1 %v6094_v57 }
 0x349   :  { %1317 = vmatprep.subr.mxu0 %v5963_v7  ;;  %4708 = vmatprep.subr.mxu1 %v7407_v19 }
 0x34a   :  { %1318 = vmatpush1.msra.mxu0 %v5965_v8  ;;  %4709 = vmatpush3.msra.mxu1 %v6096_v58 }
 0x34b   :  { %1319 = vmatprep.subr.mxu0 %v5967_v9  ;;  %4710 = vmatprep.subr.mxu1 %v7407_v19 }
 0x34c   :  { %1320 = vmatpush1.msra.mxu0 %v5970_v11  ;;  %4711 = vmatpush3.msra.mxu1 %v6102_v59 }
 0x34d   :  { %1321 = vmatprep.subr.mxu0 %v5973_v12  ;;  %4712 = vmatprep.subr.mxu1 %v7407_v19 }
 0x34e   :  { %1322 = vmatpush1.msra.mxu0 %v5976_v13  ;;  %4713 = vmatpush3.msra.mxu1 %v6108_v60 }
 0x34f   :  { %1323 = vmatprep.subr.mxu0 %v5979_v14  ;;  %4714 = vmatprep.subr.mxu1 %v7407_v19 }
 0x350   :  { %1324 = vmatpush1.msra.mxu0 %v5982_v16  ;;  %4715 = vmatpush3.msra.mxu1 %v6114_v24 }
 0x351   :  { %1325 = vmatprep.subr.mxu0 %v5985_v17  ;;  %4716 = vmatprep.subr.mxu1 %v7407_v19 }
 0x352   :  { %1326 = vmatpush1.msra.mxu0 %v5988_v18  ;;  %4717 = vmatpush3.msra.mxu1 %v6120_v26 }
 0x353   :  { %1327 = vmatprep.subr.mxu0 %v5991_v20  ;;  %4718 = vmatprep.subr.mxu1 %v7407_v19 }
 0x354   :  { %1328 = vmatpush1.msra.mxu0 %v5994_v22  ;;  %4719 = vmatpush3.msra.mxu1 %v6126_v28 }
 0x355   :  { %1329 = vmatprep.subr.mxu0 %v5997_v23  ;;  %4720 = vmatprep.subr.mxu1 %v7407_v19 }
 0x356   :  { %1330 = vmatpush1.msra.mxu0 %v6000_v36  ;;  %4721 = vmatpush3.msra.mxu1 %v6132_v29 }
 0x357   :  { %1331 = vmatprep.subr.mxu0 %v6003_v42  ;;  %4722 = vmatprep.subr.mxu1 %v7407_v19 }
 0x358   :  { %1332 = vmatpush1.msra.mxu0 %v6006_v48  ;;  %4723 = vmatpush3.msra.mxu1 %v6138_v30 }
 0x359   :  { %1333 = vmatprep.subr.mxu0 %v6009_v50  ;;  %4724 = vmatprep.subr.mxu1 %v7407_v19 }
 0x35a   :  { %1334 = vmatpush1.msra.mxu0 %v6012_v51  ;;  %4725 = vmatpush3.msra.mxu1 %v6144_v31 }
 0x35b   :  { %1521 = vmatprep.subr.mxu0 %v6029_v47  ;;  %4729 = vmatprep.subr.mxu1 %v7407_v19 }
 0x3fa   :  { %v1151_v33 = vpop.f32.mrf.mxu0  ;;  %v1222_v34 = vpop.f32.mrf.mxu1 }
 0x3fb   :  { %v1226_v37 = vadd.f32 %v1151_v33, %v7426_v35  ;;  %v1240_v47 = vadd.f32 %v5832_v10, %v1222_v34 }
 0x3fc   :  { %v4693_v39 = vpop.f32.mrf.mxu1  ;;  %v1153_v41 = vpop.f32.mrf.mxu0 }
 0x3fd   :  { %v4198_v40 = vmul.f32 -1.442695, %v1226_v37  ;;  %v1233_v61 = vadd.f32 %v1153_v41, %v7427_v25  ;;  %v7435_v41 = vld [vmem:[#allocation24_spill] sm:$0xff] }
 0x3ff   :  { %5195 = vpow2.f32 %v4198_v40  ;;  %v4199_v44 = vmul.f32 -1.442695, %v1233_v61 }
 0x401   :  { %5197 = vpow2.f32 %v4199_v44  ;;  %v7431_v44 = vld [vmem:[#allocation15_spill] sm:$0xff] }
 0x40c   :  { %v5196_v1 = vpop.eup %5195 }
 0x40d   :  { %v1230_v4 = vadd.f32 1.0, %v5196_v1  ;;  %v7428_v1 = vld [vmem:[#allocation12_spill] sm:$0xff] }
 0x40e   :  { %v5198_v31 = vpop.eup %5197 }
 0x40f   :  { %5199 = vrcp.f32 %v1230_v4  ;;  %v1237_v48 = vadd.f32 1.0, %v5198_v31  ;;  %v7430_v4 = vld [vmem:[#allocation13_spill] sm:$0xff] }
 0x41c   :  { %v5200_v51 = vpop.eup %5199 }
 0x41d   :  { %v1241_v50 = vmul.f32 %v5200_v51, %v1240_v47 }
 0x41f   :  { %v1242_v30 = vadd.f32 %v1241_v50, %v5817_v6  ;;  %v7429_v6 = vld [vmem:[#allocation18_spill] sm:$0xff]  ;;  %v7433_v50 = vld [vmem:[#allocation17_spill] sm:$0xff] }
 0x421   :  { %5201 = vtanh.f32 %v1242_v30  ;;  %v7434_v30 = vld [vmem:[#allocation23_spill] sm:$0xff] }
 0x422   :  { %5203 = vrcp.f32 %v1237_v48  ;;  %v7432_v48 = vld [vmem:[#allocation25_spill] sm:$0xff] }
 0x42e   :  { %v5202_v33 = vpop.eup %5201 }
 0x42f   :  { %v1244_v35 = vsub.f32 %v6022_v43, %v5202_v33  ;;  %v5204_v37 = vpop.eup %5203 }
 0x431   :  { %v1245_v25 = vmul.f32 %v5204_v37, %v1244_v35 }
 0x433   :  { %v6159_v61 = vadd.f32 %v5202_v33, %v1245_v25 }
 0x435   :  { %1368 = vmatmul.mubr.f32.vlgmr.msra.gmra.mxu0 %v6159_v61  ;;  %4727 = vmatmul.mubr.f32.vlgmr.msra.gmra.mxu1 %v6159_v61 }
 0x436   :  { %1522 = vmatpush1.msra.mxu0 %v6032_v45  ;;  %4730 = vmatpush3.msra.mxu1 %v6034_v46 }
 0x437   :  { %1523 = vmatprep.subr.mxu0 %v6038_v63  ;;  %4731 = vmatprep.subr.mxu1 %v7407_v19 }
 0x438   :  { %1524 = vmatpush1.msra.mxu0 %v6042_v62  ;;  %4732 = vmatpush3.msra.mxu1 %v6044_v2 }
 0x439   :  { %1525 = vmatprep.subr.mxu0 %v6048_v21  ;;  %4733 = vmatprep.subr.mxu1 %v7407_v19 }
 0x43a   :  { %1526 = vmatpush1.msra.mxu0 %v6052_v49  ;;  %4734 = vmatpush3.msra.mxu1 %v6054_v5 }
 0x43b   :  { %1527 = vmatprep.subr.mxu0 %v6058_v3  ;;  %4735 = vmatprep.subr.mxu1 %v7407_v19 }
 0x43c   :  { %1528 = vmatpush1.msra.mxu0 %v6062_v15  ;;  %4736 = vmatpush3.msra.mxu1 %v6064_v27 }
 0x43d   :  { %1529 = vmatprep.subr.mxu0 %v6068_v32  ;;  %4737 = vmatprep.subr.mxu1 %v7407_v19 }
 0x43e   :  { %1530 = vmatpush1.msra.mxu0 %v6072_v0  ;;  %4738 = vmatpush3.msra.mxu1 %v6074_v38 }
 0x43f   :  { %1531 = vmatprep.subr.mxu0 %v6078_v52  ;;  %4739 = vmatprep.subr.mxu1 %v7407_v19 }
 0x440   :  { %1532 = vmatpush1.msra.mxu0 %v6082_v53  ;;  %4740 = vmatpush3.msra.mxu1 %v6084_v54 }
 0x441   :  { %1533 = vmatprep.subr.mxu0 %v6088_v55  ;;  %4741 = vmatprep.subr.mxu1 %v7407_v19 }
 0x442   :  { %1534 = vmatpush1.msra.mxu0 %v6092_v56  ;;  %4742 = vmatpush3.msra.mxu1 %v6094_v57 }
 0x443   :  { %1535 = vmatprep.subr.mxu0 %v5963_v7  ;;  %4743 = vmatprep.subr.mxu1 %v7407_v19 }
 0x444   :  { %1536 = vmatpush1.msra.mxu0 %v5965_v8  ;;  %4744 = vmatpush3.msra.mxu1 %v6096_v58 }
 0x445   :  { %1537 = vmatprep.subr.mxu0 %v5967_v9  ;;  %4745 = vmatprep.subr.mxu1 %v7407_v19 }
 0x446   :  { %1538 = vmatpush1.msra.mxu0 %v5970_v11  ;;  %4746 = vmatpush3.msra.mxu1 %v6102_v59 }
 0x447   :  { %1539 = vmatprep.subr.mxu0 %v5973_v12  ;;  %4747 = vmatprep.subr.mxu1 %v7407_v19 }
 0x448   :  { %1540 = vmatpush1.msra.mxu0 %v5976_v13  ;;  %4748 = vmatpush3.msra.mxu1 %v6108_v60 }
 0x449   :  { %1541 = vmatprep.subr.mxu0 %v5979_v14  ;;  %4749 = vmatprep.subr.mxu1 %v7407_v19 }
 0x44a   :  { %1542 = vmatpush1.msra.mxu0 %v5982_v16  ;;  %4750 = vmatpush3.msra.mxu1 %v6114_v24 }
 0x44b   :  { %1543 = vmatprep.subr.mxu0 %v5985_v17  ;;  %4751 = vmatprep.subr.mxu1 %v7407_v19 }
 0x44c   :  { %1544 = vmatpush1.msra.mxu0 %v5988_v18  ;;  %4752 = vmatpush3.msra.mxu1 %v6120_v26 }
 0x44d   :  { %1545 = vmatprep.subr.mxu0 %v5991_v20  ;;  %4753 = vmatprep.subr.mxu1 %v7407_v19 }
 0x44e   :  { %1546 = vmatpush1.msra.mxu0 %v5994_v22  ;;  %4754 = vmatpush3.msra.mxu1 %v6126_v28 }
 0x44f   :  { %1547 = vmatprep.subr.mxu0 %v5997_v23  ;;  %4755 = vmatprep.subr.mxu1 %v7407_v19 }
 0x450   :  { %1548 = vmatpush1.msra.mxu0 %v6000_v36  ;;  %4756 = vmatpush3.msra.mxu1 %v6132_v29 }
 0x451   :  { %1549 = vmatprep.subr.mxu0 %v6003_v42  ;;  %4757 = vmatprep.subr.mxu1 %v7407_v19 }
 0x452   :  { %1550 = vmatpush1.msra.mxu0 %v7428_v1  ;;  %4758 = vmatpush3.msra.mxu1 %v7429_v6 }
 0x453   :  { %1551 = vmatprep.subr.mxu0 %v7430_v4  ;;  %4759 = vmatprep.subr.mxu1 %v7407_v19  ;;  %v7436_v4 = vld [vmem:[#allocation33_spill] sm:$0xff] }
 0x454   :  { %1552 = vmatpush1.msra.mxu0 %v7431_v44  ;;  %1585 = vmatprep.mubr.f32.mxu0 %v7407_v19 }
 0x455   :  { %4760 = vmatpush3.msra.mxu1 %v7432_v48  ;;  %4761 = vmatprep.mubr.msk.f32.mxu1 %vm5397_vm1, %v7407_v19 }
 0x456   :  { %1739 = vmatprep.subr.mxu0 %v7433_v50  ;;  %4764 = vmatprep.subr.mxu1 %v7407_v19 }
 0x4f5   :  { %v1369_v51 = vpop.f32.mrf.mxu0  ;;  %v1440_v47 = vpop.f32.mrf.mxu1 }
 0x4f6   :  { %v1444_v31 = vadd.f32 %v1369_v51, %v7434_v30  ;;  %v1458_v50 = vadd.f32 %v5832_v10, %v1440_v47  ;;  %v7437_v10 = vld [vmem:[#allocation12_spill] sm:$0xff] }
 0x4f7   :  { %v4728_v34 = vpop.f32.mrf.mxu1  ;;  %v1371_v40 = vpop.f32.mrf.mxu0  ;;  %v7445_v47 = vld [vmem:[#allocation32_spill] sm:$0xff] }
 0x4f8   :  { %v4200_v39 = vmul.f32 -1.442695, %v1444_v31  ;;  %v1451_v33 = vadd.f32 %v1371_v40, %v7435_v41 }
 0x4fa   :  { %5205 = vpow2.f32 %v4200_v39  ;;  %v4201_v35 = vmul.f32 -1.442695, %v1451_v33 }
 0x4fc   :  { %5207 = vpow2.f32 %v4201_v35 }
 0x507   :  { %v5206_v37 = vpop.eup %5205 }
 0x508   :  { %v1448_v25 = vadd.f32 1.0, %v5206_v37 }
 0x509   :  { %v5208_v43 = vpop.eup %5207 }
 0x50a   :  { %5209 = vrcp.f32 %v1448_v25  ;;  %v1455_v1 = vadd.f32 1.0, %v5208_v43 }
 0x517   :  { %v5210_v48 = vpop.eup %5209 }
 0x518   :  { %v1459_v44 = vmul.f32 %v5210_v48, %v1458_v50 }
 0x51a   :  { %v1460_v6 = vadd.f32 %v1459_v44, %v7436_v4  ;;  %v6311_v4 = vld [vmem:[%s7317_s4] ss:$0 sm:$0xff] }
 0x51c   :  { %5211 = vtanh.f32 %v1460_v6 }
 0x51d   :  { %5213 = vrcp.f32 %v1455_v1 }
 0x529   :  { %v5212_v51 = vpop.eup %5211 }
 0x52a   :  { %v1462_v30 = vsub.f32 %v6159_v61, %v5212_v51  ;;  %v5214_v31 = vpop.eup %5213 }
 0x52c   :  { %v1463_v34 = vmul.f32 %v5214_v31, %v1462_v30  ;;  %v7447_v30 = vld [vmem:[#allocation29_spill] sm:$0xff] }
 0x52e   :  { %v6235_v39 = vadd.f32 %v5212_v51, %v1463_v34 }
 0x530   :  { %1586 = vmatmul.mubr.f32.vlgmr.msra.gmra.mxu0 %v6235_v39  ;;  %4762 = vmatmul.mubr.f32.vlgmr.msra.gmra.mxu1 %v6235_v39 }
 0x531   :  { %1740 = vmatpush1.msra.mxu0 %v6032_v45  ;;  %4765 = vmatpush3.msra.mxu1 %v6034_v46 }
 0x532   :  { %1741 = vmatprep.subr.mxu0 %v6038_v63  ;;  %4766 = vmatprep.subr.mxu1 %v7407_v19 }
 0x533   :  { %1742 = vmatpush1.msra.mxu0 %v6042_v62  ;;  %4767 = vmatpush3.msra.mxu1 %v6044_v2 }
 0x534   :  { %1743 = vmatprep.subr.mxu0 %v6048_v21  ;;  %4768 = vmatprep.subr.mxu1 %v7407_v19 }
 0x535   :  { %1744 = vmatpush1.msra.mxu0 %v6052_v49  ;;  %4769 = vmatpush3.msra.mxu1 %v6054_v5 }
 0x536   :  { %1745 = vmatprep.subr.mxu0 %v6058_v3  ;;  %4770 = vmatprep.subr.mxu1 %v7407_v19 }
 0x537   :  { %1746 = vmatpush1.msra.mxu0 %v6062_v15  ;;  %4771 = vmatpush3.msra.mxu1 %v6064_v27 }
 0x538   :  { %1747 = vmatprep.subr.mxu0 %v6068_v32  ;;  %4772 = vmatprep.subr.mxu1 %v7407_v19 }
 0x539   :  { %1748 = vmatpush1.msra.mxu0 %v6072_v0  ;;  %4773 = vmatpush3.msra.mxu1 %v6074_v38 }
 0x53a   :  { %1749 = vmatprep.subr.mxu0 %v6078_v52  ;;  %4774 = vmatprep.subr.mxu1 %v7407_v19 }
 0x53b   :  { %1750 = vmatpush1.msra.mxu0 %v6082_v53  ;;  %4775 = vmatpush3.msra.mxu1 %v6084_v54 }
 0x53c   :  { %1751 = vmatprep.subr.mxu0 %v6088_v55  ;;  %4776 = vmatprep.subr.mxu1 %v7407_v19 }
 0x53d   :  { %1752 = vmatpush1.msra.mxu0 %v6092_v56  ;;  %4777 = vmatpush3.msra.mxu1 %v6094_v57 }
 0x53e   :  { %1753 = vmatprep.subr.mxu0 %v5963_v7  ;;  %4778 = vmatprep.subr.mxu1 %v7407_v19  ;;  %v7438_v7 = vld [vmem:[#allocation18_spill] sm:$0xff] }
 0x53f   :  { %1754 = vmatpush1.msra.mxu0 %v5965_v8  ;;  %4779 = vmatpush3.msra.mxu1 %v6096_v58  ;;  %v7439_v8 = vld [vmem:[#allocation13_spill] sm:$0xff] }
 0x540   :  { %1755 = vmatprep.subr.mxu0 %v5967_v9  ;;  %4780 = vmatprep.subr.mxu1 %v7407_v19  ;;  %v7440_v9 = vld [vmem:[#allocation15_spill] sm:$0xff] }
 0x541   :  { %1756 = vmatpush1.msra.mxu0 %v5970_v11  ;;  %4781 = vmatpush3.msra.mxu1 %v6102_v59  ;;  %v7441_v11 = vld [vmem:[#allocation25_spill] sm:$0xff] }
 0x542   :  { %1757 = vmatprep.subr.mxu0 %v5973_v12  ;;  %4782 = vmatprep.subr.mxu1 %v7407_v19  ;;  %v7442_v12 = vld [vmem:[#allocation17_spill] sm:$0xff] }
 0x543   :  { %1758 = vmatpush1.msra.mxu0 %v5976_v13  ;;  %4783 = vmatpush3.msra.mxu1 %v6108_v60 }
 0x544   :  { %1759 = vmatprep.subr.mxu0 %v5979_v14  ;;  %4784 = vmatprep.subr.mxu1 %v7407_v19 }
 0x545   :  { %1760 = vmatpush1.msra.mxu0 %v5982_v16  ;;  %4785 = vmatpush3.msra.mxu1 %v6114_v24  ;;  %v7443_v16 = vld [vmem:[#allocation26_spill] sm:$0xff] }
 0x546   :  { %1761 = vmatprep.subr.mxu0 %v5985_v17  ;;  %4786 = vmatprep.subr.mxu1 %v7407_v19 }
 0x547   :  { %1762 = vmatpush1.msra.mxu0 %v5988_v18  ;;  %4787 = vmatpush3.msra.mxu1 %v6120_v26 }
 0x548   :  { %1763 = vmatprep.subr.mxu0 %v5991_v20  ;;  %4788 = vmatprep.subr.mxu1 %v7407_v19 }
 0x549   :  { %1764 = vmatpush1.msra.mxu0 %v5994_v22  ;;  %4789 = vmatpush3.msra.mxu1 %v6126_v28 }
 0x54a   :  { %1765 = vmatprep.subr.mxu0 %v5997_v23  ;;  %4790 = vmatprep.subr.mxu1 %v7407_v19  ;;  %v7444_v23 = vld [vmem:[#allocation27_spill] sm:$0xff] }
 0x54b   :  { %1766 = vmatpush1.msra.mxu0 %v6000_v36  ;;  %4791 = vmatpush3.msra.mxu1 %v6132_v29 }
 0x54c   :  { %1767 = vmatprep.subr.mxu0 %v6003_v42  ;;  %4792 = vmatprep.subr.mxu1 %v7407_v19 }
 0x54d   :  { %1768 = vmatpush1.msra.mxu0 %v7437_v10  ;;  %4793 = vmatpush3.msra.mxu1 %v7438_v7 }
 0x54e   :  { %1769 = vmatprep.subr.mxu0 %v7439_v8  ;;  %4794 = vmatprep.subr.mxu1 %v7407_v19 }
 0x54f   :  { %1770 = vmatpush1.msra.mxu0 %v7440_v9  ;;  %1803 = vmatprep.mubr.f32.mxu0 %v7407_v19 }
 0x550   :  { %4795 = vmatpush3.msra.mxu1 %v7441_v11  ;;  %4796 = vmatprep.mubr.msk.f32.mxu1 %vm5397_vm1, %v7407_v19 }
 0x551   :  { %1957 = vmatprep.subr.mxu0 %v7442_v12  ;;  %4799 = vmatprep.subr.mxu1 %v7407_v19 }
 0x5f0   :  { %v1587_v13 = vpop.f32.mrf.mxu0  ;;  %v1658_v14 = vpop.f32.mrf.mxu1 }
 0x5f1   :  { %v1662_v17 = vadd.f32 %v1587_v13, %v7443_v16  ;;  %v1676_v44 = vadd.f32 %v6311_v4, %v1658_v14  ;;  %v7448_v13 = vld [vmem:[#allocation35_spill] sm:$0xff] }
 0x5f2   :  { %v4763_v18 = vpop.f32.mrf.mxu1  ;;  %v1589_v22 = vpop.f32.mrf.mxu0 }
 0x5f3   :  { %v4202_v20 = vmul.f32 -1.442695, %v1662_v17  ;;  %v1669_v36 = vadd.f32 %v1589_v22, %v7444_v23 }
 0x5f5   :  { %5215 = vpow2.f32 %v4202_v20  ;;  %v4203_v42 = vmul.f32 -1.442695, %v1669_v36  ;;  %v2174_v36 = vld [vmem:[#allocation6 + $0x168] sm:$0xff] }
 0x5f7   :  { %5217 = vpow2.f32 %v4203_v42  ;;  %v2172_v42 = vld [vmem:[#allocation6 + $0x158] sm:$0xff] }
 0x602   :  { %v5216_v43 = vpop.eup %5215 }
 0x603   :  { %v1666_v1 = vadd.f32 1.0, %v5216_v43  ;;  %v2173_v43 = vld [vmem:[#allocation6 + $0x160] sm:$0xff] }
 0x604   :  { %v5218_v6 = vpop.eup %5217 }
 0x605   :  { %5219 = vrcp.f32 %v1666_v1  ;;  %v1673_v41 = vadd.f32 1.0, %v5218_v6  ;;  %v2171_v1 = vld [vmem:[#allocation6 + $0x150] sm:$0xff]  ;;  %v2169_v6 = vld [vmem:[#allocation6 + $0x140] sm:$0xff] }
 0x612   :  { %v5220_v48 = vpop.eup %5219 }
 0x613   :  { %v1677_v50 = vmul.f32 %v5220_v48, %v1676_v44  ;;  %v2170_v44 = vld [vmem:[#allocation6 + $0x148] sm:$0xff]  ;;  %v2168_v48 = vld [vmem:[#allocation6 + $0x138] sm:$0xff] }
 0x615   :  { %v1678_v40 = vadd.f32 %v1677_v50, %v7445_v47  ;;  %v7449_v50 = vld [vmem:[#allocation36_spill] sm:$0xff] }
 0x616   :  { %v2166_v47 = vld [vmem:[#allocation6 + $0x128] sm:$0xff] }
 0x617   :  { %5221 = vtanh.f32 %v1678_v40  ;;  %v2167_v40 = vld [vmem:[#allocation6 + $0x130] sm:$0xff] }
 0x618   :  { %5223 = vrcp.f32 %v1673_v41  ;;  %v2165_v41 = vld [vmem:[#allocation6 + $0x120] sm:$0xff] }
 0x624   :  { %v5222_v33 = vpop.eup %5221 }
 0x625   :  { %v1680_v35 = vsub.f32 %v6235_v39, %v5222_v33  ;;  %v5224_v37 = vpop.eup %5223 }
 0x627   :  { %v1681_v25 = vmul.f32 %v5224_v37, %v1680_v35  ;;  %v2164_v35 = vld [vmem:[#allocation6 + $0x118] sm:$0xff]  ;;  %v2162_v37 = vld [vmem:[#allocation6 + $0x108] sm:$0xff] }
 0x629   :  { %v6316_v51 = vadd.f32 %v5222_v33, %v1681_v25  ;;  %v2163_v33 = vld [vmem:[#allocation6 + $0x110] sm:$0xff]  ;;  %v2160_v25 = vld [vmem:[#allocation6 + $0xf8] sm:$0xff] }
 0x62b   :  { %1804 = vmatmul.mubr.f32.vlgmr.msra.gmra.mxu0 %v6316_v51  ;;  %4797 = vmatmul.mubr.f32.vlgmr.msra.gmra.mxu1 %v6316_v51 }
 0x62c   :  { %1958 = vmatpush1.msra.mxu0 %v6032_v45  ;;  %4800 = vmatpush3.msra.mxu1 %v6034_v46  ;;  %v1934_v45 = vld [vmem:[#allocation4 + $0xc8] sm:$0xff]  ;;  %v1933_v46 = vld [vmem:[#allocation4 + $0xc0] sm:$0xff] }
 0x62d   :  { %1959 = vmatprep.subr.mxu0 %v6038_v63  ;;  %4801 = vmatprep.subr.mxu1 %v7407_v19  ;;  %v1931_v63 = vld [vmem:[#allocation4 + $0xb0] sm:$0xff] }
 0x62e   :  { %1960 = vmatpush1.msra.mxu0 %v6042_v62  ;;  %4802 = vmatpush3.msra.mxu1 %v6044_v2  ;;  %v1930_v62 = vld [vmem:[#allocation4 + $0xa8] sm:$0xff]  ;;  %v1928_v2 = vld [vmem:[#allocation4 + $0x98] sm:$0xff] }
 0x62f   :  { %1961 = vmatprep.subr.mxu0 %v6048_v21  ;;  %4803 = vmatprep.subr.mxu1 %v7407_v19  ;;  %v1927_v21 = vld [vmem:[#allocation4 + $0x90] sm:$0xff] }
 0x630   :  { %1962 = vmatpush1.msra.mxu0 %v6052_v49  ;;  %4804 = vmatpush3.msra.mxu1 %v6054_v5  ;;  %v1925_v49 = vld [vmem:[#allocation4 + $0x80] sm:$0xff]  ;;  %v1924_v5 = vld [vmem:[#allocation4 + $0x78] sm:$0xff] }
 0x631   :  { %1963 = vmatprep.subr.mxu0 %v6058_v3  ;;  %4805 = vmatprep.subr.mxu1 %v7407_v19  ;;  %v1922_v3 = vld [vmem:[#allocation4 + $0x68] sm:$0xff] }
 0x632   :  { %1964 = vmatpush1.msra.mxu0 %v6062_v15  ;;  %4806 = vmatpush3.msra.mxu1 %v6064_v27  ;;  %v2176_v15 = vld [vmem:[#allocation6 + $0x178] sm:$0xff]  ;;  %v1921_v27 = vld [vmem:[#allocation4 + $0x60] sm:$0xff] }
 0x633   :  { %1965 = vmatprep.subr.mxu0 %v6068_v32  ;;  %4807 = vmatprep.subr.mxu1 %v7407_v19  ;;  %v1919_v32 = vld [vmem:[#allocation4 + $0x50] sm:$0xff] }
 0x634   :  { %1966 = vmatpush1.msra.mxu0 %v6072_v0  ;;  %4808 = vmatpush3.msra.mxu1 %v6074_v38  ;;  %v1918_v0 = vld [vmem:[#allocation4 + $0x48] sm:$0xff]  ;;  %v1916_v38 = vld [vmem:[#allocation4 + $0x38] sm:$0xff] }
 0x635   :  { %1967 = vmatprep.subr.mxu0 %v6078_v52  ;;  %4809 = vmatprep.subr.mxu1 %v7407_v19  ;;  %v1915_v52 = vld [vmem:[#allocation4 + $0x30] sm:$0xff] }
 0x636   :  { %1968 = vmatpush1.msra.mxu0 %v6082_v53  ;;  %4810 = vmatpush3.msra.mxu1 %v6084_v54  ;;  %v1913_v53 = vld [vmem:[#allocation4 + $0x20] sm:$0xff]  ;;  %v1912_v54 = vld [vmem:[#allocation4 + $0x18] sm:$0xff] }
 0x637   :  { %1969 = vmatprep.subr.mxu0 %v6088_v55  ;;  %4811 = vmatprep.subr.mxu1 %v7407_v19  ;;  %v1910_v55 = vld [vmem:[#allocation4 + $0x8] sm:$0xff] }
 0x638   :  { %1970 = vmatpush1.msra.mxu0 %v6092_v56  ;;  %4812 = vmatpush3.msra.mxu1 %v6094_v57  ;;  %v1909_v56 = vld [vmem:[#allocation4] sm:$0xff]  ;;  %v2175_v57 = vld [vmem:[#allocation6 + $0x170] sm:$0xff] }
 0x639   :  { %4813 = vmatprep.subr.mxu1 %v7407_v19  ;;  %2021 = vmatprep.mubr.f32.mxu0 %v7407_v19 }
 0x63a   :  { %4814 = vmatpush3.msra.mxu1 %v6096_v58  ;;  %4831 = vmatprep.mubr.msk.f32.mxu1 %vm5397_vm1, %v7407_v19 }
 0x63b   :  { %4815 = vmatprep.subr.mxu1 %v7407_v19  ;;  %1971 = vmatprep.subr.mxu0 %v1934_v45  ;;  %v2161_v45 = vld [vmem:[#allocation6 + $0x100] sm:$0xff] }
 0x63c   :  { %4816 = vmatpush3.msra.mxu1 %v6102_v59  ;;  %1972 = vmatpush1.msra.mxu0 %v1933_v46  ;;  %v2159_v46 = vld [vmem:[#allocation6 + $0xf0] sm:$0xff] }
 0x63d   :  { %4817 = vmatprep.subr.mxu1 %v7407_v19  ;;  %1973 = vmatprep.subr.mxu0 %v1931_v63  ;;  %v2157_v63 = vld [vmem:[#allocation6 + $0xe0] sm:$0xff] }
 0x63e   :  { %4818 = vmatpush3.msra.mxu1 %v6108_v60  ;;  %1974 = vmatpush1.msra.mxu0 %v1930_v62  ;;  %v7446_v60 = vld [vmem:[#allocation28_spill] sm:$0xff] }
 0x63f   :  { %4819 = vmatprep.subr.mxu1 %v7407_v19  ;;  %1975 = vmatprep.subr.mxu0 %v1928_v2  ;;  %v2158_v62 = vld [vmem:[#allocation6 + $0xe8] sm:$0xff]  ;;  %v2156_v2 = vld [vmem:[#allocation6 + $0xd8] sm:$0xff] }
 0x640   :  { %4820 = vmatpush3.msra.mxu1 %v6114_v24  ;;  %1976 = vmatpush1.msra.mxu0 %v1927_v21  ;;  %v2154_v21 = vld [vmem:[#allocation6 + $0xc8] sm:$0xff] }
 0x641   :  { %4821 = vmatprep.subr.mxu1 %v7407_v19  ;;  %1977 = vmatprep.subr.mxu0 %v1925_v49  ;;  %v2155_v49 = vld [vmem:[#allocation6 + $0xd0] sm:$0xff] }
 0x642   :  { %4822 = vmatpush3.msra.mxu1 %v6120_v26  ;;  %1978 = vmatpush1.msra.mxu0 %v1924_v5  ;;  %v2153_v5 = vld [vmem:[#allocation6 + $0xc0] sm:$0xff] }
 0x643   :  { %4823 = vmatprep.subr.mxu1 %v7407_v19  ;;  %1979 = vmatprep.subr.mxu0 %v1922_v3  ;;  %v2151_v3 = vld [vmem:[#allocation6 + $0xb0] sm:$0xff] }
 0x644   :  { %4824 = vmatpush3.msra.mxu1 %v6126_v28  ;;  %1980 = vmatpush1.msra.mxu0 %v1921_v27  ;;  %v2150_v27 = vld [vmem:[#allocation6 + $0xa8] sm:$0xff] }
 0x645   :  { %4825 = vmatprep.subr.mxu1 %v7407_v19  ;;  %1981 = vmatprep.subr.mxu0 %v1919_v32  ;;  %v2148_v32 = vld [vmem:[#allocation6 + $0x98] sm:$0xff] }
 0x646   :  { %4826 = vmatpush3.msra.mxu1 %v6132_v29  ;;  %1982 = vmatpush1.msra.mxu0 %v1918_v0  ;;  %v2149_v0 = vld [vmem:[#allocation6 + $0xa0] sm:$0xff] }
 0x647   :  { %4827 = vmatprep.subr.mxu1 %v7407_v19  ;;  %1983 = vmatprep.subr.mxu0 %v1916_v38  ;;  %v2147_v38 = vld [vmem:[#allocation6 + $0x90] sm:$0xff] }
 0x648   :  { %4828 = vmatpush3.msra.mxu1 %v7438_v7  ;;  %1984 = vmatpush1.msra.mxu0 %v1915_v52  ;;  %v2145_v52 = vld [vmem:[#allocation6 + $0x80] sm:$0xff] }
 0x649   :  { %4829 = vmatprep.subr.mxu1 %v7407_v19  ;;  %1985 = vmatprep.subr.mxu0 %v1913_v53  ;;  %v2146_v53 = vld [vmem:[#allocation6 + $0x88] sm:$0xff] }
 0x64a   :  { %4830 = vmatpush3.msra.mxu1 %v7441_v11  ;;  %1986 = vmatpush1.msra.mxu0 %v1912_v54  ;;  %v2144_v54 = vld [vmem:[#allocation6 + $0x78] sm:$0xff] }
 0x64b   :  { %4834 = vmatprep.subr.mxu1 %v2176_v15  ;;  %1987 = vmatprep.subr.mxu0 %v1910_v55  ;;  %v2142_v55 = vld [vmem:[#allocation6 + $0x68] sm:$0xff] }
 0x64c   :  { %1988 = vmatpush1.msra.mxu0 %v1909_v56  ;;  %v2143_v56 = vld [vmem:[#allocation6 + $0x70] sm:$0xff] }
 0x64d   :  { %2194 = vmatprep.subr.mxu0 %v2175_v57  ;;  %v2141_v57 = vld [vmem:[#allocation6 + $0x60] sm:$0xff] }
 0x6eb   :  { %v1805_v58 = vpop.f32.mrf.mxu0  ;;  %v1876_v59 = vpop.f32.mrf.mxu1 }
 0x6ec   :  { %v1880_v24 = vadd.f32 %v1805_v58, %v7446_v60  ;;  %v1894_v9 = vadd.f32 %v6311_v4, %v1876_v59  ;;  %v2139_v58 = vld [vmem:[#allocation6 + $0x50] sm:$0xff]  ;;  %v2140_v59 = vld [vmem:[#allocation6 + $0x58] sm:$0xff]  ;;  %v2138_v60 = vld [vmem:[#allocation6 + $0x48] sm:$0xff] }
 0x6ed   :  { %v4798_v26 = vpop.f32.mrf.mxu1  ;;  %v1807_v29 = vpop.f32.mrf.mxu0 }
 0x6ee   :  { %v4204_v28 = vmul.f32 -1.442695, %v1880_v24  ;;  %v1887_v31 = vadd.f32 %v1807_v29, %v7447_v30  ;;  %v2136_v24 = vld [vmem:[#allocation6 + $0x38] sm:$0xff]  ;;  %v2137_v26 = vld [vmem:[#allocation6 + $0x40] sm:$0xff]  ;;  %v2134_v30 = vld [vmem:[#allocation6 + $0x28] sm:$0xff] }
 0x6ef   :  { %v2133_v29 = vld [vmem:[#allocation6 + $0x20] sm:$0xff] }
 0x6f0   :  { %5225 = vpow2.f32 %v4204_v28  ;;  %v4205_v34 = vmul.f32 -1.442695, %v1887_v31  ;;  %v2135_v28 = vld [vmem:[#allocation6 + $0x30] sm:$0xff]  ;;  %v2132_v31 = vld [vmem:[#allocation6 + $0x18] sm:$0xff] }
 0x6f2   :  { %5227 = vpow2.f32 %v4205_v34  ;;  %v2130_v34 = vld [vmem:[#allocation6 + $0x8] sm:$0xff] }
 0x6fd   :  { %v5226_v10 = vpop.eup %5225 }
 0x6fe   :  { %v1884_v7 = vadd.f32 1.0, %v5226_v10  ;;  %v2131_v10 = vld [vmem:[#allocation6 + $0x10] sm:$0xff] }
 0x6ff   :  { %v5228_v8 = vpop.eup %5227 }
 0x700   :  { %5229 = vrcp.f32 %v1884_v7  ;;  %v1891_v16 = vadd.f32 1.0, %v5228_v8  ;;  %v2129_v7 = vld [vmem:[#allocation6] sm:$0xff]  ;;  %v7450_v8 = vld [vmem:[#allocation14_spill] sm:$0xff] }
 0x70d   :  { %v5230_v11 = vpop.eup %5229 }
 0x70e   :  { %v1895_v12 = vmul.f32 %v5230_v11, %v1894_v9  ;;  %v7451_v9 = vld [vmem:[#allocation11_spill] sm:$0xff]  ;;  %v6399_v11 = vld [vmem:[#allocation8 + $0x170] sm:$0xff] }
 0x70f   :  { %7452 = vst [vmem:[#allocation19_spill] sm:$0xff] %v6399_v11 }
 0x710   :  { %v1896_v14 = vadd.f32 %v1895_v12, %v7448_v13  ;;  %v6402_v12 = vld [vmem:[#allocation8 + $0x168] sm:$0xff]  ;;  %v6414_v13 = vld [vmem:[#allocation8 + $0x138] sm:$0xff] }
 0x712   :  { %5231 = vtanh.f32 %v1896_v14  ;;  %v6417_v14 = vld [vmem:[#allocation8 + $0x128] sm:$0xff] }
 0x713   :  { %5233 = vrcp.f32 %v1891_v16  ;;  %v6420_v16 = vld [vmem:[#allocation8 + $0x120] sm:$0xff] }
 0x71f   :  { %v5232_v17 = vpop.eup %5231 }
 0x720   :  { %v1898_v18 = vsub.f32 %v6316_v51, %v5232_v17  ;;  %v5234_v20 = vpop.eup %5233 }
 0x722   :  { %v1899_v22 = vmul.f32 %v5234_v20, %v1898_v18  ;;  %v6426_v18 = vld [vmem:[#allocation8 + $0x108] sm:$0xff]  ;;  %v6429_v20 = vld [vmem:[#allocation8 + $0xf8] sm:$0xff] }
 0x724   :  { %v6372_v23 = vadd.f32 %v5232_v17, %v1899_v22  ;;  %v6423_v17 = vld [vmem:[#allocation8 + $0x110] sm:$0xff] }
 0x725   :  { %v6432_v22 = vld [vmem:[#allocation8 + $0xf0] sm:$0xff] }
 0x726   :  { %2022 = vmatmul.mubr.f32.vlgmr.msra.gmra.mxu0 %v6372_v23  ;;  %4832 = vmatmul.mubr.f32.vlgmr.msra.gmra.mxu1 %v6372_v23 }
 0x727   :  { %2195 = vmatpush1.msra.mxu0 %v2174_v36  ;;  %4835 = vmatpush3.msra.mxu1 %v2176_v15  ;;  %v2152_v15 = vld [vmem:[#allocation6 + $0xb8] sm:$0xff]  ;;  %v6435_v36 = vld [vmem:[#allocation8 + $0xe0] sm:$0xff] }
 0x728   :  { %2196 = vmatprep.subr.mxu0 %v2172_v42  ;;  %4836 = vmatprep.subr.mxu1 %v2173_v43  ;;  %v6438_v42 = vld [vmem:[#allocation8 + $0xd8] sm:$0xff] }
 0x729   :  { %4866 = vmatprep.mubr.f32.mxu1 %v7449_v50  ;;  %2197 = vmatpush1.msra.mxu0 %v2171_v1  ;;  %v6444_v1 = vld [vmem:[#allocation8 + $0xc0] sm:$0xff] }
 0x72a   :  { %4837 = vmatpush3.msra.mxu1 %v2173_v43  ;;  %2198 = vmatprep.subr.mxu0 %v2169_v6  ;;  %v6441_v43 = vld [vmem:[#allocation8 + $0xc8] sm:$0xff]  ;;  %v6447_v6 = vld [vmem:[#allocation8 + $0xb0] sm:$0xff] }
 0x72b   :  { %4838 = vmatprep.subr.mxu1 %v2170_v44  ;;  %2199 = vmatpush1.msra.mxu0 %v2168_v48  ;;  %v6453_v48 = vld [vmem:[#allocation8 + $0x98] sm:$0xff] }
 0x72c   :  { %4839 = vmatpush3.msra.mxu1 %v2170_v44  ;;  %2200 = vmatprep.subr.mxu0 %v2166_v47  ;;  %v6450_v44 = vld [vmem:[#allocation8 + $0xa8] sm:$0xff]  ;;  %v6459_v47 = vld [vmem:[#allocation8 + $0x80] sm:$0xff] }
 0x72d   :  { %4840 = vmatprep.subr.mxu1 %v2167_v40  ;;  %2201 = vmatpush1.msra.mxu0 %v2165_v41  ;;  %v6465_v41 = vld [vmem:[#allocation8 + $0x68] sm:$0xff] }
 0x72e   :  { %4841 = vmatpush3.msra.mxu1 %v2167_v40  ;;  %2202 = vmatprep.subr.mxu0 %v2163_v33  ;;  %v6462_v40 = vld [vmem:[#allocation8 + $0x78] sm:$0xff]  ;;  %v6468_v33 = vld [vmem:[#allocation8 + $0x60] sm:$0xff] }
 0x72f   :  { %4842 = vmatprep.subr.mxu1 %v2164_v35  ;;  %2203 = vmatpush1.msra.mxu0 %v2162_v37  ;;  %v6474_v37 = vld [vmem:[#allocation8 + $0x48] sm:$0xff] }
 0x730   :  { %4843 = vmatpush3.msra.mxu1 %v2164_v35  ;;  %2204 = vmatprep.subr.mxu0 %v2160_v25  ;;  %v6471_v35 = vld [vmem:[#allocation8 + $0x50] sm:$0xff]  ;;  %v6477_v25 = vld [vmem:[#allocation8 + $0x38] sm:$0xff] }
 0x731   :  { %4844 = vmatprep.subr.mxu1 %v2161_v45  ;;  %2205 = vmatpush1.msra.mxu0 %v2159_v46  ;;  %v6483_v46 = vld [vmem:[#allocation8 + $0x20] sm:$0xff] }
 0x732   :  { %4845 = vmatpush3.msra.mxu1 %v2161_v45  ;;  %2206 = vmatprep.subr.mxu0 %v2157_v63  ;;  %v6480_v45 = vld [vmem:[#allocation8 + $0x30] sm:$0xff]  ;;  %v6485_v63 = vld [vmem:[#allocation8 + $0x18] sm:$0xff] }
 0x733   :  { %4846 = vmatprep.subr.mxu1 %v2158_v62  ;;  %2207 = vmatpush1.msra.mxu0 %v2156_v2  ;;  %7453 = vst [vmem:[#allocation20_spill] sm:$0xff] %v6485_v63  ;;  %v6490_v2 = vld [vmem:[#allocation8] sm:$0xff] }
 0x734   :  { %4847 = vmatpush3.msra.mxu1 %v2158_v62  ;;  %2208 = vmatprep.subr.mxu0 %v2154_v21  ;;  %v6487_v62 = vld [vmem:[#allocation8 + $0x8] sm:$0xff]  ;;  %7455 = vst [vmem:[#allocation22_spill] sm:$0xff] %v6490_v2  ;;  %v6494_v21 = vld [vmem:[#allocation8 + $0x178] sm:$0xff] }
 0x735   :  { %4848 = vmatprep.subr.mxu1 %v2155_v49  ;;  %2209 = vmatpush1.msra.mxu0 %v2153_v5  ;;  %7454 = vst [vmem:[#allocation21_spill] sm:$0xff] %v6487_v62  ;;  %v6501_v5 = vld [vmem:[#allocation8 + $0x148] sm:$0xff] }
 0x736   :  { %4849 = vmatpush3.msra.mxu1 %v2155_v49  ;;  %2210 = vmatprep.subr.mxu0 %v2151_v3  ;;  %v6496_v49 = vld [vmem:[#allocation8 + $0x160] sm:$0xff]  ;;  %v6506_v3 = vld [vmem:[#allocation8 + $0x130] sm:$0xff] }
 0x737   :  { %4850 = vmatprep.subr.mxu1 %v2152_v15  ;;  %2211 = vmatpush1.msra.mxu0 %v2150_v27  ;;  %v6514_v27 = vld [vmem:[#allocation8 + $0x100] sm:$0xff] }
 0x738   :  { %4851 = vmatpush3.msra.mxu1 %v2152_v15  ;;  %2212 = vmatprep.subr.mxu0 %v2148_v32  ;;  %v6510_v15 = vld [vmem:[#allocation8 + $0x118] sm:$0xff]  ;;  %v6518_v32 = vld [vmem:[#allocation8 + $0xe8] sm:$0xff] }
 0x739   :  { %4852 = vmatprep.subr.mxu1 %v2149_v0  ;;  %2213 = vmatpush1.msra.mxu0 %v2147_v38  ;;  %v6526_v38 = vld [vmem:[#allocation8 + $0xb8] sm:$0xff] }
 0x73a   :  { %4853 = vmatpush3.msra.mxu1 %v2149_v0  ;;  %2214 = vmatprep.subr.mxu0 %v2145_v52  ;;  %v6522_v0 = vld [vmem:[#allocation8 + $0xd0] sm:$0xff]  ;;  %v6530_v52 = vld [vmem:[#allocation8 + $0xa0] sm:$0xff] }
 0x73b   :  { %4854 = vmatprep.subr.mxu1 %v2146_v53  ;;  %2215 = vmatpush1.msra.mxu0 %v2144_v54  ;;  %v6538_v54 = vld [vmem:[#allocation8 + $0x70] sm:$0xff] }
 0x73c   :  { %4855 = vmatpush3.msra.mxu1 %v2146_v53  ;;  %2216 = vmatprep.subr.mxu0 %v2142_v55  ;;  %v6534_v53 = vld [vmem:[#allocation8 + $0x88] sm:$0xff]  ;;  %v6542_v55 = vld [vmem:[#allocation8 + $0x58] sm:$0xff] }
 0x73d   :  { %4856 = vmatprep.subr.mxu1 %v2143_v56  ;;  %2217 = vmatpush1.msra.mxu0 %v2141_v57  ;;  %v6550_v57 = vld [vmem:[#allocation8 + $0x28] sm:$0xff] }
 0x73e   :  { %4857 = vmatpush3.msra.mxu1 %v2143_v56  ;;  %2218 = vmatprep.subr.mxu0 %v2139_v58  ;;  %v6546_v56 = vld [vmem:[#allocation8 + $0x40] sm:$0xff]  ;;  %7456 = vst [vmem:[#allocation23_spill] sm:$0xff] %v6550_v57  ;;  %v6554_v58 = vld [vmem:[#allocation8 + $0x10] sm:$0xff] }
 0x73f   :  { %4858 = vmatprep.subr.mxu1 %v2140_v59  ;;  %2219 = vmatpush1.msra.mxu0 %v2138_v60  ;;  %7457 = vst [vmem:[#allocation24_spill] sm:$0xff] %v6554_v58 }
 0x740   :  { %4859 = vmatpush3.msra.mxu1 %v2140_v59  ;;  %2220 = vmatprep.subr.mxu0 %v2136_v24  ;;  %v7458_v24 = vld [vmem:[#allocation30_spill] sm:$0xff] }
 0x741   :  { %4860 = vmatprep.subr.mxu1 %v2137_v26  ;;  %2221 = vmatpush1.msra.mxu0 %v2135_v28 }
 0x742   :  { %4861 = vmatpush3.msra.mxu1 %v2137_v26  ;;  %2222 = vmatprep.subr.mxu0 %v2133_v29 }
 0x743   :  { %4862 = vmatprep.subr.mxu1 %v2134_v30  ;;  %2223 = vmatpush1.msra.mxu0 %v2132_v31  ;;  %v7459_v31 = vld [vmem:[#allocation31_spill] sm:$0xff] }
 0x744   :  { %4863 = vmatpush3.msra.mxu1 %v2134_v30  ;;  %2224 = vmatprep.subr.mxu0 %v2130_v34 }
 0x745   :  { %4864 = vmatprep.subr.mxu1 %v2131_v10  ;;  %2225 = vmatpush1.msra.mxu0 %v2129_v7 }
 0x746   :  { %2258 = vmatprep.mubr.f32.mxu0 %v7407_v19  ;;  %4865 = vmatpush3.msra.mxu1 %v2131_v10 }
 0x747   :  { %2259 = vmatmul.mubr.f32.vlgmr.msra.gmra.mxu0 %v7449_v50  ;;  %4867 = vmatmul.mubr.f32.vlgmr.msra.gmra.mxu1 %v7450_v8  ;;  %v6456_v50 = vld [vmem:[#allocation8 + $0x90] sm:$0xff] }
 0x748   :  { %4869 = vmatprep.mubr.f32.mxu1 %v7451_v9  ;;  %2264 = vmatprep.mubr.f32.mxu0 %v7407_v19 }
 0x749   :  { %4878 = vmatprep.subr.mxu1 %v7407_v19  ;;  %2488 = vmatprep.subr.mxu0 %v6399_v11 }
 0x74a   :  { %2489 = vmatpush1.msra.mxu0 %v6402_v12  ;;  %4879 = vmatpush3.msra.mxu1 %v6494_v21 }
 0x74b   :  { %2265 = vmatmul.mubr.f32.gmra.mxu0 %v7450_v8  ;;  %4870 = vmatmul.mubr.f32.gmra.mxu1 %v6159_v61 }
 0x74c   :  { %4872 = vmatprep.mubr.f32.mxu1 %v6235_v39  ;;  %2270 = vmatprep.mubr.f32.mxu0 %v7407_v19 }
 0x74d   :  { %4880 = vmatprep.subr.mxu1 %v7407_v19 }
 0x74e   :  { %4881 = vmatpush3.msra.mxu1 %v6496_v49 }
 0x74f   :  { %2271 = vmatmul.mubr.f32.gmra.mxu0 %v7451_v9  ;;  %4873 = vmatmul.mubr.f32.gmra.mxu1 %v6316_v51 }
 0x750   :  { %4875 = vmatprep.mubr.f32.mxu1 %v6372_v23  ;;  %2276 = vmatprep.mubr.f32.mxu0 %v7407_v19 }
 0x751   :  { %4882 = vmatprep.subr.mxu1 %v7407_v19 }
 0x752   :  { %4883 = vmatpush3.msra.mxu1 %v6501_v5 }
 0x753   :  { %2277 = vmatmul.mubr.f32.gmra.mxu0 %v6159_v61  ;;  %v6405_v61 = vld [vmem:[#allocation8 + $0x158] sm:$0xff]  ;;  %4884 = vmatprep.subr.mxu1 %v7407_v19 }
 0x754   :  { %2282 = vmatprep.mubr.f32.mxu0 %v7407_v19  ;;  %2490 = vmatprep.subr.mxu0 %v6405_v61 }
 0x755   :  { %4885 = vmatpush3.msra.mxu1 %v6506_v3 }
 0x756   :  { %4886 = vmatprep.subr.mxu1 %v7407_v19 }
 0x757   :  { %2283 = vmatmul.mubr.f32.gmra.mxu0 %v6235_v39  ;;  %v6408_v39 = vld [vmem:[#allocation8 + $0x150] sm:$0xff]  ;;  %4887 = vmatpush3.msra.mxu1 %v6510_v15 }
 0x758   :  { %2288 = vmatprep.mubr.f32.mxu0 %v7407_v19  ;;  %2491 = vmatpush1.msra.mxu0 %v6408_v39 }
 0x759   :  { %4888 = vmatprep.subr.mxu1 %v7407_v19 }
 0x75a   :  { %4889 = vmatpush3.msra.mxu1 %v6514_v27 }
 0x75b   :  { %2289 = vmatmul.mubr.f32.gmra.mxu0 %v6316_v51  ;;  %v6411_v51 = vld [vmem:[#allocation8 + $0x140] sm:$0xff]  ;;  %4890 = vmatprep.subr.mxu1 %v7407_v19 }
 0x75c   :  { %2294 = vmatprep.mubr.f32.mxu0 %v7407_v19  ;;  %2492 = vmatprep.subr.mxu0 %v6411_v51 }
 0x75d   :  { %2493 = vmatpush1.msra.mxu0 %v6414_v13  ;;  %4891 = vmatpush3.msra.mxu1 %v6518_v32 }
 0x75e   :  { %2494 = vmatprep.subr.mxu0 %v6417_v14  ;;  %4892 = vmatprep.subr.mxu1 %v7407_v19 }
 0x75f   :  { %2295 = vmatmul.mubr.f32.gmra.mxu0 %v6372_v23  ;;  %4893 = vmatpush3.msra.mxu1 %v6522_v0 }
 0x760   :  { %2300 = vmatprep.mubr.f32.mxu0 %v7407_v19  ;;  %2495 = vmatpush1.msra.mxu0 %v6420_v16 }
 0x761   :  { %2496 = vmatprep.subr.mxu0 %v6423_v17  ;;  %4894 = vmatprep.subr.mxu1 %v7407_v19 }
 0x762   :  { %2497 = vmatpush1.msra.mxu0 %v6426_v18  ;;  %4895 = vmatpush3.msra.mxu1 %v6526_v38 }
 0x763   :  { %2498 = vmatprep.subr.mxu0 %v6429_v20  ;;  %4896 = vmatprep.subr.mxu1 %v7407_v19 }
 0x764   :  { %2499 = vmatpush1.msra.mxu0 %v6432_v22  ;;  %4897 = vmatpush3.msra.mxu1 %v6530_v52 }
 0x765   :  { %2500 = vmatprep.subr.mxu0 %v6435_v36  ;;  %4898 = vmatprep.subr.mxu1 %v7407_v19 }
 0x766   :  { %2501 = vmatpush1.msra.mxu0 %v6438_v42  ;;  %4899 = vmatpush3.msra.mxu1 %v6534_v53 }
 0x767   :  { %2502 = vmatprep.subr.mxu0 %v6441_v43  ;;  %4900 = vmatprep.subr.mxu1 %v7407_v19 }
 0x768   :  { %2503 = vmatpush1.msra.mxu0 %v6444_v1  ;;  %4901 = vmatpush3.msra.mxu1 %v6538_v54 }
 0x769   :  { %2504 = vmatprep.subr.mxu0 %v6447_v6  ;;  %4902 = vmatprep.subr.mxu1 %v7407_v19 }
 0x76a   :  { %2505 = vmatpush1.msra.mxu0 %v6450_v44  ;;  %4903 = vmatpush3.msra.mxu1 %v6542_v55 }
 0x76b   :  { %2506 = vmatprep.subr.mxu0 %v6453_v48  ;;  %4904 = vmatprep.subr.mxu1 %v7407_v19 }
 0x76c   :  { %2507 = vmatpush1.msra.mxu0 %v6456_v50  ;;  %4905 = vmatpush3.msra.mxu1 %v6546_v56 }
 0x76d   :  { %2508 = vmatprep.subr.mxu0 %v6459_v47  ;;  %4906 = vmatprep.subr.mxu1 %v7407_v19 }
 0x76e   :  { %2509 = vmatpush1.msra.mxu0 %v6462_v40  ;;  %4907 = vmatpush3.msra.mxu1 %v6550_v57 }
 0x76f   :  { %2510 = vmatprep.subr.mxu0 %v6465_v41  ;;  %4908 = vmatprep.subr.mxu1 %v7407_v19 }
 0x770   :  { %2511 = vmatpush1.msra.mxu0 %v6468_v33  ;;  %4909 = vmatpush3.msra.mxu1 %v6554_v58 }
 0x771   :  { %2512 = vmatprep.subr.mxu0 %v6471_v35  ;;  %4913 = vmatprep.subr.mxu1 %v7407_v19 }
 0x772   :  { %2513 = vmatpush1.msra.mxu0 %v6474_v37 }
 0x773   :  { %2514 = vmatprep.subr.mxu0 %v6477_v25 }
 0x774   :  { %2515 = vmatpush1.msra.mxu0 %v6480_v45 }
 0x775   :  { %2516 = vmatprep.subr.mxu0 %v6483_v46 }
 0x776   :  { %2517 = vmatpush1.msra.mxu0 %v6485_v63 }
 0x777   :  { %2518 = vmatprep.subr.mxu0 %v6487_v62  ;;  %v7460_v62 = vld [vmem:[#allocation34_spill] sm:$0xff] }
 0x778   :  { %2519 = vmatpush1.msra.mxu0 %v6490_v2 }
 0x779   :  { %2708 = vmatprep.subr.mxu0 %v6399_v11 }
 0x7e6   :  { %v2023_v59 = vpop.f32.mrf.mxu0  ;;  %v2094_v60 = vpop.f32.mrf.mxu1 }
 0x7e7   :  { %v2098_v26 = vadd.f32 %v2023_v59, %v7458_v24  ;;  %v2112_v11 = vadd.f32 %v6311_v4, %v2094_v60  ;;  %v7461_v4 = vld [vmem:[#allocation20_spill] sm:$0xff] }
 0x7e8   :  { %v4833_v28 = vpop.f32.mrf.mxu1  ;;  %v2025_v30 = vpop.f32.mrf.mxu0 }
 0x7e9   :  { %v4206_v29 = vmul.f32 -1.442695, %v2098_v26  ;;  %v2105_v34 = vadd.f32 %v2025_v30, %v7459_v31 }
 0x7eb   :  { %5235 = vpow2.f32 %v4206_v29  ;;  %v4207_v10 = vmul.f32 -1.442695, %v2105_v34 }
 0x7ed   :  { %5237 = vpow2.f32 %v4207_v10 }
 0x7f8   :  { %v5236_v7 = vpop.eup %5235 }
 0x7f9   :  { %v2102_v8 = vadd.f32 1.0, %v5236_v7 }
 0x7fa   :  { %v5238_v9 = vpop.eup %5237 }
 0x7fb   :  { %5239 = vrcp.f32 %v2102_v8  ;;  %v2109_v63 = vadd.f32 1.0, %v5238_v9 }
 0x807   :  { %v6649_v8 = vpop.f32.mrf.mxu1 }
 0x808   :  { %v5240_v58 = vpop.eup %5239  ;;  %7473 = vst [vmem:[#allocation17_spill] sm:$0xff] %v6649_v8 }
 0x809   :  { %v2113_v2 = vmul.f32 %v5240_v58, %v2112_v11  ;;  %v7463_v11 = vld [vmem:[#allocation21_spill] sm:$0xff] }
 0x80b   :  { %v2114_v57 = vadd.f32 %v2113_v2, %v7460_v62  ;;  %v7465_v62 = vld [vmem:[#allocation24_spill] sm:$0xff]  ;;  %v7466_v2 = vld [vmem:[#allocation19_spill] sm:$0xff] }
 0x80d   :  { %5241 = vtanh.f32 %v2114_v57  ;;  %v2260_v57 = vpop.f32.mrf.mxu0 }
 0x80e   :  { %5243 = vrcp.f32 %v2109_v63  ;;  %v7464_v63 = vld [vmem:[#allocation22_spill] sm:$0xff] }
 0x80f   :  { %v2262_v58 = vpop.f32.mrf.mxu0 }
 0x811   :  { %v6637_v60 = vpop.f32.mrf.mxu0 }
 0x812   :  { %7467 = vst [vmem:[#allocation33_spill] sm:$0xff] %v6637_v60 }
 0x813   :  { %v6639_v30 = vpop.f32.mrf.mxu0 }
 0x814   :  { %7468 = vst [vmem:[#allocation12_spill] sm:$0xff] %v6639_v30 }
 0x815   :  { %v6641_v31 = vpop.f32.mrf.mxu0 }
 0x816   :  { %7469 = vst [vmem:[#allocation18_spill] sm:$0xff] %v6641_v31 }
 0x817   :  { %v6643_v34 = vpop.f32.mrf.mxu0 }
 0x818   :  { %7470 = vst [vmem:[#allocation13_spill] sm:$0xff] %v6643_v34 }
 0x819   :  { %v6645_v10 = vpop.f32.mrf.mxu0 }
 0x81a   :  { %v5242_v59 = vpop.eup %5241  ;;  %7471 = vst [vmem:[#allocation15_spill] sm:$0xff] %v6645_v10 }
 0x81b   :  { %v2116_v24 = vsub.f32 %v6372_v23, %v5242_v59  ;;  %v5244_v26 = vpop.eup %5243  ;;  %v7462_v23 = vld [vmem:[#allocation23_spill] sm:$0xff]  ;;  %v6647_v7 = vpop.f32.mrf.mxu0 }
 0x81c   :  { %7472 = vst [vmem:[#allocation25_spill] sm:$0xff] %v6647_v7  ;;  %v2177_v7 = vld [vmem:[%s7320_s7] sm:$0x7] }
 0x81d   :  { %v2117_v28 = vmul.f32 %v5244_v26, %v2116_v24  ;;  %v6651_v9 = vpop.f32.mrf.mxu0 }
 0x81e   :  { %7474 = vst [vmem:[#allocation26_spill] sm:$0xff] %v6651_v9 }
 0x81f   :  { %v2118_v29 = vadd.f32 %v5242_v59, %v2117_v28  ;;  %v2373_v59 = vpop.f32.mrf.mxu1  ;;  %v6653_v24 = vpop.f32.mrf.mxu0 }
 0x820   :  { %7475 = vst [vmem:[#allocation27_spill] sm:$0xff] %v6653_v24  ;;  %v7484_v24 = vld [vmem:[#allocation16_spill] sm:$0xff] }
 0x821   :  { %2301 = vmatmul.mubr.f32.gmra.mxu0 %v2118_v29  ;;  %4876 = vmatmul.mubr.f32.gmra.mxu1 %v2118_v29  ;;  %v6655_v26 = vpop.f32.mrf.mxu1  ;;  %v6657_v28 = vpop.f32.mrf.mxu0 }
 0x822   :  { %2552 = vmatprep.mubr.f32.mxu0 %v7407_v19  ;;  %4910 = vmatprep.mubr.msk.f32.mxu1 %vm5397_vm1, %v7407_v19  ;;  %7476 = vst [vmem:[#allocation32_spill] sm:$0xff] %v6655_v26  ;;  %7477 = vst [vmem:[#allocation28_spill] sm:$0xff] %v6657_v28  ;;  %v7485_v26 = vsub.s32 0, %v7484_v24 }
 0x823   :  { %v6659_v29 = vpop.f32.mrf.mxu1  ;;  %v6661_v31 = vpop.f32.mrf.mxu0 }
 0x824   :  { %7478 = vst [vmem:[#allocation29_spill] sm:$0xff] %v6659_v29  ;;  %7479 = vst [vmem:[#allocation35_spill] sm:$0xff] %v6661_v31  ;;  %v6676_v30 = vrot.slane %v2177_v7, %v7485_v26 }
 0x825   :  { %2553 = vmatmul.mubr.f32.vlgmr.msra.gmra.mxu0 %v7407_v19  ;;  %4911 = vmatmul.mubr.f32.vlgmr.msra.gmra.mxu1 %v7407_v19  ;;  %v6663_v34 = vpop.f32.mrf.mxu1  ;;  %v6665_v10 = vpop.f32.mrf.mxu0 }
 0x826   :  { %2709 = vmatpush1.msra.mxu0 %v6402_v12  ;;  %4914 = vmatpush3.msra.mxu1 %v6494_v21  ;;  %7480 = vst [vmem:[#allocation36_spill] sm:$0xff] %v6663_v34  ;;  %7481 = vst [vmem:[#allocation14_spill] sm:$0xff] %v6665_v10  ;;  %v2261_v10 = vadd.f32 %v2260_v57, %v6676_v30  ;;  %v6695_v57 = vld [vmem:[%s7321_s8] ss:$0 sm:$0xff] }
 0x827   :  { %2710 = vmatprep.subr.mxu0 %v6405_v61  ;;  %4915 = vmatprep.subr.mxu1 %v7407_v19  ;;  %v6670_v9 = vpop.f32.mrf.mxu1  ;;  %v6672_v8 = vpop.f32.mrf.mxu0  ;;  %7486 = vst [vmem:[#allocation31_spill] sm:$0xff] %v6676_v30 }
 0x828   :  { %2711 = vmatpush1.msra.mxu0 %v6408_v39  ;;  %4916 = vmatpush3.msra.mxu1 %v6496_v49  ;;  %7482 = vst [vmem:[#allocation11_spill] sm:$0xff] %v6670_v9  ;;  %7483 = vst [vmem:[#allocation30_spill] sm:$0xff] %v6672_v8  ;;  %v7491_v8 = vsub.s32 1, %v7484_v24 }
 0x829   :  { %2712 = vmatprep.subr.mxu0 %v6411_v51  ;;  %4917 = vmatprep.subr.mxu1 %v7407_v19 }
 0x82a   :  { %2713 = vmatpush1.msra.mxu0 %v6414_v13  ;;  %4918 = vmatpush3.msra.mxu1 %v6501_v5  ;;  %v6689_v26 = vrot.slane %v2177_v7, %v7491_v8 }
 0x82b   :  { %2714 = vmatprep.subr.mxu0 %v6417_v14  ;;  %4919 = vmatprep.subr.mxu1 %v7407_v19 }
 0x82c   :  { %2715 = vmatpush1.msra.mxu0 %v6420_v16  ;;  %4920 = vmatpush3.msra.mxu1 %v6506_v3 }
 0x82d   :  { %2716 = vmatprep.subr.mxu0 %v6423_v17  ;;  %4921 = vmatprep.subr.mxu1 %v7407_v19 }
 0x82e   :  { %2717 = vmatpush1.msra.mxu0 %v6426_v18  ;;  %4922 = vmatpush3.msra.mxu1 %v6510_v15 }
 0x82f   :  { %2718 = vmatprep.subr.mxu0 %v6429_v20  ;;  %4923 = vmatprep.subr.mxu1 %v7407_v19 }
 0x830   :  { %2719 = vmatpush1.msra.mxu0 %v6432_v22  ;;  %4924 = vmatpush3.msra.mxu1 %v6514_v27 }
 0x831   :  { %2720 = vmatprep.subr.mxu0 %v6435_v36  ;;  %4925 = vmatprep.subr.mxu1 %v7407_v19 }
 0x832   :  { %2721 = vmatpush1.msra.mxu0 %v6438_v42  ;;  %4926 = vmatpush3.msra.mxu1 %v6518_v32 }
 0x833   :  { %2722 = vmatprep.subr.mxu0 %v6441_v43  ;;  %4927 = vmatprep.subr.mxu1 %v7407_v19 }
 0x834   :  { %2723 = vmatpush1.msra.mxu0 %v6444_v1  ;;  %4928 = vmatpush3.msra.mxu1 %v6522_v0 }
 0x835   :  { %2724 = vmatprep.subr.mxu0 %v6447_v6  ;;  %4929 = vmatprep.subr.mxu1 %v7407_v19 }
 0x836   :  { %2725 = vmatpush1.msra.mxu0 %v6450_v44  ;;  %4930 = vmatpush3.msra.mxu1 %v6526_v38 }
 0x837   :  { %2726 = vmatprep.subr.mxu0 %v6453_v48  ;;  %4931 = vmatprep.subr.mxu1 %v7407_v19 }
 0x838   :  { %2727 = vmatpush1.msra.mxu0 %v6456_v50  ;;  %4932 = vmatpush3.msra.mxu1 %v6530_v52 }
 0x839   :  { %2728 = vmatprep.subr.mxu0 %v6459_v47  ;;  %4933 = vmatprep.subr.mxu1 %v7407_v19 }
 0x83a   :  { %2729 = vmatpush1.msra.mxu0 %v6462_v40  ;;  %4934 = vmatpush3.msra.mxu1 %v6534_v53 }
 0x83b   :  { %2730 = vmatprep.subr.mxu0 %v6465_v41  ;;  %4935 = vmatprep.subr.mxu1 %v7407_v19 }
 0x83c   :  { %2731 = vmatpush1.msra.mxu0 %v6468_v33  ;;  %4936 = vmatpush3.msra.mxu1 %v6538_v54 }
 0x83d   :  { %2732 = vmatprep.subr.mxu0 %v6471_v35  ;;  %4937 = vmatprep.subr.mxu1 %v7407_v19 }
 0x83e   :  { %2733 = vmatpush1.msra.mxu0 %v6474_v37  ;;  %4938 = vmatpush3.msra.mxu1 %v6542_v55 }
 0x83f   :  { %2734 = vmatprep.subr.mxu0 %v6477_v25  ;;  %4939 = vmatprep.subr.mxu1 %v7407_v19 }
 0x840   :  { %2735 = vmatpush1.msra.mxu0 %v6480_v45  ;;  %4940 = vmatpush3.msra.mxu1 %v6546_v56 }
 0x841   :  { %2736 = vmatprep.subr.mxu0 %v6483_v46  ;;  %4941 = vmatprep.subr.mxu1 %v7407_v19 }
 0x842   :  { %2737 = vmatpush1.msra.mxu0 %v7461_v4  ;;  %4942 = vmatpush3.msra.mxu1 %v7462_v23 }
 0x843   :  { %2738 = vmatprep.subr.mxu0 %v7463_v11  ;;  %4943 = vmatprep.subr.mxu1 %v7407_v19 }
 0x844   :  { %2739 = vmatpush1.msra.mxu0 %v7464_v63  ;;  %2772 = vmatprep.mubr.f32.mxu0 %v7407_v19 }
 0x845   :  { %4944 = vmatpush3.msra.mxu1 %v7465_v62  ;;  %4945 = vmatprep.mubr.msk.f32.mxu1 %vm5397_vm1, %v7407_v19 }
 0x846   :  { %2923 = vmatprep.subr.mxu0 %v7466_v2  ;;  %4948 = vmatprep.subr.mxu1 %v7407_v19 }
 0x8e1   :  { %v6678_v28 = vpop.f32.mrf.mxu0  ;;  %v6680_v29 = vpop.f32.mrf.mxu1 }
 0x8e2   :  { %7487 = vst [vmem:[#allocation34_spill] sm:$0xff] %v6678_v28  ;;  %7488 = vst [vmem:[#allocation16_spill] sm:$0xff] %v6680_v29  ;;  %v2263_v28 = vadd.f32 %v2262_v58, %v6689_v26 }
 0x8e3   :  { %v6682_v31 = vpop.f32.mrf.mxu0  ;;  %v6684_v34 = vpop.f32.mrf.mxu1 }
 0x8e4   :  { %7489 = vst [vmem:[#allocation37_spill] sm:$0xff] %v6682_v31  ;;  %7490 = vst [vmem:[#allocation38_spill] sm:$0xff] %v6684_v34 }
 0x8e5   :  { %v2554_v60 = vpop.f32.mrf.mxu0  ;;  %v2625_v2 = vpop.f32.mrf.mxu1 }
 0x8e6   :  { %v2629_v62 = vadd.f32 %v2554_v60, %v2261_v10  ;;  %v7492_v60 = vsub.s32 2, %v7484_v24  ;;  %v7496_v24 = vld [vmem:[#allocation22_spill] sm:$0xff] }
 0x8e7   :  { %v4912_v9 = vpop.f32.mrf.mxu1  ;;  %v2556_v11 = vpop.f32.mrf.mxu0 }
 0x8e8   :  { %v4208_v63 = vmul.f32 -1.442695, %v2629_v62  ;;  %v2636_v29 = vadd.f32 %v2556_v11, %v2263_v28  ;;  %v6700_v10 = vrot.slane %v2177_v7, %v7492_v60  ;;  %v7494_v7 = vld [vmem:[#allocation23_spill] sm:$0xff]  ;;  %v7499_v60 = vld [vmem:[#allocation33_spill] sm:$0xff] }
 0x8ea   :  { %5245 = vpow2.f32 %v4208_v63  ;;  %v4209_v23 = vmul.f32 -1.442695, %v2636_v29  ;;  %v2649_v63 = vadd.f32 %v6695_v57, %v2625_v2  ;;  %v2374_v11 = vadd.f32 %v2373_v59, %v6700_v10  ;;  %v7493_v2 = vld [vmem:[#allocation20_spill] sm:$0xff]  ;;  %v7495_v59 = vld [vmem:[#allocation21_spill] sm:$0xff] }
 0x8ec   :  { %5247 = vpow2.f32 %v4209_v23 }
 0x8f7   :  { %v5246_v31 = vpop.eup %5245 }
 0x8f8   :  { %v2633_v4 = vadd.f32 1.0, %v5246_v31 }
 0x8f9   :  { %v5248_v62 = vpop.eup %5247 }
 0x8fa   :  { %5249 = vrcp.f32 %v2633_v4  ;;  %v2640_v9 = vadd.f32 1.0, %v5248_v62  ;;  %v7498_v62 = vld [vmem:[#allocation19_spill] sm:$0xff] }
 0x907   :  { %v5250_v8 = vpop.eup %5249 }
 0x908   :  { %v2650_v58 = vmul.f32 %v5250_v8, %v2649_v63  ;;  %v7497_v63 = vld [vmem:[#allocation24_spill] sm:$0xff]  ;;  %v2267_v8 = vadd.f32 %v7499_v60, %v6676_v30  ;;  %v7501_v30 = vld [vmem:[#allocation17_spill] sm:$0xff] }
 0x90a   :  { %v2651_v31 = vadd.f32 %v2650_v58, %v2374_v11 }
 0x90c   :  { %5251 = vtanh.f32 %v2651_v31 }
 0x90d   :  { %5253 = vrcp.f32 %v2640_v9 }
 0x919   :  { %v5252_v4 = vpop.eup %5251 }
 0x91a   :  { %v2653_v23 = vsub.f32 0.0, %v5252_v4  ;;  %v5254_v28 = vpop.eup %5253 }
 0x91c   :  { %v2654_v29 = vmul.f32 %v5254_v28, %v2653_v23  ;;  %v7500_v28 = vld [vmem:[#allocation12_spill] sm:$0xff] }
 0x91e   :  { %v6703_v34 = vadd.f32 %v5252_v4, %v2654_v29  ;;  %v2269_v29 = vadd.f32 %v7500_v28, %v6689_v26 }
 0x920   :  { %2656 = vst [vmem:[%s7322_s9] sm:$0xff] %v6703_v34  ;;  %2773 = vmatmul.mubr.f32.vlgmr.msra.gmra.mxu0 %v6703_v34  ;;  %4946 = vmatmul.mubr.f32.vlgmr.msra.gmra.mxu1 %v6703_v34 }
 0x921   :  { %2924 = vmatpush1.msra.mxu0 %v6402_v12  ;;  %4949 = vmatpush3.msra.mxu1 %v6494_v21 }
 0x922   :  { %2925 = vmatprep.subr.mxu0 %v6405_v61  ;;  %4950 = vmatprep.subr.mxu1 %v7407_v19 }
 0x923   :  { %2926 = vmatpush1.msra.mxu0 %v6408_v39  ;;  %4951 = vmatpush3.msra.mxu1 %v6496_v49 }
 0x924   :  { %2927 = vmatprep.subr.mxu0 %v6411_v51  ;;  %4952 = vmatprep.subr.mxu1 %v7407_v19 }
 0x925   :  { %2928 = vmatpush1.msra.mxu0 %v6414_v13  ;;  %4953 = vmatpush3.msra.mxu1 %v6501_v5 }
 0x926   :  { %2929 = vmatprep.subr.mxu0 %v6417_v14  ;;  %4954 = vmatprep.subr.mxu1 %v7407_v19 }
 0x927   :  { %2930 = vmatpush1.msra.mxu0 %v6420_v16  ;;  %4955 = vmatpush3.msra.mxu1 %v6506_v3 }
 0x928   :  { %2931 = vmatprep.subr.mxu0 %v6423_v17  ;;  %4956 = vmatprep.subr.mxu1 %v7407_v19 }
 0x929   :  { %2932 = vmatpush1.msra.mxu0 %v6426_v18  ;;  %4957 = vmatpush3.msra.mxu1 %v6510_v15 }
 0x92a   :  { %2933 = vmatprep.subr.mxu0 %v6429_v20  ;;  %4958 = vmatprep.subr.mxu1 %v7407_v19 }
 0x92b   :  { %2934 = vmatpush1.msra.mxu0 %v6432_v22  ;;  %4959 = vmatpush3.msra.mxu1 %v6514_v27 }
 0x92c   :  { %2935 = vmatprep.subr.mxu0 %v6435_v36  ;;  %4960 = vmatprep.subr.mxu1 %v7407_v19 }
 0x92d   :  { %2936 = vmatpush1.msra.mxu0 %v6438_v42  ;;  %4961 = vmatpush3.msra.mxu1 %v6518_v32 }
 0x92e   :  { %2937 = vmatprep.subr.mxu0 %v6441_v43  ;;  %4962 = vmatprep.subr.mxu1 %v7407_v19 }
 0x92f   :  { %2938 = vmatpush1.msra.mxu0 %v6444_v1  ;;  %4963 = vmatpush3.msra.mxu1 %v6522_v0 }
 0x930   :  { %2939 = vmatprep.subr.mxu0 %v6447_v6  ;;  %4964 = vmatprep.subr.mxu1 %v7407_v19 }
 0x931   :  { %2940 = vmatpush1.msra.mxu0 %v6450_v44  ;;  %4965 = vmatpush3.msra.mxu1 %v6526_v38 }
 0x932   :  { %2941 = vmatprep.subr.mxu0 %v6453_v48  ;;  %4966 = vmatprep.subr.mxu1 %v7407_v19 }
 0x933   :  { %2942 = vmatpush1.msra.mxu0 %v6456_v50  ;;  %4967 = vmatpush3.msra.mxu1 %v6530_v52 }
 0x934   :  { %2943 = vmatprep.subr.mxu0 %v6459_v47  ;;  %4968 = vmatprep.subr.mxu1 %v7407_v19 }
 0x935   :  { %2944 = vmatpush1.msra.mxu0 %v6462_v40  ;;  %4969 = vmatpush3.msra.mxu1 %v6534_v53 }
 0x936   :  { %2945 = vmatprep.subr.mxu0 %v6465_v41  ;;  %4970 = vmatprep.subr.mxu1 %v7407_v19 }
 0x937   :  { %2946 = vmatpush1.msra.mxu0 %v6468_v33  ;;  %4971 = vmatpush3.msra.mxu1 %v6538_v54 }
 0x938   :  { %2947 = vmatprep.subr.mxu0 %v6471_v35  ;;  %4972 = vmatprep.subr.mxu1 %v7407_v19 }
 0x939   :  { %2948 = vmatpush1.msra.mxu0 %v6474_v37  ;;  %4973 = vmatpush3.msra.mxu1 %v6542_v55 }
 0x93a   :  { %2949 = vmatprep.subr.mxu0 %v6477_v25  ;;  %4974 = vmatprep.subr.mxu1 %v7407_v19 }
 0x93b   :  { %2950 = vmatpush1.msra.mxu0 %v6480_v45  ;;  %4975 = vmatpush3.msra.mxu1 %v6546_v56 }
 0x93c   :  { %2951 = vmatprep.subr.mxu0 %v6483_v46  ;;  %4976 = vmatprep.subr.mxu1 %v7407_v19 }
 0x93d   :  { %2952 = vmatpush1.msra.mxu0 %v7493_v2  ;;  %4977 = vmatpush3.msra.mxu1 %v7494_v7 }
 0x93e   :  { %2953 = vmatprep.subr.mxu0 %v7495_v59  ;;  %4978 = vmatprep.subr.mxu1 %v7407_v19 }
 0x93f   :  { %2954 = vmatpush1.msra.mxu0 %v7496_v24  ;;  %2987 = vmatprep.mubr.f32.mxu0 %v7407_v19 }
 0x940   :  { %4979 = vmatpush3.msra.mxu1 %v7497_v63  ;;  %4980 = vmatprep.mubr.msk.f32.mxu1 %vm5397_vm1, %v7407_v19 }
 0x941   :  { %3138 = vmatprep.subr.mxu0 %v7498_v62  ;;  %4983 = vmatprep.subr.mxu1 %v7407_v19 }
 0x9e0   :  { %v2774_v11 = vpop.f32.mrf.mxu0  ;;  %v2845_v58 = vpop.f32.mrf.mxu1 }
 0x9e1   :  { %v2849_v9 = vadd.f32 %v2774_v11, %v2267_v8  ;;  %v2863_v2 = vadd.f32 %v6695_v57, %v2845_v58  ;;  %v2379_v8 = vadd.f32 %v7501_v30, %v6700_v10  ;;  %v6916_v30 = vld [vmem:[#allocation8 + $0x108] sm:$0xff]  ;;  %v6930_v58 = vld [vmem:[#allocation8 + $0xd8] sm:$0xff] }
 0x9e2   :  { %v4947_v31 = vpop.f32.mrf.mxu1  ;;  %v2776_v23 = vpop.f32.mrf.mxu0 }
 0x9e3   :  { %v4211_v4 = vmul.f32 -1.442695, %v2849_v9  ;;  %v2856_v63 = vadd.f32 %v2776_v23, %v2269_v29  ;;  %v6932_v29 = vld [vmem:[#allocation8 + $0xe8] sm:$0xff] }
 0x9e5   :  { %5255 = vpow2.f32 %v4211_v4  ;;  %v4212_v24 = vmul.f32 -1.442695, %v2856_v63 }
 0x9e7   :  { %5257 = vpow2.f32 %v4212_v24  ;;  %v6926_v24 = vld [vmem:[#allocation8 + $0xe0] sm:$0xff] }
 0x9f2   :  { %v5256_v59 = vpop.eup %5255 }
 0x9f3   :  { %v2853_v7 = vadd.f32 1.0, %v5256_v59 }
 0x9f4   :  { %v5258_v62 = vpop.eup %5257 }
 0x9f5   :  { %5259 = vrcp.f32 %v2853_v7  ;;  %v2860_v31 = vadd.f32 1.0, %v5258_v62  ;;  %v6924_v7 = vld [vmem:[#allocation8 + $0x100] sm:$0xff]  ;;  %v6934_v62 = vld [vmem:[#allocation8 + $0xc8] sm:$0xff] }
 0xa02   :  { %v5260_v60 = vpop.eup %5259 }
 0xa03   :  { %v2864_v11 = vmul.f32 %v5260_v60, %v2863_v2  ;;  %v6922_v2 = vld [vmem:[#allocation8 + $0xf0] sm:$0xff]  ;;  %v6938_v60 = vld [vmem:[#allocation8 + $0xc0] sm:$0xff] }
 0xa05   :  { %v2865_v9 = vadd.f32 %v2864_v11, %v2379_v8  ;;  %v6940_v8 = vld [vmem:[#allocation8 + $0xd0] sm:$0xff] }
 0xa06   :  { %v6944_v11 = vld [vmem:[#allocation8 + $0xb0] sm:$0xff] }
 0xa07   :  { %5261 = vtanh.f32 %v2865_v9  ;;  %v6948_v9 = vld [vmem:[#allocation8 + $0xa8] sm:$0xff] }
 0xa08   :  { %5263 = vrcp.f32 %v2860_v31  ;;  %v6950_v31 = vld [vmem:[#allocation8 + $0xb8] sm:$0xff] }
 0xa14   :  { %v5262_v4 = vpop.eup %5261 }
 0xa15   :  { %v2867_v23 = vsub.f32 %v6703_v34, %v5262_v4  ;;  %v5264_v63 = vpop.eup %5263  ;;  %v6919_v34 = vld [vmem:[#allocation8 + $0xf8] sm:$0xff] }
 0xa17   :  { %v2868_v28 = vmul.f32 %v5264_v63, %v2867_v23  ;;  %v6958_v23 = vld [vmem:[#allocation8 + $0x90] sm:$0xff]  ;;  %v6960_v63 = vld [vmem:[#allocation8 + $0xa0] sm:$0xff] }
 0xa19   :  { %v6786_v59 = vadd.f32 %v5262_v4, %v2868_v28  ;;  %v6954_v4 = vld [vmem:[#allocation8 + $0x98] sm:$0xff]  ;;  %v6964_v28 = vld [vmem:[#allocation8 + $0x80] sm:$0xff] }
 0xa1b   :  { %4213 = vst [vmem:[%s7322_s9 + $0x8] sm:$0xff] %v6786_v59  ;;  %2988 = vmatmul.mubr.f32.vlgmr.msra.gmra.mxu0 %v6786_v59  ;;  %4981 = vmatmul.mubr.f32.vlgmr.msra.gmra.mxu1 %v6786_v59 }
 0xa1c   :  { %3139 = vmatpush1.msra.mxu0 %v6402_v12  ;;  %4984 = vmatpush3.msra.mxu1 %v6494_v21  ;;  %v7502_v12 = vld [vmem:[#allocation20_spill] sm:$0xff] }
 0xa1d   :  { %3140 = vmatprep.subr.mxu0 %v6405_v61  ;;  %4985 = vmatprep.subr.mxu1 %v7407_v19  ;;  %v7503_v61 = vld [vmem:[#allocation23_spill] sm:$0xff] }
 0xa1e   :  { %3141 = vmatpush1.msra.mxu0 %v6408_v39  ;;  %4986 = vmatpush3.msra.mxu1 %v6496_v49  ;;  %v7504_v39 = vld [vmem:[#allocation21_spill] sm:$0xff] }
 0xa1f   :  { %3142 = vmatprep.subr.mxu0 %v6411_v51  ;;  %4987 = vmatprep.subr.mxu1 %v7407_v19  ;;  %v7505_v51 = vld [vmem:[#allocation22_spill] sm:$0xff] }
 0xa20   :  { %3143 = vmatpush1.msra.mxu0 %v6414_v13  ;;  %4988 = vmatpush3.msra.mxu1 %v6501_v5  ;;  %v7506_v13 = vld [vmem:[#allocation24_spill] sm:$0xff] }
 0xa21   :  { %3144 = vmatprep.subr.mxu0 %v6417_v14  ;;  %4989 = vmatprep.subr.mxu1 %v7407_v19  ;;  %v7507_v14 = vld [vmem:[#allocation31_spill] sm:$0xff] }
 0xa22   :  { %3145 = vmatpush1.msra.mxu0 %v6420_v16  ;;  %4990 = vmatpush3.msra.mxu1 %v6506_v3  ;;  %v7508_v16 = vld [vmem:[#allocation18_spill] sm:$0xff] }
 0xa23   :  { %3146 = vmatprep.subr.mxu0 %v6423_v17  ;;  %4991 = vmatprep.subr.mxu1 %v7407_v19  ;;  %v2273_v17 = vadd.f32 %v7508_v16, %v7507_v14  ;;  %v6988_v16 = vld [vmem:[#allocation8 + $0x48] sm:$0xff] }
 0xa24   :  { %3147 = vmatpush1.msra.mxu0 %v6426_v18  ;;  %4992 = vmatpush3.msra.mxu1 %v6510_v15 }
 0xa25   :  { %3148 = vmatprep.subr.mxu0 %v6429_v20  ;;  %4993 = vmatprep.subr.mxu1 %v7407_v19 }
 0xa26   :  { %3149 = vmatpush1.msra.mxu0 %v6432_v22  ;;  %4994 = vmatpush3.msra.mxu1 %v6514_v27 }
 0xa27   :  { %3150 = vmatprep.subr.mxu0 %v6435_v36  ;;  %4995 = vmatprep.subr.mxu1 %v7407_v19 }
 0xa28   :  { %3151 = vmatpush1.msra.mxu0 %v6438_v42  ;;  %4996 = vmatpush3.msra.mxu1 %v6518_v32 }
 0xa29   :  { %3152 = vmatprep.subr.mxu0 %v6441_v43  ;;  %4997 = vmatprep.subr.mxu1 %v7407_v19 }
 0xa2a   :  { %3153 = vmatpush1.msra.mxu0 %v6444_v1  ;;  %4998 = vmatpush3.msra.mxu1 %v6522_v0  ;;  %v7509_v1 = vld [vmem:[#allocation13_spill] sm:$0xff] }
 0xa2b   :  { %3154 = vmatprep.subr.mxu0 %v6447_v6  ;;  %4999 = vmatprep.subr.mxu1 %v7407_v19  ;;  %v2275_v6 = vadd.f32 %v7509_v1, %v6689_v26  ;;  %v7014_v1 = vld [vmem:[#allocation8 + $0x8] sm:$0xff] }
 0xa2c   :  { %3155 = vmatpush1.msra.mxu0 %v6450_v44  ;;  %5000 = vmatpush3.msra.mxu1 %v6526_v38  ;;  %7514 = vst [vmem:[#allocation17_spill] sm:$0xff] %v7014_v1 }
 0xa2d   :  { %3156 = vmatprep.subr.mxu0 %v6453_v48  ;;  %5001 = vmatprep.subr.mxu1 %v7407_v19 }
 0xa2e   :  { %3157 = vmatpush1.msra.mxu0 %v6456_v50  ;;  %5002 = vmatpush3.msra.mxu1 %v6530_v52 }
 0xa2f   :  { %3158 = vmatprep.subr.mxu0 %v6459_v47  ;;  %5003 = vmatprep.subr.mxu1 %v7407_v19 }
 0xa30   :  { %3159 = vmatpush1.msra.mxu0 %v6462_v40  ;;  %5004 = vmatpush3.msra.mxu1 %v6534_v53  ;;  %v6892_v53 = vld [vmem:[#allocation8 + $0x168] sm:$0xff] }
 0xa31   :  { %3160 = vmatprep.subr.mxu0 %v6465_v41  ;;  %5005 = vmatprep.subr.mxu1 %v7407_v19 }
 0xa32   :  { %3161 = vmatpush1.msra.mxu0 %v6468_v33  ;;  %5006 = vmatpush3.msra.mxu1 %v6538_v54  ;;  %v6907_v54 = vld [vmem:[#allocation8 + $0x128] sm:$0xff] }
 0xa33   :  { %3162 = vmatprep.subr.mxu0 %v6471_v35  ;;  %5007 = vmatprep.subr.mxu1 %v7407_v19  ;;  %v7510_v35 = vld [vmem:[#allocation29_spill] sm:$0xff] }
 0xa34   :  { %3163 = vmatpush1.msra.mxu0 %v6474_v37  ;;  %5008 = vmatpush3.msra.mxu1 %v6542_v55  ;;  %v2384_v37 = vadd.f32 %v7510_v35, %v6700_v10  ;;  %v6910_v55 = vld [vmem:[#allocation8 + $0x120] sm:$0xff] }
 0xa35   :  { %3164 = vmatprep.subr.mxu0 %v6477_v25  ;;  %5009 = vmatprep.subr.mxu1 %v7407_v19 }
 0xa36   :  { %3165 = vmatpush1.msra.mxu0 %v6480_v45  ;;  %5010 = vmatpush3.msra.mxu1 %v6546_v56  ;;  %v6913_v56 = vld [vmem:[#allocation8 + $0x110] sm:$0xff] }
 0xa37   :  { %3166 = vmatprep.subr.mxu0 %v6483_v46  ;;  %5011 = vmatprep.subr.mxu1 %v7407_v19 }
 0xa38   :  { %3167 = vmatpush1.msra.mxu0 %v7502_v12  ;;  %5012 = vmatpush3.msra.mxu1 %v7503_v61  ;;  %v6970_v12 = vld [vmem:[#allocation8 + $0x88] sm:$0xff] }
 0xa39   :  { %3168 = vmatprep.subr.mxu0 %v7504_v39  ;;  %5013 = vmatprep.subr.mxu1 %v7407_v19  ;;  %v6974_v61 = vld [vmem:[#allocation8 + $0x68] sm:$0xff]  ;;  %v6978_v39 = vld [vmem:[#allocation8 + $0x60] sm:$0xff] }
 0xa3a   :  { %3169 = vmatpush1.msra.mxu0 %v7505_v51  ;;  %3202 = vmatprep.mubr.f32.mxu0 %v7407_v19  ;;  %v6980_v51 = vld [vmem:[#allocation8 + $0x70] sm:$0xff] }
 0xa3b   :  { %5014 = vmatpush3.msra.mxu1 %v7506_v13  ;;  %5015 = vmatprep.mubr.msk.f32.mxu1 %vm5397_vm1, %v7407_v19  ;;  %v6984_v13 = vld [vmem:[#allocation8 + $0x50] sm:$0xff] }
 0xa3c   :  { %5018 = vmatprep.subr.mxu1 %v7407_v19 }
 0xadb   :  { %v2989_v18 = vpop.f32.mrf.mxu0  ;;  %v3060_v20 = vpop.f32.mrf.mxu1 }
 0xadc   :  { %v3064_v22 = vadd.f32 %v2989_v18, %v2273_v17  ;;  %v3078_v41 = vadd.f32 %v6695_v57, %v3060_v20  ;;  %v6990_v17 = vld [vmem:[#allocation8 + $0x58] sm:$0xff]  ;;  %v6998_v20 = vld [vmem:[#allocation8 + $0x30] sm:$0xff] }
 0xadd   :  { %v4982_v36 = vpop.f32.mrf.mxu1  ;;  %v2991_v43 = vpop.f32.mrf.mxu0  ;;  %v6994_v18 = vld [vmem:[#allocation8 + $0x38] sm:$0xff] }
 0xade   :  { %v4214_v42 = vmul.f32 -1.442695, %v3064_v22  ;;  %v3071_v44 = vadd.f32 %v2991_v43, %v2275_v6  ;;  %v7000_v22 = vld [vmem:[#allocation8 + $0x40] sm:$0xff]  ;;  %v7010_v43 = vld [vmem:[#allocation8 + $0x28] sm:$0xff] }
 0xadf   :  { %v7004_v36 = vld [vmem:[#allocation8 + $0x20] sm:$0xff]  ;;  %7513 = vst [vmem:[#allocation12_spill] sm:$0xff] %v7010_v43 }
 0xae0   :  { %5265 = vpow2.f32 %v4214_v42  ;;  %v4215_v48 = vmul.f32 -1.442695, %v3071_v44  ;;  %v7008_v42 = vld [vmem:[#allocation8 + $0x18] sm:$0xff]  ;;  %v7018_v6 = vld [vmem:[#allocation8] sm:$0xff]  ;;  %v7020_v44 = vld [vmem:[#allocation8 + $0x10] sm:$0xff] }
 0xae1   :  { %7512 = vst [vmem:[#allocation33_spill] sm:$0xff] %v7008_v42  ;;  %7515 = vst [vmem:[#allocation20_spill] sm:$0xff] %v7018_v6 }
 0xae2   :  { %5267 = vpow2.f32 %v4215_v48  ;;  %7516 = vst [vmem:[#allocation23_spill] sm:$0xff] %v7020_v44  ;;  %v7517_v48 = vld [vmem:[#allocation15_spill] sm:$0xff] }
 0xaed   :  { %v5266_v50 = vpop.eup %5265 }
 0xaee   :  { %v3068_v47 = vadd.f32 1.0, %v5266_v50  ;;  %v2279_v50 = vadd.f32 %v7517_v48, %v7507_v14  ;;  %v7519_v14 = vld [vmem:[#allocation32_spill] sm:$0xff] }
 0xaef   :  { %v5268_v40 = vpop.eup %5267 }
 0xaf0   :  { %5269 = vrcp.f32 %v3068_v47  ;;  %v3075_v46 = vadd.f32 1.0, %v5268_v40 }
 0xafd   :  { %v5270_v33 = vpop.eup %5269 }
 0xafe   :  { %v3079_v25 = vmul.f32 %v5270_v33, %v3078_v41 }
 0xb00   :  { %v3080_v45 = vadd.f32 %v3079_v25, %v2384_v37  ;;  %v7518_v25 = vld [vmem:[#allocation25_spill] sm:$0xff] }
 0xb02   :  { %5271 = vtanh.f32 %v3080_v45  ;;  %v2281_v45 = vadd.f32 %v7518_v25, %v6689_v26 }
 0xb03   :  { %5273 = vrcp.f32 %v3075_v46 }
 0xb0f   :  { %v5272_v27 = vpop.eup %5271 }
 0xb10   :  { %v3082_v32 = vsub.f32 %v6786_v59, %v5272_v27  ;;  %v5274_v0 = vpop.eup %5273  ;;  %v6968_v59 = vld [vmem:[#allocation8 + $0x78] sm:$0xff] }
 0xb12   :  { %v3083_v38 = vmul.f32 %v5274_v0, %v3082_v32 }
 0xb14   :  { %v6868_v52 = vadd.f32 %v5272_v27, %v3083_v38 }
 0xb16   :  { %4216 = vst [vmem:[%s7322_s9 + $0x10] sm:$0xff] %v6868_v52  ;;  %3203 = vmatmul.mubr.f32.vlgmr.msra.gmra.mxu0 %v6868_v52  ;;  %5016 = vmatmul.mubr.f32.vlgmr.msra.gmra.mxu1 %v6868_v52 }
 0xb17   :  { %5019 = vmatpush3.msra.mxu1 %v6494_v21  ;;  %3417 = vmatprep.mubr.f32.mxu0 %v7407_v19  ;;  %v6889_v21 = vld [vmem:[#allocation8 + $0x170] sm:$0xff] }
 0xb18   :  { %5020 = vmatprep.subr.mxu1 %v7407_v19  ;;  %5050 = vmatprep.mubr.msk.f32.mxu1 %vm5397_vm1, %v7407_v19  ;;  %7511 = vst [vmem:[#allocation19_spill] sm:$0xff] %v6889_v21 }
 0xb19   :  { %5021 = vmatpush3.msra.mxu1 %v6496_v49  ;;  %3353 = vmatprep.subr.mxu0 %v6889_v21  ;;  %v6895_v49 = vld [vmem:[#allocation8 + $0x158] sm:$0xff] }
 0xb1a   :  { %5022 = vmatprep.subr.mxu1 %v7407_v19  ;;  %3354 = vmatpush1.msra.mxu0 %v6892_v53 }
 0xb1b   :  { %5023 = vmatpush3.msra.mxu1 %v6501_v5  ;;  %3355 = vmatprep.subr.mxu0 %v6895_v49  ;;  %v6898_v5 = vld [vmem:[#allocation8 + $0x150] sm:$0xff] }
 0xb1c   :  { %5024 = vmatprep.subr.mxu1 %v7407_v19  ;;  %3356 = vmatpush1.msra.mxu0 %v6898_v5 }
 0xb1d   :  { %5025 = vmatpush3.msra.mxu1 %v6506_v3  ;;  %v6901_v3 = vld [vmem:[#allocation8 + $0x140] sm:$0xff] }
 0xb1e   :  { %5026 = vmatprep.subr.mxu1 %v7407_v19  ;;  %3357 = vmatprep.subr.mxu0 %v6901_v3 }
 0xb1f   :  { %5027 = vmatpush3.msra.mxu1 %v6510_v15  ;;  %v6904_v15 = vld [vmem:[#allocation8 + $0x138] sm:$0xff] }
 0xb20   :  { %5028 = vmatprep.subr.mxu1 %v7407_v19  ;;  %3358 = vmatpush1.msra.mxu0 %v6904_v15 }
 0xb21   :  { %3359 = vmatprep.subr.mxu0 %v6907_v54  ;;  %5029 = vmatpush3.msra.mxu1 %v6924_v7 }
 0xb22   :  { %3360 = vmatpush1.msra.mxu0 %v6910_v55  ;;  %5030 = vmatprep.subr.mxu1 %v7407_v19 }
 0xb23   :  { %3361 = vmatprep.subr.mxu0 %v6913_v56  ;;  %5031 = vmatpush3.msra.mxu1 %v6932_v29 }
 0xb24   :  { %3362 = vmatpush1.msra.mxu0 %v6916_v30  ;;  %5032 = vmatprep.subr.mxu1 %v7407_v19 }
 0xb25   :  { %3363 = vmatprep.subr.mxu0 %v6919_v34  ;;  %5033 = vmatpush3.msra.mxu1 %v6940_v8 }
 0xb26   :  { %3364 = vmatpush1.msra.mxu0 %v6922_v2  ;;  %5034 = vmatprep.subr.mxu1 %v7407_v19 }
 0xb27   :  { %3365 = vmatprep.subr.mxu0 %v6926_v24  ;;  %5035 = vmatpush3.msra.mxu1 %v6950_v31 }
 0xb28   :  { %3366 = vmatpush1.msra.mxu0 %v6930_v58  ;;  %5036 = vmatprep.subr.mxu1 %v7407_v19 }
 0xb29   :  { %3367 = vmatprep.subr.mxu0 %v6934_v62  ;;  %5037 = vmatpush3.msra.mxu1 %v6960_v63 }
 0xb2a   :  { %3368 = vmatpush1.msra.mxu0 %v6938_v60  ;;  %5038 = vmatprep.subr.mxu1 %v7407_v19 }
 0xb2b   :  { %3369 = vmatprep.subr.mxu0 %v6944_v11  ;;  %5039 = vmatpush3.msra.mxu1 %v6970_v12 }
 0xb2c   :  { %3370 = vmatpush1.msra.mxu0 %v6948_v9  ;;  %5040 = vmatprep.subr.mxu1 %v7407_v19 }
 0xb2d   :  { %3371 = vmatprep.subr.mxu0 %v6954_v4  ;;  %5041 = vmatpush3.msra.mxu1 %v6980_v51 }
 0xb2e   :  { %3372 = vmatpush1.msra.mxu0 %v6958_v23  ;;  %5042 = vmatprep.subr.mxu1 %v7407_v19 }
 0xb2f   :  { %3373 = vmatprep.subr.mxu0 %v6964_v28  ;;  %5043 = vmatpush3.msra.mxu1 %v6990_v17 }
 0xb30   :  { %3374 = vmatpush1.msra.mxu0 %v6968_v59  ;;  %5044 = vmatprep.subr.mxu1 %v7407_v19 }
 0xb31   :  { %3375 = vmatprep.subr.mxu0 %v6974_v61  ;;  %5045 = vmatpush3.msra.mxu1 %v7000_v22 }
 0xb32   :  { %3376 = vmatpush1.msra.mxu0 %v6978_v39  ;;  %5046 = vmatprep.subr.mxu1 %v7407_v19 }
 0xb33   :  { %3377 = vmatprep.subr.mxu0 %v6984_v13  ;;  %5047 = vmatpush3.msra.mxu1 %v7010_v43 }
 0xb34   :  { %3378 = vmatpush1.msra.mxu0 %v6988_v16  ;;  %5048 = vmatprep.subr.mxu1 %v7407_v19 }
 0xb35   :  { %3379 = vmatprep.subr.mxu0 %v6994_v18  ;;  %5049 = vmatpush3.msra.mxu1 %v7020_v44 }
 0xb36   :  { %3380 = vmatpush1.msra.mxu0 %v6998_v20  ;;  %5053 = vmatprep.subr.mxu1 %v7407_v19 }
 0xb37   :  { %3381 = vmatprep.subr.mxu0 %v7004_v36 }
 0xb38   :  { %3382 = vmatpush1.msra.mxu0 %v7008_v42 }
 0xb39   :  { %3383 = vmatprep.subr.mxu0 %v7014_v1 }
 0xb3a   :  { %3384 = vmatpush1.msra.mxu0 %v7018_v6 }
 0xb3b   :  { %3568 = vmatprep.subr.mxu0 %v6889_v21 }
 0xbd6   :  { %v3204_v47 = vpop.f32.mrf.mxu0  ;;  %v3275_v40 = vpop.f32.mrf.mxu1 }
 0xbd7   :  { %v3279_v41 = vadd.f32 %v3204_v47, %v2279_v50  ;;  %v3293_v44 = vadd.f32 %v6695_v57, %v3275_v40  ;;  %v2389_v50 = vadd.f32 %v7519_v14, %v6700_v10  ;;  %v7081_v14 = vld [vmem:[#allocation8 + $0x178] sm:$0xff]  ;;  %v7093_v40 = vld [vmem:[#allocation8 + $0x130] sm:$0xff] }
 0xbd8   :  { %v5017_v33 = vpop.f32.mrf.mxu1  ;;  %v3206_v37 = vpop.f32.mrf.mxu0 }
 0xbd9   :  { %v4217_v35 = vmul.f32 -1.442695, %v3279_v41  ;;  %v3286_v46 = vadd.f32 %v3206_v37, %v2281_v45 }
 0xbdb   :  { %5275 = vpow2.f32 %v4217_v35  ;;  %v4218_v27 = vmul.f32 -1.442695, %v3286_v46 }
 0xbdd   :  { %5277 = vpow2.f32 %v4218_v27  ;;  %v7097_v27 = vld [vmem:[#allocation8 + $0x118] sm:$0xff] }
 0xbe8   :  { %v5276_v32 = vpop.eup %5275 }
 0xbe9   :  { %v3283_v0 = vadd.f32 1.0, %v5276_v32  ;;  %v7520_v32 = vld [vmem:[#allocation23_spill] sm:$0xff] }
 0xbea   :  { %v5278_v38 = vpop.eup %5277 }
 0xbeb   :  { %5279 = vrcp.f32 %v3283_v0  ;;  %v3290_v33 = vadd.f32 1.0, %v5278_v38  ;;  %v7521_v0 = vld [vmem:[#allocation31_spill] sm:$0xff]  ;;  %v7522_v38 = vld [vmem:[#allocation26_spill] sm:$0xff] }
 0xbf8   :  { %v5280_v48 = vpop.eup %5279 }
 0xbf9   :  { %v3294_v47 = vmul.f32 %v5280_v48, %v3293_v44  ;;  %v7089_v44 = vld [vmem:[#allocation8 + $0x148] sm:$0xff]  ;;  %v2285_v48 = vadd.f32 %v7522_v38, %v7521_v0  ;;  %v7524_v0 = vld [vmem:[#allocation11_spill] sm:$0xff] }
 0xbfb   :  { %v3295_v41 = vadd.f32 %v3294_v47, %v2389_v50 }
 0xbfd   :  { %5281 = vtanh.f32 %v3295_v41 }
 0xbfe   :  { %5283 = vrcp.f32 %v3290_v33 }
 0xc0a   :  { %v5282_v35 = vpop.eup %5281 }
 0xc0b   :  { %v3297_v37 = vsub.f32 %v6868_v52, %v5282_v35  ;;  %v5284_v25 = vpop.eup %5283  ;;  %v7085_v52 = vld [vmem:[#allocation8 + $0x160] sm:$0xff] }
 0xc0d   :  { %v3298_v45 = vmul.f32 %v5284_v25, %v3297_v37  ;;  %v7523_v25 = vld [vmem:[#allocation27_spill] sm:$0xff] }
 0xc0f   :  { %v7038_v46 = vadd.f32 %v5282_v35, %v3298_v45  ;;  %v2287_v45 = vadd.f32 %v7523_v25, %v6689_v26 }
 0xc11   :  { %4219 = vst [vmem:[%s7322_s9 + $0x18] sm:$0xff] %v7038_v46  ;;  %3418 = vmatmul.mubr.f32.vlgmr.msra.gmra.mxu0 %v7038_v46  ;;  %5051 = vmatmul.mubr.f32.vlgmr.msra.gmra.mxu1 %v7038_v46 }
 0xc12   :  { %3569 = vmatpush1.msra.mxu0 %v6892_v53  ;;  %3632 = vmatprep.mubr.f32.mxu0 %v7407_v19 }
 0xc13   :  { %3570 = vmatprep.subr.mxu0 %v6895_v49  ;;  %5085 = vmatprep.mubr.msk.f32.mxu1 %vm5397_vm1, %v7407_v19 }
 0xc14   :  { %3571 = vmatpush1.msra.mxu0 %v6898_v5  ;;  %5054 = vmatpush3.msra.mxu1 %v7081_v14 }
 0xc15   :  { %3572 = vmatprep.subr.mxu0 %v6901_v3  ;;  %5055 = vmatprep.subr.mxu1 %v7407_v19 }
 0xc16   :  { %3573 = vmatpush1.msra.mxu0 %v6904_v15  ;;  %5056 = vmatpush3.msra.mxu1 %v7085_v52 }
 0xc17   :  { %3574 = vmatprep.subr.mxu0 %v6907_v54  ;;  %5057 = vmatprep.subr.mxu1 %v7407_v19 }
 0xc18   :  { %3575 = vmatpush1.msra.mxu0 %v6910_v55  ;;  %5058 = vmatpush3.msra.mxu1 %v7089_v44 }
 0xc19   :  { %3576 = vmatprep.subr.mxu0 %v6913_v56  ;;  %5059 = vmatprep.subr.mxu1 %v7407_v19 }
 0xc1a   :  { %3577 = vmatpush1.msra.mxu0 %v6916_v30  ;;  %5060 = vmatpush3.msra.mxu1 %v7093_v40 }
 0xc1b   :  { %3578 = vmatprep.subr.mxu0 %v6919_v34  ;;  %5061 = vmatprep.subr.mxu1 %v7407_v19 }
 0xc1c   :  { %3579 = vmatpush1.msra.mxu0 %v6922_v2  ;;  %5062 = vmatpush3.msra.mxu1 %v7097_v27 }
 0xc1d   :  { %3580 = vmatprep.subr.mxu0 %v6926_v24  ;;  %5063 = vmatprep.subr.mxu1 %v7407_v19 }
 0xc1e   :  { %3581 = vmatpush1.msra.mxu0 %v6930_v58  ;;  %5064 = vmatpush3.msra.mxu1 %v6924_v7 }
 0xc1f   :  { %3582 = vmatprep.subr.mxu0 %v6934_v62  ;;  %5065 = vmatprep.subr.mxu1 %v7407_v19 }
 0xc20   :  { %3583 = vmatpush1.msra.mxu0 %v6938_v60  ;;  %5066 = vmatpush3.msra.mxu1 %v6932_v29 }
 0xc21   :  { %3584 = vmatprep.subr.mxu0 %v6944_v11  ;;  %5067 = vmatprep.subr.mxu1 %v7407_v19 }
 0xc22   :  { %3585 = vmatpush1.msra.mxu0 %v6948_v9  ;;  %5068 = vmatpush3.msra.mxu1 %v6940_v8 }
 0xc23   :  { %3586 = vmatprep.subr.mxu0 %v6954_v4  ;;  %5069 = vmatprep.subr.mxu1 %v7407_v19 }
 0xc24   :  { %3587 = vmatpush1.msra.mxu0 %v6958_v23  ;;  %5070 = vmatpush3.msra.mxu1 %v6950_v31 }
 0xc25   :  { %3588 = vmatprep.subr.mxu0 %v6964_v28  ;;  %5071 = vmatprep.subr.mxu1 %v7407_v19 }
 0xc26   :  { %3589 = vmatpush1.msra.mxu0 %v6968_v59  ;;  %5072 = vmatpush3.msra.mxu1 %v6960_v63 }
 0xc27   :  { %3590 = vmatprep.subr.mxu0 %v6974_v61  ;;  %5073 = vmatprep.subr.mxu1 %v7407_v19 }
 0xc28   :  { %3591 = vmatpush1.msra.mxu0 %v6978_v39  ;;  %5074 = vmatpush3.msra.mxu1 %v6970_v12 }
 0xc29   :  { %3592 = vmatprep.subr.mxu0 %v6984_v13  ;;  %5075 = vmatprep.subr.mxu1 %v7407_v19 }
 0xc2a   :  { %3593 = vmatpush1.msra.mxu0 %v6988_v16  ;;  %5076 = vmatpush3.msra.mxu1 %v6980_v51 }
 0xc2b   :  { %3594 = vmatprep.subr.mxu0 %v6994_v18  ;;  %5077 = vmatprep.subr.mxu1 %v7407_v19 }
 0xc2c   :  { %3595 = vmatpush1.msra.mxu0 %v6998_v20  ;;  %5078 = vmatpush3.msra.mxu1 %v6990_v17 }
 0xc2d   :  { %3596 = vmatprep.subr.mxu0 %v7004_v36  ;;  %5079 = vmatprep.subr.mxu1 %v7407_v19 }
 0xc2e   :  { %3597 = vmatpush1.msra.mxu0 %v7008_v42  ;;  %5080 = vmatpush3.msra.mxu1 %v7000_v22 }
 0xc2f   :  { %3598 = vmatprep.subr.mxu0 %v7014_v1  ;;  %5081 = vmatprep.subr.mxu1 %v7407_v19 }
 0xc30   :  { %3599 = vmatpush1.msra.mxu0 %v7018_v6  ;;  %5082 = vmatpush3.msra.mxu1 %v7010_v43 }
 0xc31   :  { %3783 = vmatprep.subr.mxu0 %v6889_v21  ;;  %5083 = vmatprep.subr.mxu1 %v7407_v19 }
 0xc32   :  { %5084 = vmatpush3.msra.mxu1 %v7520_v32 }
 0xc33   :  { %5088 = vmatprep.subr.mxu1 %v7407_v19 }
 0xcd1   :  { %v3419_v50 = vpop.f32.mrf.mxu0  ;;  %v3490_v47 = vpop.f32.mrf.mxu1 }
 0xcd2   :  { %v3494_v41 = vadd.f32 %v3419_v50, %v2285_v48  ;;  %v3508_v42 = vadd.f32 %v6695_v57, %v3490_v47  ;;  %v2394_v48 = vadd.f32 %v7524_v0, %v6700_v10  ;;  %v7525_v57 = vld [vmem:[#allocation33_spill] sm:$0xff]  ;;  %v7531_v0 = vld [vmem:[#allocation31_spill] sm:$0xff]  ;;  %v7532_v47 = vld [vmem:[#allocation28_spill] sm:$0xff] }
 0xcd3   :  { %v5052_v33 = vpop.f32.mrf.mxu1  ;;  %v3421_v37 = vpop.f32.mrf.mxu0 }
 0xcd4   :  { %v4220_v35 = vmul.f32 -1.442695, %v3494_v41  ;;  %v3501_v21 = vadd.f32 %v3421_v37, %v2287_v45  ;;  %v2291_v45 = vadd.f32 %v7532_v47, %v7531_v0  ;;  %v7213_v47 = vld [vmem:[%s7321_s8] ss:$0 sm:$0xff] }
 0xcd6   :  { %5285 = vpow2.f32 %v4220_v35  ;;  %v4221_v6 = vmul.f32 -1.442695, %v3501_v21 }
 0xcd8   :  { %5287 = vpow2.f32 %v4221_v6  ;;  %v7528_v6 = vld [vmem:[#allocation20_spill] sm:$0xff] }
 0xce3   :  { %v5286_v1 = vpop.eup %5285 }
 0xce4   :  { %v3498_v43 = vadd.f32 1.0, %v5286_v1 }
 0xce5   :  { %v5288_v32 = vpop.eup %5287 }
 0xce6   :  { %5289 = vrcp.f32 %v3498_v43  ;;  %v3505_v33 = vadd.f32 1.0, %v5288_v32  ;;  %v7527_v43 = vld [vmem:[#allocation17_spill] sm:$0xff]  ;;  %v7530_v32 = vld [vmem:[#allocation19_spill] sm:$0xff] }
 0xcf3   :  { %v5290_v38 = vpop.eup %5289 }
 0xcf4   :  { %v3509_v50 = vmul.f32 %v5290_v38, %v3508_v42  ;;  %v7526_v42 = vld [vmem:[#allocation12_spill] sm:$0xff] }
 0xcf6   :  { %v3510_v41 = vadd.f32 %v3509_v50, %v2394_v48 }
 0xcf8   :  { %5291 = vtanh.f32 %v3510_v41 }
 0xcf9   :  { %5293 = vrcp.f32 %v3505_v33 }
 0xd05   :  { %v5292_v35 = vpop.eup %5291 }
 0xd06   :  { %v3512_v37 = vsub.f32 %v7038_v46, %v5292_v35  ;;  %v5294_v21 = vpop.eup %5293  ;;  %v7529_v46 = vld [vmem:[#allocation23_spill] sm:$0xff] }
 0xd08   :  { %v3513_v25 = vmul.f32 %v5294_v21, %v3512_v37  ;;  %v7533_v37 = vld [vmem:[#allocation35_spill] sm:$0xff] }
 0xd09   :  { %v2293_v21 = vadd.f32 %v7533_v37, %v6689_v26 }
 0xd0a   :  { %v7131_v1 = vadd.f32 %v5292_v35, %v3513_v25 }
 0xd0c   :  { %4222 = vst [vmem:[%s7322_s9 + $0x20] sm:$0xff] %v7131_v1  ;;  %3633 = vmatmul.mubr.f32.vlgmr.msra.gmra.mxu0 %v7131_v1  ;;  %5086 = vmatmul.mubr.f32.vlgmr.msra.gmra.mxu1 %v7131_v1 }
 0xd0d   :  { %3784 = vmatpush1.msra.mxu0 %v6892_v53  ;;  %5089 = vmatpush3.msra.mxu1 %v7081_v14 }
 0xd0e   :  { %3785 = vmatprep.subr.mxu0 %v6895_v49  ;;  %5090 = vmatprep.subr.mxu1 %v7407_v19 }
 0xd0f   :  { %3786 = vmatpush1.msra.mxu0 %v6898_v5  ;;  %5091 = vmatpush3.msra.mxu1 %v7085_v52 }
 0xd10   :  { %3787 = vmatprep.subr.mxu0 %v6901_v3  ;;  %5092 = vmatprep.subr.mxu1 %v7407_v19 }
 0xd11   :  { %3788 = vmatpush1.msra.mxu0 %v6904_v15  ;;  %5093 = vmatpush3.msra.mxu1 %v7089_v44 }
 0xd12   :  { %3789 = vmatprep.subr.mxu0 %v6907_v54  ;;  %5094 = vmatprep.subr.mxu1 %v7407_v19 }
 0xd13   :  { %3790 = vmatpush1.msra.mxu0 %v6910_v55  ;;  %5095 = vmatpush3.msra.mxu1 %v7093_v40 }
 0xd14   :  { %3791 = vmatprep.subr.mxu0 %v6913_v56  ;;  %5096 = vmatprep.subr.mxu1 %v7407_v19 }
 0xd15   :  { %3792 = vmatpush1.msra.mxu0 %v6916_v30  ;;  %5097 = vmatpush3.msra.mxu1 %v7097_v27 }
 0xd16   :  { %3793 = vmatprep.subr.mxu0 %v6919_v34  ;;  %5098 = vmatprep.subr.mxu1 %v7407_v19 }
 0xd17   :  { %3794 = vmatpush1.msra.mxu0 %v6922_v2  ;;  %5099 = vmatpush3.msra.mxu1 %v6924_v7 }
 0xd18   :  { %3795 = vmatprep.subr.mxu0 %v6926_v24  ;;  %5100 = vmatprep.subr.mxu1 %v7407_v19 }
 0xd19   :  { %3796 = vmatpush1.msra.mxu0 %v6930_v58  ;;  %5101 = vmatpush3.msra.mxu1 %v6932_v29 }
 0xd1a   :  { %3797 = vmatprep.subr.mxu0 %v6934_v62  ;;  %5102 = vmatprep.subr.mxu1 %v7407_v19 }
 0xd1b   :  { %3798 = vmatpush1.msra.mxu0 %v6938_v60  ;;  %5103 = vmatpush3.msra.mxu1 %v6940_v8 }
 0xd1c   :  { %3799 = vmatprep.subr.mxu0 %v6944_v11  ;;  %5104 = vmatprep.subr.mxu1 %v7407_v19 }
 0xd1d   :  { %3800 = vmatpush1.msra.mxu0 %v6948_v9  ;;  %5105 = vmatpush3.msra.mxu1 %v6950_v31 }
 0xd1e   :  { %3801 = vmatprep.subr.mxu0 %v6954_v4  ;;  %5106 = vmatprep.subr.mxu1 %v7407_v19 }
 0xd1f   :  { %3802 = vmatpush1.msra.mxu0 %v6958_v23  ;;  %5107 = vmatpush3.msra.mxu1 %v6960_v63 }
 0xd20   :  { %3803 = vmatprep.subr.mxu0 %v6964_v28  ;;  %5108 = vmatprep.subr.mxu1 %v7407_v19 }
 0xd21   :  { %3804 = vmatpush1.msra.mxu0 %v6968_v59  ;;  %5109 = vmatpush3.msra.mxu1 %v6970_v12 }
 0xd22   :  { %3805 = vmatprep.subr.mxu0 %v6974_v61  ;;  %5110 = vmatprep.subr.mxu1 %v7407_v19 }
 0xd23   :  { %3806 = vmatpush1.msra.mxu0 %v6978_v39  ;;  %5111 = vmatpush3.msra.mxu1 %v6980_v51 }
 0xd24   :  { %3807 = vmatprep.subr.mxu0 %v6984_v13  ;;  %5112 = vmatprep.subr.mxu1 %v7407_v19 }
 0xd25   :  { %3808 = vmatpush1.msra.mxu0 %v6988_v16  ;;  %5113 = vmatpush3.msra.mxu1 %v6990_v17 }
 0xd26   :  { %3809 = vmatprep.subr.mxu0 %v6994_v18  ;;  %5114 = vmatprep.subr.mxu1 %v7407_v19 }
 0xd27   :  { %3810 = vmatpush1.msra.mxu0 %v6998_v20  ;;  %5115 = vmatpush3.msra.mxu1 %v7000_v22 }
 0xd28   :  { %3811 = vmatprep.subr.mxu0 %v7004_v36  ;;  %5116 = vmatprep.subr.mxu1 %v7407_v19 }
 0xd29   :  { %3812 = vmatpush1.msra.mxu0 %v7525_v57  ;;  %5117 = vmatpush3.msra.mxu1 %v7526_v42 }
 0xd2a   :  { %3813 = vmatprep.subr.mxu0 %v7527_v43  ;;  %5118 = vmatprep.subr.mxu1 %v7407_v19 }
 0xd2b   :  { %3814 = vmatpush1.msra.mxu0 %v7528_v6  ;;  %3847 = vmatprep.mubr.f32.mxu0 %v7407_v19 }
 0xd2c   :  { %5119 = vmatpush3.msra.mxu1 %v7529_v46  ;;  %5120 = vmatprep.mubr.msk.f32.mxu1 %vm5397_vm1, %v7407_v19 }
 0xd2d   :  { %3998 = vmatprep.subr.mxu0 %v7530_v32  ;;  %5123 = vmatprep.subr.mxu1 %v7407_v19 }
 0xdcc   :  { %v3634_v38 = vpop.f32.mrf.mxu0  ;;  %v3705_v48 = vpop.f32.mrf.mxu1 }
 0xdcd   :  { %v3709_v50 = vadd.f32 %v3634_v38, %v2291_v45  ;;  %v3723_v45 = vadd.f32 %v7213_v47, %v3705_v48  ;;  %v7543_v48 = vld [vmem:[#allocation16_spill] sm:$0xff] }
 0xdce   :  { %v5087_v41 = vpop.f32.mrf.mxu1  ;;  %v3636_v35 = vpop.f32.mrf.mxu0 }
 0xdcf   :  { %v4223_v33 = vmul.f32 -1.442695, %v3709_v50  ;;  %v3716_v25 = vadd.f32 %v3636_v35, %v2293_v21  ;;  %v7534_v50 = vld [vmem:[#allocation36_spill] sm:$0xff] }
 0xdd0   :  { %v2399_v41 = vadd.f32 %v7534_v50, %v6700_v10 }
 0xdd1   :  { %5295 = vpow2.f32 %v4223_v33  ;;  %v4224_v46 = vmul.f32 -1.442695, %v3716_v25 }
 0xdd3   :  { %5297 = vpow2.f32 %v4224_v46 }
 0xdde   :  { %v5296_v6 = vpop.eup %5295 }
 0xddf   :  { %v3713_v43 = vadd.f32 1.0, %v5296_v6 }
 0xde0   :  { %v5298_v32 = vpop.eup %5297 }
 0xde1   :  { %5299 = vrcp.f32 %v3713_v43  ;;  %v3720_v35 = vadd.f32 1.0, %v5298_v32  ;;  %v2409_v32 = vadd.f32 %v7543_v48, %v6700_v10 }
 0xdee   :  { %v5300_v38 = vpop.eup %5299 }
 0xdef   :  { %v3724_v33 = vmul.f32 %v5300_v38, %v3723_v45 }
 0xdf1   :  { %v3725_v37 = vadd.f32 %v3724_v33, %v2399_v41 }
 0xdf3   :  { %5301 = vtanh.f32 %v3725_v37 }
 0xdf4   :  { %5303 = vrcp.f32 %v3720_v35 }
 0xe00   :  { %v5302_v6 = vpop.eup %5301 }
 0xe01   :  { %v3727_v43 = vsub.f32 %v7131_v1, %v5302_v6  ;;  %v5304_v46 = vpop.eup %5303 }
 0xe03   :  { %v3728_v21 = vmul.f32 %v5304_v46, %v3727_v43 }
 0xe05   :  { %v7219_v25 = vadd.f32 %v5302_v6, %v3728_v21 }
 0xe07   :  { %4225 = vst [vmem:[%s7322_s9 + $0x28] sm:$0xff] %v7219_v25  ;;  %3848 = vmatmul.mubr.f32.vlgmr.msra.gmra.mxu0 %v7219_v25  ;;  %5121 = vmatmul.mubr.f32.vlgmr.msra.gmra.mxu1 %v7219_v25 }
 0xe08   :  { %3999 = vmatpush1.msra.mxu0 %v6892_v53  ;;  %5124 = vmatpush3.msra.mxu1 %v7081_v14  ;;  %v7535_v53 = vld [vmem:[#allocation17_spill] sm:$0xff] }
 0xe09   :  { %4000 = vmatprep.subr.mxu0 %v6895_v49  ;;  %5125 = vmatprep.subr.mxu1 %v7407_v19  ;;  %v7536_v49 = vld [vmem:[#allocation20_spill] sm:$0xff]  ;;  %v7542_v14 = vld [vmem:[#allocation37_spill] sm:$0xff] }
 0xe0a   :  { %4001 = vmatpush1.msra.mxu0 %v6898_v5  ;;  %5126 = vmatpush3.msra.mxu1 %v7085_v52  ;;  %v7537_v5 = vld [vmem:[#allocation23_spill] sm:$0xff]  ;;  %v2305_v52 = vadd.f32 %v7542_v14, %v6689_v26 }
 0xe0b   :  { %4002 = vmatprep.subr.mxu0 %v6901_v3  ;;  %5127 = vmatprep.subr.mxu1 %v7407_v19  ;;  %v7538_v3 = vld [vmem:[#allocation14_spill] sm:$0xff] }
 0xe0c   :  { %4003 = vmatpush1.msra.mxu0 %v6904_v15  ;;  %5128 = vmatpush3.msra.mxu1 %v7089_v44  ;;  %v2297_v15 = vadd.f32 %v7538_v3, %v7531_v0 }
 0xe0d   :  { %4004 = vmatprep.subr.mxu0 %v6907_v54  ;;  %5129 = vmatprep.subr.mxu1 %v7407_v19 }
 0xe0e   :  { %4005 = vmatpush1.msra.mxu0 %v6910_v55  ;;  %5130 = vmatpush3.msra.mxu1 %v7093_v40 }
 0xe0f   :  { %4006 = vmatprep.subr.mxu0 %v6913_v56  ;;  %5131 = vmatprep.subr.mxu1 %v7407_v19 }
 0xe10   :  { %4007 = vmatpush1.msra.mxu0 %v6916_v30  ;;  %5132 = vmatpush3.msra.mxu1 %v7097_v27 }
 0xe11   :  { %4008 = vmatprep.subr.mxu0 %v6919_v34  ;;  %5133 = vmatprep.subr.mxu1 %v7407_v19 }
 0xe12   :  { %4009 = vmatpush1.msra.mxu0 %v6922_v2  ;;  %5134 = vmatpush3.msra.mxu1 %v6924_v7  ;;  %v7539_v7 = vld [vmem:[#allocation30_spill] sm:$0xff] }
 0xe13   :  { %4010 = vmatprep.subr.mxu0 %v6926_v24  ;;  %5135 = vmatprep.subr.mxu1 %v7407_v19  ;;  %v2299_v24 = vadd.f32 %v7539_v7, %v6689_v26 }
 0xe14   :  { %4011 = vmatpush1.msra.mxu0 %v6930_v58  ;;  %5136 = vmatpush3.msra.mxu1 %v6932_v29 }
 0xe15   :  { %4012 = vmatprep.subr.mxu0 %v6934_v62  ;;  %5137 = vmatprep.subr.mxu1 %v7407_v19 }
 0xe16   :  { %4013 = vmatpush1.msra.mxu0 %v6938_v60  ;;  %5138 = vmatpush3.msra.mxu1 %v6940_v8 }
 0xe17   :  { %4014 = vmatprep.subr.mxu0 %v6944_v11  ;;  %5139 = vmatprep.subr.mxu1 %v7407_v19 }
 0xe18   :  { %4015 = vmatpush1.msra.mxu0 %v6948_v9  ;;  %5140 = vmatpush3.msra.mxu1 %v6950_v31  ;;  %v7540_v9 = vld [vmem:[#allocation38_spill] sm:$0xff] }
 0xe19   :  { %4016 = vmatprep.subr.mxu0 %v6954_v4  ;;  %5141 = vmatprep.subr.mxu1 %v7407_v19  ;;  %v2404_v31 = vadd.f32 %v7540_v9, %v6700_v10 }
 0xe1a   :  { %4017 = vmatpush1.msra.mxu0 %v6958_v23  ;;  %5142 = vmatpush3.msra.mxu1 %v6960_v63 }
 0xe1b   :  { %4018 = vmatprep.subr.mxu0 %v6964_v28  ;;  %5143 = vmatprep.subr.mxu1 %v7407_v19 }
 0xe1c   :  { %4019 = vmatpush1.msra.mxu0 %v6968_v59  ;;  %5144 = vmatpush3.msra.mxu1 %v6970_v12 }
 0xe1d   :  { %4020 = vmatprep.subr.mxu0 %v6974_v61  ;;  %5145 = vmatprep.subr.mxu1 %v7407_v19 }
 0xe1e   :  { %4021 = vmatpush1.msra.mxu0 %v6978_v39  ;;  %5146 = vmatpush3.msra.mxu1 %v6980_v51  ;;  %v7541_v51 = vld [vmem:[#allocation34_spill] sm:$0xff] }
 0xe1f   :  { %4022 = vmatprep.subr.mxu0 %v6984_v13  ;;  %5147 = vmatprep.subr.mxu1 %v7407_v19  ;;  %v2303_v13 = vadd.f32 %v7541_v51, %v7531_v0 }
 0xe20   :  { %4023 = vmatpush1.msra.mxu0 %v6988_v16  ;;  %5148 = vmatpush3.msra.mxu1 %v6990_v17 }
 0xe21   :  { %4024 = vmatprep.subr.mxu0 %v6994_v18  ;;  %5149 = vmatprep.subr.mxu1 %v7407_v19 }
 0xe22   :  { %4025 = vmatpush1.msra.mxu0 %v6998_v20  ;;  %5150 = vmatpush3.msra.mxu1 %v7000_v22 }
 0xe23   :  { %4026 = vmatprep.subr.mxu0 %v7004_v36  ;;  %5151 = vmatprep.subr.mxu1 %v7407_v19 }
 0xe24   :  { %4027 = vmatpush1.msra.mxu0 %v7525_v57  ;;  %5152 = vmatpush3.msra.mxu1 %v7526_v42 }
 0xe25   :  { %4028 = vmatprep.subr.mxu0 %v7535_v53  ;;  %5153 = vmatprep.subr.mxu1 %v7407_v19 }
 0xe26   :  { %4029 = vmatpush1.msra.mxu0 %v7536_v49  ;;  %4062 = vmatprep.mubr.f32.mxu0 %v7407_v19 }
 0xe27   :  { %5154 = vmatpush3.msra.mxu1 %v7537_v5  ;;  %5155 = vmatprep.mubr.msk.f32.mxu1 %vm5397_vm1, %v7407_v19 }
 0xec7   :  { %v3849_v54 = vpop.f32.mrf.mxu0  ;;  %v3920_v55 = vpop.f32.mrf.mxu1 }
 0xec8   :  { %v3924_v56 = vadd.f32 %v3849_v54, %v2297_v15  ;;  %v3938_v8 = vadd.f32 %v7213_v47, %v3920_v55 }
 0xec9   :  { %v5122_v30 = vpop.f32.mrf.mxu1  ;;  %v3851_v2 = vpop.f32.mrf.mxu0 }
 0xeca   :  { %v4226_v34 = vmul.f32 -1.442695, %v3924_v56  ;;  %v3931_v58 = vadd.f32 %v3851_v2, %v2299_v24 }
 0xecc   :  { %5305 = vpow2.f32 %v4226_v34  ;;  %v4227_v29 = vmul.f32 -1.442695, %v3931_v58 }
 0xece   :  { %5307 = vpow2.f32 %v4227_v29 }
 0xed9   :  { %v5306_v62 = vpop.eup %5305 }
 0xeda   :  { %v3928_v60 = vadd.f32 1.0, %v5306_v62 }
 0xedb   :  { %v5308_v19 = vpop.eup %5307 }
 0xedc   :  { %5309 = vrcp.f32 %v3928_v60  ;;  %v3935_v63 = vadd.f32 1.0, %v5308_v19 }
 0xee9   :  { %v5310_v11 = vpop.eup %5309 }
 0xeea   :  { %v3939_v4 = vmul.f32 %v5310_v11, %v3938_v8 }
 0xeec   :  { %v3940_v23 = vadd.f32 %v3939_v4, %v2404_v31 }
 0xeee   :  { %5311 = vtanh.f32 %v3940_v23 }
 0xeef   :  { %5313 = vrcp.f32 %v3935_v63 }
 0xefb   :  { %v5312_v28 = vpop.eup %5311 }
 0xefc   :  { %v3942_v59 = vsub.f32 %v7219_v25, %v5312_v28  ;;  %v5314_v12 = vpop.eup %5313 }
 0xefe   :  { %v3943_v61 = vmul.f32 %v5314_v12, %v3942_v59 }
 0xf00   :  { %v3944_v39 = vadd.f32 %v5312_v28, %v3943_v61 }
 0xf02   :  { %4228 = vst [vmem:[%s7322_s9 + $0x30] sm:$0xff] %v3944_v39  ;;  %4063 = vmatmul.mubr.f32.vlgmr.msra.gmra.mxu0 %v3944_v39  ;;  %5156 = vmatmul.mubr.f32.vlgmr.msra.gmra.mxu1 %v3944_v39 }
 0xfc2   :  { %v4064_v16 = vpop.f32.mrf.mxu0  ;;  %v4135_v17 = vpop.f32.mrf.mxu1 }
 0xfc3   :  { %v4139_v18 = vadd.f32 %v4064_v16, %v2303_v13  ;;  %v4153_v42 = vadd.f32 %v7213_v47, %v4135_v17 }
 0xfc4   :  { %v5157_v20 = vpop.f32.mrf.mxu1  ;;  %v4066_v36 = vpop.f32.mrf.mxu0 }
 0xfc5   :  { %v4229_v22 = vmul.f32 -1.442695, %v4139_v18  ;;  %v4146_v44 = vadd.f32 %v4066_v36, %v2305_v52 }
 0xfc7   :  { %5315 = vpow2.f32 %v4229_v22  ;;  %v4230_v40 = vmul.f32 -1.442695, %v4146_v44 }
 0xfc9   :  { %5317 = vpow2.f32 %v4230_v40 }
 0xfd4   :  { %v5316_v27 = vpop.eup %5315 }
 0xfd5   :  { %v4143_v1 = vadd.f32 1.0, %v5316_v27 }
 0xfd6   :  { %v5318_v57 = vpop.eup %5317 }
 0xfd7   :  { %5319 = vrcp.f32 %v4143_v1  ;;  %v4150_v50 = vadd.f32 1.0, %v5318_v57 }
 0xfe4   :  { %v5320_v0 = vpop.eup %5319 }
 0xfe5   :  { %v4154_v45 = vmul.f32 %v5320_v0, %v4153_v42 }
 0xfe7   :  { %v4155_v38 = vadd.f32 %v4154_v45, %v2409_v32 }
 0xfe9   :  { %5321 = vtanh.f32 %v4155_v38 }
 0xfea   :  { %5323 = vrcp.f32 %v4150_v50 }
 0xff6   :  { %v5322_v41 = vpop.eup %5321 }
 0xff7   :  { %v4157_v26 = vsub.f32 %v3944_v39, %v5322_v41  ;;  %v5324_v33 = vpop.eup %5323 }
 0xff9   :  { %v4158_v37 = vmul.f32 %v5324_v33, %v4157_v26 }
 0xffb   :  { %v4159_v35 = vadd.f32 %v5322_v41, %v4158_v37 }
 0xffd   :  { %4231 = vst [vmem:[%s7322_s9 + $0x38] sm:$0xff] %v4159_v35 }
 0xffe   :  { %4166 = vsyncpa [#allocation5], 1 }
 0xfff   :  { %4167 = vsyncpa [#allocation7], 1 }

</bundles_post_ra>
